<compile_context>
chip_gen: v6e
topology: v6e:2x2x1
jax: 0.10.0
libtpu: 0.0.40
codegen_flags: <defaults>
</compile_context>

<pallas_src>
import functools

import jax
import jax.numpy as jnp
from jax import lax
from jax.experimental import pallas as pl
from jax.experimental.pallas import tpu as pltpu

BN_EPS = 1e-5

# ---- static geometry for the (w=h=32, frame_stacks=1) configuration ---------
CIN = 3                      # input channels
XW = 32                      # input spatial size
XROW = XW * CIN              # 96 lanes per input image row (w, c)
OH1 = OW1 = 14               # conv1 output spatial
C1 = 16
OH2 = OW2 = 5                # conv2 output spatial
C2 = 32
K1 = 5 * XROW                # 480   conv1 im2col reduction dim (kh, w, cin)
L1 = OW1 * C1                # 224   conv1 output lanes (ow1-permuted, cout)
K2 = 5 * L1                  # 1120  conv2 im2col reduction dim (kh, ow1-perm, cin)
L2 = OW2 * C2                # 160   conv2 output lanes (ow2, cout)

# conv1 output rows/cols are kept in "evens then odds" spatial order so every
# stride-2 access conv2 needs becomes a contiguous range.
PERM14 = tuple(range(0, 14, 2)) + tuple(range(1, 14, 2))
# conv2 tap kh: y1 (permuted) rows PSTART[kh] + oh2, oh2 = 0..4 (contiguous).
PSTART = (0, 7, 1, 8, 2)
# conv1 tap kh: x rows (pre-permuted by h mod 4 in the wrapper) form two
# contiguous 7-row ranges, one per even/odd half of the permuted output rows.
XSRC_EVEN = (0, 8, 16, 24, 1)
XSRC_ODD = (16, 24, 1, 9, 17)


# ---------------- small in-kernel helpers (registers only) -------------------

def _lane_group_sum(v, groups, width):
    """Per-channel sums for a [R, groups*width] value -> [1, width]."""
    s = jnp.sum(v, axis=0, keepdims=True)
    acc = s[:, 0:width]
    for g in range(1, groups):
        acc = acc + s[:, g * width:(g + 1) * width]
    return acc


def _lane_tile(v, reps):
    """Tile a [1, width] value along lanes to [1, reps*width]."""
    return jnp.concatenate([v] * reps, axis=1)


# ---------------- fused Pallas kernel ----------------------------------------

def _make_kernel(B, n_out):
    def kernel(x_ref, r1_ref, r2_ref, small_ref, o_ref, lhs1_ref, lhs2_ref):
        # ---- conv1 im2col: 2 contiguous [7,96] copies per (batch, kh) --------
        for b in range(B):
            sb = b * 32
            db = b * OH1
            for kh in range(5):
                lc = kh * XROW
                e = XSRC_EVEN[kh]
                o = XSRC_ODD[kh]
                lhs1_ref[db:db + 7, lc:lc + XROW] = x_ref[sb + e:sb + e + 7, :]
                lhs1_ref[db + 7:db + 14, lc:lc + XROW] = x_ref[sb + o:sb + o + 7, :]

        # ---- conv1 as ONE matmul against im2col-expanded weights -------------
        # rows: (b, oh1 in PERM14 order); lanes: (ow1 in PERM14 order, cout)
        y1 = jnp.dot(lhs1_ref[...], r1_ref[...], preferred_element_type=jnp.float32)

        # ---- BatchNorm1 (batch stats, single pass) + ReLU ---------------------
        # conv bias omitted: a per-channel constant is exactly cancelled by the
        # training-mode batch-mean subtraction.
        n1 = float(B * OH1 * OW1)
        s1 = _lane_group_sum(y1, OW1, C1)
        q1 = _lane_group_sum(y1 * y1, OW1, C1)
        m1 = s1 / n1
        v1 = q1 / n1 - m1 * m1
        g1 = small_ref[32:33, 0:16]
        b1 = small_ref[32:33, 16:32]
        sc1 = g1 * lax.rsqrt(v1 + BN_EPS)
        sh1 = b1 - m1 * sc1
        y1 = jnp.maximum(y1 * _lane_tile(sc1, OW1) + _lane_tile(sh1, OW1), 0.0)

        # ---- conv2 im2col: 1 contiguous [5,224] slice per (batch, kh) ---------
        for b in range(B):
            sb = b * OH1
            db = b * OH2
            for kh in range(5):
                s = sb + PSTART[kh]
                lhs2_ref[db:db + OH2, kh * L1:(kh + 1) * L1] = y1[s:s + OH2, :]

        # ---- conv2 as ONE matmul;  rows: (b, oh2);  lanes: (ow2, cout) --------
        y2 = jnp.dot(lhs2_ref[...], r2_ref[...], preferred_element_type=jnp.float32)

        # ---- BatchNorm2 (batch stats, single pass) + ReLU ---------------------
        n2 = float(B * OH2 * OW2)
        s2 = _lane_group_sum(y2, OW2, C2)
        q2 = _lane_group_sum(y2 * y2, OW2, C2)
        m2 = s2 / n2
        v2 = q2 / n2 - m2 * m2
        g2 = small_ref[33:34, 0:32]
        b2 = small_ref[33:34, 32:64]
        sc2 = g2 * lax.rsqrt(v2 + BN_EPS)
        sh2 = b2 - m2 * sc2
        y2 = jnp.maximum(y2 * _lane_tile(sc2, OW2) + _lane_tile(sh2, OW2), 0.0)

        # ---- MaxPool2d(3): top-left 3x3 window of the 5x5 map, then flatten ---
        # Pure register max; no scratch round trip.
        # TODO(synk): generalize pooling/flatten to multi-window pooled outputs
        # for other (w, h) configurations.
        mw = jnp.maximum(jnp.maximum(y2[:, 0:C2], y2[:, C2:2 * C2]),
                         y2[:, 2 * C2:3 * C2])                      # [B*5, 32]
        pooled_rows = []
        for b in range(B):
            r = b * OH2
            pooled_rows.append(jnp.maximum(jnp.maximum(mw[r:r + 1, :],
                                                       mw[r + 1:r + 2, :]),
                                           mw[r + 2:r + 3, :]))     # [1, 32]
        pooled = jnp.concatenate(pooled_rows, axis=0)               # [B, 32]

        # ---- dense1 + head folded into one matmul (no nonlinearity between) ---
        wf = small_ref[0:32, 0:n_out]
        bf = small_ref[34:35, 0:n_out]
        o_ref[...] = jnp.dot(pooled, wf, preferred_element_type=jnp.float32) + bf

    return kernel


# ---------------- one-time parameter preparation (outside the step jit) ------

def prepare_params(params):
    """Fold / expand weights once; in a real setup this is cached with them."""
    outputs = params["head_w"].shape[0]
    w1t = jnp.transpose(params["conv1_w"], (2, 3, 1, 0))   # [kh, kw, cin, cout]
    w2t = jnp.transpose(params["conv2_w"], (2, 3, 1, 0))   # [kh, kw, cin, cout]
    perm = jnp.array(PERM14, jnp.int32)

    # conv1 im2col-expanded RHS: [480, 224]
    #   R1[kh*96 + w*3 + cin, p*16 + cout] = W1[kh, w-2*PERM14[p], cin, cout]
    kw1 = jnp.arange(XW, dtype=jnp.int32)[:, None] - 2 * perm[None, :]   # [32,14]
    val1 = ((kw1 >= 0) & (kw1 < 5)).astype(jnp.float32)
    g1 = jnp.take(w1t, jnp.clip(kw1, 0, 4).reshape(-1), axis=1)
    g1 = g1.reshape(5, XW, OW1, CIN, C1) * val1[None, :, :, None, None]
    r1 = jnp.transpose(g1, (0, 1, 3, 2, 4)).reshape(K1, L1)

    # conv2 im2col-expanded RHS: [1120, 160]
    #   R2[kh*224 + p*16 + cin, ow*32 + cout] = W2[kh, PERM14[p]-2*ow, cin, cout]
    kw2 = perm[:, None] - 2 * jnp.arange(OW2, dtype=jnp.int32)[None, :]  # [14,5]
    val2 = ((kw2 >= 0) & (kw2 < 5)).astype(jnp.float32)
    g2 = jnp.take(w2t, jnp.clip(kw2, 0, 4).reshape(-1), axis=1)
    g2 = g2.reshape(5, OW1, OW2, C1, C2) * val2[None, :, :, None, None]
    r2 = jnp.transpose(g2, (0, 1, 3, 2, 4)).reshape(K2, L2)

    # dense1 + head fold (module applies no nonlinearity between them)
    wf = jnp.matmul(params["dense1_w"].T, params["head_w"].T,
                    precision=lax.Precision.HIGHEST)                 # [32, outputs]
    bf = jnp.matmul(params["dense1_b"][None, :], params["head_w"].T,
                    precision=lax.Precision.HIGHEST)[0] + params["head_b"]

    # pack every small parameter into ONE VMEM buffer (cuts input DMA count)
    small = jnp.zeros((40, 128), jnp.float32)
    small = small.at[0:32, 0:outputs].set(wf)
    small = small.at[32, 0:16].set(params["bn1_g"])
    small = small.at[32, 16:32].set(params["bn1_b"])
    small = small.at[33, 0:32].set(params["bn2_g"])
    small = small.at[33, 32:64].set(params["bn2_b"])
    small = small.at[34, 0:outputs].set(bf)
    return {"r1": r1, "r2": r2, "small": small}


# ---------------- per-step forward (the only data-path wrapper work is one
# small layout copy of x; everything else runs inside the fused kernel) -------

def dqn_deep_forward(x_nchw, prep, *, outputs):
    B = x_nchw.shape[0]
    assert x_nchw.shape[1:] == (CIN, XW, XW), \
        "fused kernel is specialized to the 3x32x32 / frame_stacks=1 config"

    # NCHW -> NHWC with rows reordered by (h mod 4, h div 4): one ~24 KB copy so
    # that every stride-2 row gather inside the kernel is contiguous.
    x = jnp.transpose(x_nchw, (0, 2, 3, 1)).reshape(B, 8, 4, XROW)
    x = jnp.transpose(x, (0, 2, 1, 3)).reshape(B * 32, XROW)

    # NOTE: no batch grid / megacore split here — training-mode BatchNorm
    # statistics couple the whole (tiny) batch.
    # TODO(synk): for large replay batches, add a batch grid with a two-pass
    # (cross-step) BatchNorm statistics reduction.
    kernel = _make_kernel(B, outputs)
    vmem = pl.BlockSpec(memory_space=pltpu.MemorySpace.VMEM)
    return pl.pallas_call(
        kernel,
        out_shape=jax.ShapeDtypeStruct((B, outputs), jnp.float32),
        in_specs=[vmem] * 4,
        out_specs=vmem,
        scratch_shapes=[
            pltpu.VMEM((B * OH1, K1), jnp.float32),   # conv1 im2col LHS [28, 480]
            pltpu.VMEM((B * OH2, K2), jnp.float32),   # conv2 im2col LHS [10, 1120]
        ],
    )(x, prep["r1"], prep["r2"], prep["small"])


# ---------------- pure-JAX reference for verification ------------------------

def reference(x, params):
    def bn_relu(y, g, b):
        mean = y.mean(axis=(0, 2, 3), keepdims=True)
        var = jnp.square(y - mean).mean(axis=(0, 2, 3), keepdims=True)
        yhat = (y - mean) * lax.rsqrt(var + BN_EPS)
        return jnp.maximum(yhat * g[None, :, None, None] + b[None, :, None, None], 0.0)

    dn = ("NCHW", "OIHW", "NCHW")
    y = lax.conv_general_dilated(x, params["conv1_w"], (2, 2), "VALID",
                                 dimension_numbers=dn) + params["conv1_b"][None, :, None, None]
    y = bn_relu(y, params["bn1_g"], params["bn1_b"])
    y = lax.conv_general_dilated(y, params["conv2_w"], (2, 2), "VALID",
                                 dimension_numbers=dn) + params["conv2_b"][None, :, None, None]
    y = bn_relu(y, params["bn2_g"], params["bn2_b"])
    p = jnp.max(y[:, :, 0:3, 0:3], axis=(2, 3))              # MaxPool2d(3) -> [B,32]
    h = p @ params["dense1_w"].T + params["dense1_b"]
    return h @ params["head_w"].T + params["head_b"]


if __name__ == "__main__":
    W = H = 32
    FRAME_STACKS = 1
    OUTPUTS = 4
    B = 2
    CIN_TOTAL = 3 * FRAME_STACKS

    def conv2d_size_out(size, kernel_size=5, stride=2):
        return (size - (kernel_size - 1) - 1) // stride + 1

    convw = conv2d_size_out(conv2d_size_out(conv2d_size_out(W)))
    convh = conv2d_size_out(conv2d_size_out(conv2d_size_out(H)))
    lin_in = convw * convh * 32
    assert lin_in == 32  # matches actual flattened size after maxpool for w=h=32

    key = jax.random.PRNGKey(0)
    keys = jax.random.split(key, 9)
    params = dict(
        conv1_w=jax.random.normal(keys[0], (16, CIN_TOTAL, 5, 5), jnp.float32) * 0.1,
        conv1_b=jax.random.normal(keys[1], (16,), jnp.float32) * 0.1,
        bn1_g=jnp.ones((16,), jnp.float32),
        bn1_b=jnp.zeros((16,), jnp.float32),
        conv2_w=jax.random.normal(keys[2], (32, 16, 5, 5), jnp.float32) * 0.05,
        conv2_b=jax.random.normal(keys[3], (32,), jnp.float32) * 0.1,
        bn2_g=jnp.ones((32,), jnp.float32),
        bn2_b=jnp.zeros((32,), jnp.float32),
        dense1_w=jax.random.normal(keys[4], (32, lin_in), jnp.float32) * 0.1,
        dense1_b=jax.random.normal(keys[5], (32,), jnp.float32) * 0.1,
        head_w=jax.random.normal(keys[6], (OUTPUTS, 32), jnp.float32) * 0.1,
        head_b=jax.random.normal(keys[7], (OUTPUTS,), jnp.float32) * 0.1,
    )
    x = jax.random.normal(keys[8], (B, CIN_TOTAL, H, W), jnp.float32)

    prep = jax.tree_util.tree_map(jnp.asarray, prepare_params(params))  # one-time
    fwd = jax.jit(functools.partial(dqn_deep_forward, outputs=OUTPUTS))
    out = jax.block_until_ready(fwd(x, prep))
    ref = reference(x, params)
    assert out.shape == (B, OUTPUTS)
    err = float(jnp.max(jnp.abs(out - ref)))
    if err > 1e-3:
        raise AssertionError(f"Pallas output mismatch vs reference, max abs err = {err}")
    print("KERNEL_OK")
</pallas_src>

<mosaic_0001>
module attributes {stable_mosaic.version = 11 : i64} {
  func.func @kernel(%arg0: memref<64x96xf32, #tpu.memory_space<vmem>>, %arg1: memref<480x224xf32, #tpu.memory_space<vmem>>, %arg2: memref<1120x160xf32, #tpu.memory_space<vmem>>, %arg3: memref<40x128xf32, #tpu.memory_space<vmem>>, %arg4: memref<2x4xf32, #tpu.memory_space<vmem>>, %arg5: memref<28x480xf32, #tpu.memory_space<vmem>>, %arg6: memref<10x1120xf32, #tpu.memory_space<vmem>>) attributes {dimension_semantics = [], scalar_prefetch = 0 : i64, scratch_operands = 2 : i64, tpu.core_type = #tpu.core_type<tc>} {
    %c0 = arith.constant 0 : index
    %c0_0 = arith.constant 0 : index
    %0 = vector.load %arg0[%c0, %c0_0] : memref<64x96xf32, #tpu.memory_space<vmem>>, vector<7x96xf32>
    %c0_1 = arith.constant 0 : index
    %c0_2 = arith.constant 0 : index
    %1 = vector.load %arg5[%c0_1, %c0_2] : memref<28x480xf32, #tpu.memory_space<vmem>>, vector<7x96xf32>
    tpu.vector_store %arg5[%c0_1, %c0_2], %0 {strides = array<i32>} : memref<28x480xf32, #tpu.memory_space<vmem>>, vector<7x96xf32>,
    %c16 = arith.constant 16 : index
    %c0_3 = arith.constant 0 : index
    %2 = vector.load %arg0[%c16, %c0_3] : memref<64x96xf32, #tpu.memory_space<vmem>>, vector<7x96xf32>
    %c7 = arith.constant 7 : index
    %c0_4 = arith.constant 0 : index
    %3 = vector.load %arg5[%c7, %c0_4] : memref<28x480xf32, #tpu.memory_space<vmem>>, vector<7x96xf32>
    tpu.vector_store %arg5[%c7, %c0_4], %2 {strides = array<i32>} : memref<28x480xf32, #tpu.memory_space<vmem>>, vector<7x96xf32>,
    %c8 = arith.constant 8 : index
    %c0_5 = arith.constant 0 : index
    %4 = vector.load %arg0[%c8, %c0_5] : memref<64x96xf32, #tpu.memory_space<vmem>>, vector<7x96xf32>
    %c0_6 = arith.constant 0 : index
    %c96 = arith.constant 96 : index
    %5 = vector.load %arg5[%c0_6, %c96] : memref<28x480xf32, #tpu.memory_space<vmem>>, vector<7x96xf32>
    tpu.vector_store %arg5[%c0_6, %c96], %4 {strides = array<i32>} : memref<28x480xf32, #tpu.memory_space<vmem>>, vector<7x96xf32>,
    %c24 = arith.constant 24 : index
    %c0_7 = arith.constant 0 : index
    %6 = vector.load %arg0[%c24, %c0_7] : memref<64x96xf32, #tpu.memory_space<vmem>>, vector<7x96xf32>
    %c7_8 = arith.constant 7 : index
    %c96_9 = arith.constant 96 : index
    %7 = vector.load %arg5[%c7_8, %c96_9] : memref<28x480xf32, #tpu.memory_space<vmem>>, vector<7x96xf32>
    tpu.vector_store %arg5[%c7_8, %c96_9], %6 {strides = array<i32>} : memref<28x480xf32, #tpu.memory_space<vmem>>, vector<7x96xf32>,
    %c16_10 = arith.constant 16 : index
    %c0_11 = arith.constant 0 : index
    %8 = vector.load %arg0[%c16_10, %c0_11] : memref<64x96xf32, #tpu.memory_space<vmem>>, vector<7x96xf32>
    %c0_12 = arith.constant 0 : index
    %c192 = arith.constant 192 : index
    %9 = vector.load %arg5[%c0_12, %c192] : memref<28x480xf32, #tpu.memory_space<vmem>>, vector<7x96xf32>
    tpu.vector_store %arg5[%c0_12, %c192], %8 {strides = array<i32>} : memref<28x480xf32, #tpu.memory_space<vmem>>, vector<7x96xf32>,
    %c1 = arith.constant 1 : index
    %c0_13 = arith.constant 0 : index
    %10 = vector.load %arg0[%c1, %c0_13] : memref<64x96xf32, #tpu.memory_space<vmem>>, vector<7x96xf32>
    %c7_14 = arith.constant 7 : index
    %c192_15 = arith.constant 192 : index
    %11 = vector.load %arg5[%c7_14, %c192_15] : memref<28x480xf32, #tpu.memory_space<vmem>>, vector<7x96xf32>
    tpu.vector_store %arg5[%c7_14, %c192_15], %10 {strides = array<i32>} : memref<28x480xf32, #tpu.memory_space<vmem>>, vector<7x96xf32>,
    %c24_16 = arith.constant 24 : index
    %c0_17 = arith.constant 0 : index
    %12 = vector.load %arg0[%c24_16, %c0_17] : memref<64x96xf32, #tpu.memory_space<vmem>>, vector<7x96xf32>
    %c0_18 = arith.constant 0 : index
    %c288 = arith.constant 288 : index
    %13 = vector.load %arg5[%c0_18, %c288] : memref<28x480xf32, #tpu.memory_space<vmem>>, vector<7x96xf32>
    tpu.vector_store %arg5[%c0_18, %c288], %12 {strides = array<i32>} : memref<28x480xf32, #tpu.memory_space<vmem>>, vector<7x96xf32>,
    %c9 = arith.constant 9 : index
    %c0_19 = arith.constant 0 : index
    %14 = vector.load %arg0[%c9, %c0_19] : memref<64x96xf32, #tpu.memory_space<vmem>>, vector<7x96xf32>
    %c7_20 = arith.constant 7 : index
    %c288_21 = arith.constant 288 : index
    %15 = vector.load %arg5[%c7_20, %c288_21] : memref<28x480xf32, #tpu.memory_space<vmem>>, vector<7x96xf32>
    tpu.vector_store %arg5[%c7_20, %c288_21], %14 {strides = array<i32>} : memref<28x480xf32, #tpu.memory_space<vmem>>, vector<7x96xf32>,
    %c1_22 = arith.constant 1 : index
    %c0_23 = arith.constant 0 : index
    %16 = vector.load %arg0[%c1_22, %c0_23] : memref<64x96xf32, #tpu.memory_space<vmem>>, vector<7x96xf32>
    %c0_24 = arith.constant 0 : index
    %c384 = arith.constant 384 : index
    %17 = vector.load %arg5[%c0_24, %c384] : memref<28x480xf32, #tpu.memory_space<vmem>>, vector<7x96xf32>
    tpu.vector_store %arg5[%c0_24, %c384], %16 {strides = array<i32>} : memref<28x480xf32, #tpu.memory_space<vmem>>, vector<7x96xf32>,
    %c17 = arith.constant 17 : index
    %c0_25 = arith.constant 0 : index
    %18 = vector.load %arg0[%c17, %c0_25] : memref<64x96xf32, #tpu.memory_space<vmem>>, vector<7x96xf32>
    %c7_26 = arith.constant 7 : index
    %c384_27 = arith.constant 384 : index
    %19 = vector.load %arg5[%c7_26, %c384_27] : memref<28x480xf32, #tpu.memory_space<vmem>>, vector<7x96xf32>
    tpu.vector_store %arg5[%c7_26, %c384_27], %18 {strides = array<i32>} : memref<28x480xf32, #tpu.memory_space<vmem>>, vector<7x96xf32>,
    %c32 = arith.constant 32 : index
    %c0_28 = arith.constant 0 : index
    %20 = vector.load %arg0[%c32, %c0_28] : memref<64x96xf32, #tpu.memory_space<vmem>>, vector<7x96xf32>
    %c14 = arith.constant 14 : index
    %c0_29 = arith.constant 0 : index
    %21 = vector.load %arg5[%c14, %c0_29] : memref<28x480xf32, #tpu.memory_space<vmem>>, vector<7x96xf32>
    tpu.vector_store %arg5[%c14, %c0_29], %20 {strides = array<i32>} : memref<28x480xf32, #tpu.memory_space<vmem>>, vector<7x96xf32>,
    %c48 = arith.constant 48 : index
    %c0_30 = arith.constant 0 : index
    %22 = vector.load %arg0[%c48, %c0_30] : memref<64x96xf32, #tpu.memory_space<vmem>>, vector<7x96xf32>
    %c21 = arith.constant 21 : index
    %c0_31 = arith.constant 0 : index
    %23 = vector.load %arg5[%c21, %c0_31] : memref<28x480xf32, #tpu.memory_space<vmem>>, vector<7x96xf32>
    tpu.vector_store %arg5[%c21, %c0_31], %22 {strides = array<i32>} : memref<28x480xf32, #tpu.memory_space<vmem>>, vector<7x96xf32>,
    %c40 = arith.constant 40 : index
    %c0_32 = arith.constant 0 : index
    %24 = vector.load %arg0[%c40, %c0_32] : memref<64x96xf32, #tpu.memory_space<vmem>>, vector<7x96xf32>
    %c14_33 = arith.constant 14 : index
    %c96_34 = arith.constant 96 : index
    %25 = vector.load %arg5[%c14_33, %c96_34] : memref<28x480xf32, #tpu.memory_space<vmem>>, vector<7x96xf32>
    tpu.vector_store %arg5[%c14_33, %c96_34], %24 {strides = array<i32>} : memref<28x480xf32, #tpu.memory_space<vmem>>, vector<7x96xf32>,
    %c56 = arith.constant 56 : index
    %c0_35 = arith.constant 0 : index
    %26 = vector.load %arg0[%c56, %c0_35] : memref<64x96xf32, #tpu.memory_space<vmem>>, vector<7x96xf32>
    %c21_36 = arith.constant 21 : index
    %c96_37 = arith.constant 96 : index
    %27 = vector.load %arg5[%c21_36, %c96_37] : memref<28x480xf32, #tpu.memory_space<vmem>>, vector<7x96xf32>
    tpu.vector_store %arg5[%c21_36, %c96_37], %26 {strides = array<i32>} : memref<28x480xf32, #tpu.memory_space<vmem>>, vector<7x96xf32>,
    %c48_38 = arith.constant 48 : index
    %c0_39 = arith.constant 0 : index
    %28 = vector.load %arg0[%c48_38, %c0_39] : memref<64x96xf32, #tpu.memory_space<vmem>>, vector<7x96xf32>
    %c14_40 = arith.constant 14 : index
    %c192_41 = arith.constant 192 : index
    %29 = vector.load %arg5[%c14_40, %c192_41] : memref<28x480xf32, #tpu.memory_space<vmem>>, vector<7x96xf32>
    tpu.vector_store %arg5[%c14_40, %c192_41], %28 {strides = array<i32>} : memref<28x480xf32, #tpu.memory_space<vmem>>, vector<7x96xf32>,
    %c33 = arith.constant 33 : index
    %c0_42 = arith.constant 0 : index
    %30 = vector.load %arg0[%c33, %c0_42] : memref<64x96xf32, #tpu.memory_space<vmem>>, vector<7x96xf32>
    %c21_43 = arith.constant 21 : index
    %c192_44 = arith.constant 192 : index
    %31 = vector.load %arg5[%c21_43, %c192_44] : memref<28x480xf32, #tpu.memory_space<vmem>>, vector<7x96xf32>
    tpu.vector_store %arg5[%c21_43, %c192_44], %30 {strides = array<i32>} : memref<28x480xf32, #tpu.memory_space<vmem>>, vector<7x96xf32>,
    %c56_45 = arith.constant 56 : index
    %c0_46 = arith.constant 0 : index
    %32 = vector.load %arg0[%c56_45, %c0_46] : memref<64x96xf32, #tpu.memory_space<vmem>>, vector<7x96xf32>
    %c14_47 = arith.constant 14 : index
    %c288_48 = arith.constant 288 : index
    %33 = vector.load %arg5[%c14_47, %c288_48] : memref<28x480xf32, #tpu.memory_space<vmem>>, vector<7x96xf32>
    tpu.vector_store %arg5[%c14_47, %c288_48], %32 {strides = array<i32>} : memref<28x480xf32, #tpu.memory_space<vmem>>, vector<7x96xf32>,
    %c41 = arith.constant 41 : index
    %c0_49 = arith.constant 0 : index
    %34 = vector.load %arg0[%c41, %c0_49] : memref<64x96xf32, #tpu.memory_space<vmem>>, vector<7x96xf32>
    %c21_50 = arith.constant 21 : index
    %c288_51 = arith.constant 288 : index
    %35 = vector.load %arg5[%c21_50, %c288_51] : memref<28x480xf32, #tpu.memory_space<vmem>>, vector<7x96xf32>
    tpu.vector_store %arg5[%c21_50, %c288_51], %34 {strides = array<i32>} : memref<28x480xf32, #tpu.memory_space<vmem>>, vector<7x96xf32>,
    %c33_52 = arith.constant 33 : index
    %c0_53 = arith.constant 0 : index
    %36 = vector.load %arg0[%c33_52, %c0_53] : memref<64x96xf32, #tpu.memory_space<vmem>>, vector<7x96xf32>
    %c14_54 = arith.constant 14 : index
    %c384_55 = arith.constant 384 : index
    %37 = vector.load %arg5[%c14_54, %c384_55] : memref<28x480xf32, #tpu.memory_space<vmem>>, vector<7x96xf32>
    tpu.vector_store %arg5[%c14_54, %c384_55], %36 {strides = array<i32>} : memref<28x480xf32, #tpu.memory_space<vmem>>, vector<7x96xf32>,
    %c49 = arith.constant 49 : index
    %c0_56 = arith.constant 0 : index
    %38 = vector.load %arg0[%c49, %c0_56] : memref<64x96xf32, #tpu.memory_space<vmem>>, vector<7x96xf32>
    %c21_57 = arith.constant 21 : index
    %c384_58 = arith.constant 384 : index
    %39 = vector.load %arg5[%c21_57, %c384_58] : memref<28x480xf32, #tpu.memory_space<vmem>>, vector<7x96xf32>
    tpu.vector_store %arg5[%c21_57, %c384_58], %38 {strides = array<i32>} : memref<28x480xf32, #tpu.memory_space<vmem>>, vector<7x96xf32>,
    %c0_59 = arith.constant 0 : index
    %c0_60 = arith.constant 0 : index
    %40 = vector.load %arg5[%c0_59, %c0_60] : memref<28x480xf32, #tpu.memory_space<vmem>>, vector<28x480xf32>
    %c0_61 = arith.constant 0 : index
    %c0_62 = arith.constant 0 : index
    %41 = vector.load %arg1[%c0_61, %c0_62] : memref<480x224xf32, #tpu.memory_space<vmem>>, vector<480x224xf32>
    %cst = arith.constant dense<0.000000e+00> : vector<28x224xf32>
    %42 = tpu.matmul %40, %41, %cst {dimension_numbers = #tpu.dot_dimension_numbers<[1], [0], [0], [1], [0, 0, 1, 1], [], []>} : vector<28x480xf32>, vector<480x224xf32>, vector<28x224xf32> -> vector<28x224xf32>
    %cst_63 = arith.constant dense<0.000000e+00> : vector<224xf32>
    %43 = vector.multi_reduction <add>, %42, %cst_63 [0] : vector<28x224xf32> to vector<224xf32>
    %44 = vector.shape_cast %43 : vector<224xf32> to vector<1x224xf32>
    %45 = vector.extract_strided_slice %44 {offsets = [0, 0], sizes = [1, 16], strides = [1, 1]} : vector<1x224xf32> to vector<1x16xf32>
    %46 = vector.extract_strided_slice %44 {offsets = [0, 16], sizes = [1, 16], strides = [1, 1]} : vector<1x224xf32> to vector<1x16xf32>
    %47 = arith.addf %45, %46 : vector<1x16xf32>
    %48 = vector.extract_strided_slice %44 {offsets = [0, 32], sizes = [1, 16], strides = [1, 1]} : vector<1x224xf32> to vector<1x16xf32>
    %49 = arith.addf %47, %48 : vector<1x16xf32>
    %50 = vector.extract_strided_slice %44 {offsets = [0, 48], sizes = [1, 16], strides = [1, 1]} : vector<1x224xf32> to vector<1x16xf32>
    %51 = arith.addf %49, %50 : vector<1x16xf32>
    %52 = vector.extract_strided_slice %44 {offsets = [0, 64], sizes = [1, 16], strides = [1, 1]} : vector<1x224xf32> to vector<1x16xf32>
    %53 = arith.addf %51, %52 : vector<1x16xf32>
    %54 = vector.extract_strided_slice %44 {offsets = [0, 80], sizes = [1, 16], strides = [1, 1]} : vector<1x224xf32> to vector<1x16xf32>
    %55 = arith.addf %53, %54 : vector<1x16xf32>
    %56 = vector.extract_strided_slice %44 {offsets = [0, 96], sizes = [1, 16], strides = [1, 1]} : vector<1x224xf32> to vector<1x16xf32>
    %57 = arith.addf %55, %56 : vector<1x16xf32>
    %58 = vector.extract_strided_slice %44 {offsets = [0, 112], sizes = [1, 16], strides = [1, 1]} : vector<1x224xf32> to vector<1x16xf32>
    %59 = arith.addf %57, %58 : vector<1x16xf32>
    %60 = vector.extract_strided_slice %44 {offsets = [0, 128], sizes = [1, 16], strides = [1, 1]} : vector<1x224xf32> to vector<1x16xf32>
    %61 = arith.addf %59, %60 : vector<1x16xf32>
    %62 = vector.extract_strided_slice %44 {offsets = [0, 144], sizes = [1, 16], strides = [1, 1]} : vector<1x224xf32> to vector<1x16xf32>
    %63 = arith.addf %61, %62 : vector<1x16xf32>
    %64 = vector.extract_strided_slice %44 {offsets = [0, 160], sizes = [1, 16], strides = [1, 1]} : vector<1x224xf32> to vector<1x16xf32>
    %65 = arith.addf %63, %64 : vector<1x16xf32>
    %66 = vector.extract_strided_slice %44 {offsets = [0, 176], sizes = [1, 16], strides = [1, 1]} : vector<1x224xf32> to vector<1x16xf32>
    %67 = arith.addf %65, %66 : vector<1x16xf32>
    %68 = vector.extract_strided_slice %44 {offsets = [0, 192], sizes = [1, 16], strides = [1, 1]} : vector<1x224xf32> to vector<1x16xf32>
    %69 = arith.addf %67, %68 : vector<1x16xf32>
    %70 = vector.extract_strided_slice %44 {offsets = [0, 208], sizes = [1, 16], strides = [1, 1]} : vector<1x224xf32> to vector<1x16xf32>
    %71 = arith.addf %69, %70 : vector<1x16xf32>
    %72 = arith.mulf %42, %42 : vector<28x224xf32>
    %cst_64 = arith.constant dense<0.000000e+00> : vector<224xf32>
    %73 = vector.multi_reduction <add>, %72, %cst_64 [0] : vector<28x224xf32> to vector<224xf32>
    %74 = vector.shape_cast %73 : vector<224xf32> to vector<1x224xf32>
    %75 = vector.extract_strided_slice %74 {offsets = [0, 0], sizes = [1, 16], strides = [1, 1]} : vector<1x224xf32> to vector<1x16xf32>
    %76 = vector.extract_strided_slice %74 {offsets = [0, 16], sizes = [1, 16], strides = [1, 1]} : vector<1x224xf32> to vector<1x16xf32>
    %77 = arith.addf %75, %76 : vector<1x16xf32>
    %78 = vector.extract_strided_slice %74 {offsets = [0, 32], sizes = [1, 16], strides = [1, 1]} : vector<1x224xf32> to vector<1x16xf32>
    %79 = arith.addf %77, %78 : vector<1x16xf32>
    %80 = vector.extract_strided_slice %74 {offsets = [0, 48], sizes = [1, 16], strides = [1, 1]} : vector<1x224xf32> to vector<1x16xf32>
    %81 = arith.addf %79, %80 : vector<1x16xf32>
    %82 = vector.extract_strided_slice %74 {offsets = [0, 64], sizes = [1, 16], strides = [1, 1]} : vector<1x224xf32> to vector<1x16xf32>
    %83 = arith.addf %81, %82 : vector<1x16xf32>
    %84 = vector.extract_strided_slice %74 {offsets = [0, 80], sizes = [1, 16], strides = [1, 1]} : vector<1x224xf32> to vector<1x16xf32>
    %85 = arith.addf %83, %84 : vector<1x16xf32>
    %86 = vector.extract_strided_slice %74 {offsets = [0, 96], sizes = [1, 16], strides = [1, 1]} : vector<1x224xf32> to vector<1x16xf32>
    %87 = arith.addf %85, %86 : vector<1x16xf32>
    %88 = vector.extract_strided_slice %74 {offsets = [0, 112], sizes = [1, 16], strides = [1, 1]} : vector<1x224xf32> to vector<1x16xf32>
    %89 = arith.addf %87, %88 : vector<1x16xf32>
    %90 = vector.extract_strided_slice %74 {offsets = [0, 128], sizes = [1, 16], strides = [1, 1]} : vector<1x224xf32> to vector<1x16xf32>
    %91 = arith.addf %89, %90 : vector<1x16xf32>
    %92 = vector.extract_strided_slice %74 {offsets = [0, 144], sizes = [1, 16], strides = [1, 1]} : vector<1x224xf32> to vector<1x16xf32>
    %93 = arith.addf %91, %92 : vector<1x16xf32>
    %94 = vector.extract_strided_slice %74 {offsets = [0, 160], sizes = [1, 16], strides = [1, 1]} : vector<1x224xf32> to vector<1x16xf32>
    %95 = arith.addf %93, %94 : vector<1x16xf32>
    %96 = vector.extract_strided_slice %74 {offsets = [0, 176], sizes = [1, 16], strides = [1, 1]} : vector<1x224xf32> to vector<1x16xf32>
    %97 = arith.addf %95, %96 : vector<1x16xf32>
    %98 = vector.extract_strided_slice %74 {offsets = [0, 192], sizes = [1, 16], strides = [1, 1]} : vector<1x224xf32> to vector<1x16xf32>
    %99 = arith.addf %97, %98 : vector<1x16xf32>
    %100 = vector.extract_strided_slice %74 {offsets = [0, 208], sizes = [1, 16], strides = [1, 1]} : vector<1x224xf32> to vector<1x16xf32>
    %101 = arith.addf %99, %100 : vector<1x16xf32>
    %cst_65 = arith.constant 3.920000e+02 : f32
    %102 = vector.broadcast %cst_65 : f32 to vector<1x16xf32>
    %103 = arith.divf %71, %102 : vector<1x16xf32>
    %cst_66 = arith.constant 3.920000e+02 : f32
    %104 = vector.broadcast %cst_66 : f32 to vector<1x16xf32>
    %105 = arith.divf %101, %104 : vector<1x16xf32>
    %106 = arith.mulf %103, %103 : vector<1x16xf32>
    %107 = arith.subf %105, %106 : vector<1x16xf32>
    %c32_67 = arith.constant 32 : index
    %c0_68 = arith.constant 0 : index
    %108 = vector.load %arg3[%c32_67, %c0_68] : memref<40x128xf32, #tpu.memory_space<vmem>>, vector<1x16xf32>
    %c32_69 = arith.constant 32 : index
    %c16_70 = arith.constant 16 : index
    %109 = vector.load %arg3[%c32_69, %c16_70] : memref<40x128xf32, #tpu.memory_space<vmem>>, vector<1x16xf32>
    %cst_71 = arith.constant 9.99999974E-6 : f32
    %110 = vector.broadcast %cst_71 : f32 to vector<1x16xf32>
    %111 = arith.addf %107, %110 : vector<1x16xf32>
    %112 = math.rsqrt %111 : vector<1x16xf32>
    %113 = arith.mulf %108, %112 : vector<1x16xf32>
    %114 = arith.mulf %103, %113 : vector<1x16xf32>
    %115 = arith.subf %109, %114 : vector<1x16xf32>
    %116 = tpu.concatenate %113, %113, %113, %113, %113, %113, %113, %113, %113, %113, %113, %113, %113, %113 in 1 : vector<1x16xf32>, vector<1x16xf32>, vector<1x16xf32>, vector<1x16xf32>, vector<1x16xf32>, vector<1x16xf32>, vector<1x16xf32>, vector<1x16xf32>, vector<1x16xf32>, vector<1x16xf32>, vector<1x16xf32>, vector<1x16xf32>, vector<1x16xf32>, vector<1x16xf32> -> vector<1x224xf32>
    %117 = vector.broadcast %116 : vector<1x224xf32> to vector<28x224xf32>
    %118 = arith.mulf %42, %117 : vector<28x224xf32>
    %119 = tpu.concatenate %115, %115, %115, %115, %115, %115, %115, %115, %115, %115, %115, %115, %115, %115 in 1 : vector<1x16xf32>, vector<1x16xf32>, vector<1x16xf32>, vector<1x16xf32>, vector<1x16xf32>, vector<1x16xf32>, vector<1x16xf32>, vector<1x16xf32>, vector<1x16xf32>, vector<1x16xf32>, vector<1x16xf32>, vector<1x16xf32>, vector<1x16xf32>, vector<1x16xf32> -> vector<1x224xf32>
    %120 = vector.broadcast %119 : vector<1x224xf32> to vector<28x224xf32>
    %121 = arith.addf %118, %120 : vector<28x224xf32>
    %cst_72 = arith.constant 0.000000e+00 : f32
    %122 = vector.broadcast %cst_72 : f32 to vector<28x224xf32>
    %123 = arith.maximumf %121, %122 : vector<28x224xf32>
    %124 = vector.extract_strided_slice %123 {offsets = [0, 0], sizes = [5, 224], strides = [1, 1]} : vector<28x224xf32> to vector<5x224xf32>
    %c0_73 = arith.constant 0 : index
    %c0_74 = arith.constant 0 : index
    %125 = vector.load %arg6[%c0_73, %c0_74] : memref<10x1120xf32, #tpu.memory_space<vmem>>, vector<5x224xf32>
    tpu.vector_store %arg6[%c0_73, %c0_74], %124 {strides = array<i32>} : memref<10x1120xf32, #tpu.memory_space<vmem>>, vector<5x224xf32>,
    %126 = vector.extract_strided_slice %123 {offsets = [7, 0], sizes = [5, 224], strides = [1, 1]} : vector<28x224xf32> to vector<5x224xf32>
    %c0_75 = arith.constant 0 : index
    %c224 = arith.constant 224 : index
    %127 = vector.load %arg6[%c0_75, %c224] : memref<10x1120xf32, #tpu.memory_space<vmem>>, vector<5x224xf32>
    tpu.vector_store %arg6[%c0_75, %c224], %126 {strides = array<i32>} : memref<10x1120xf32, #tpu.memory_space<vmem>>, vector<5x224xf32>,
    %128 = vector.extract_strided_slice %123 {offsets = [1, 0], sizes = [5, 224], strides = [1, 1]} : vector<28x224xf32> to vector<5x224xf32>
    %c0_76 = arith.constant 0 : index
    %c448 = arith.constant 448 : index
    %129 = vector.load %arg6[%c0_76, %c448] : memref<10x1120xf32, #tpu.memory_space<vmem>>, vector<5x224xf32>
    tpu.vector_store %arg6[%c0_76, %c448], %128 {strides = array<i32>} : memref<10x1120xf32, #tpu.memory_space<vmem>>, vector<5x224xf32>,
    %130 = vector.extract_strided_slice %123 {offsets = [8, 0], sizes = [5, 224], strides = [1, 1]} : vector<28x224xf32> to vector<5x224xf32>
    %c0_77 = arith.constant 0 : index
    %c672 = arith.constant 672 : index
    %131 = vector.load %arg6[%c0_77, %c672] : memref<10x1120xf32, #tpu.memory_space<vmem>>, vector<5x224xf32>
    tpu.vector_store %arg6[%c0_77, %c672], %130 {strides = array<i32>} : memref<10x1120xf32, #tpu.memory_space<vmem>>, vector<5x224xf32>,
    %132 = vector.extract_strided_slice %123 {offsets = [2, 0], sizes = [5, 224], strides = [1, 1]} : vector<28x224xf32> to vector<5x224xf32>
    %c0_78 = arith.constant 0 : index
    %c896 = arith.constant 896 : index
    %133 = vector.load %arg6[%c0_78, %c896] : memref<10x1120xf32, #tpu.memory_space<vmem>>, vector<5x224xf32>
    tpu.vector_store %arg6[%c0_78, %c896], %132 {strides = array<i32>} : memref<10x1120xf32, #tpu.memory_space<vmem>>, vector<5x224xf32>,
    %134 = vector.extract_strided_slice %123 {offsets = [14, 0], sizes = [5, 224], strides = [1, 1]} : vector<28x224xf32> to vector<5x224xf32>
    %c5 = arith.constant 5 : index
    %c0_79 = arith.constant 0 : index
    %135 = vector.load %arg6[%c5, %c0_79] : memref<10x1120xf32, #tpu.memory_space<vmem>>, vector<5x224xf32>
    tpu.vector_store %arg6[%c5, %c0_79], %134 {strides = array<i32>} : memref<10x1120xf32, #tpu.memory_space<vmem>>, vector<5x224xf32>,
    %136 = vector.extract_strided_slice %123 {offsets = [21, 0], sizes = [5, 224], strides = [1, 1]} : vector<28x224xf32> to vector<5x224xf32>
    %c5_80 = arith.constant 5 : index
    %c224_81 = arith.constant 224 : index
    %137 = vector.load %arg6[%c5_80, %c224_81] : memref<10x1120xf32, #tpu.memory_space<vmem>>, vector<5x224xf32>
    tpu.vector_store %arg6[%c5_80, %c224_81], %136 {strides = array<i32>} : memref<10x1120xf32, #tpu.memory_space<vmem>>, vector<5x224xf32>,
    %138 = vector.extract_strided_slice %123 {offsets = [15, 0], sizes = [5, 224], strides = [1, 1]} : vector<28x224xf32> to vector<5x224xf32>
    %c5_82 = arith.constant 5 : index
    %c448_83 = arith.constant 448 : index
    %139 = vector.load %arg6[%c5_82, %c448_83] : memref<10x1120xf32, #tpu.memory_space<vmem>>, vector<5x224xf32>
    tpu.vector_store %arg6[%c5_82, %c448_83], %138 {strides = array<i32>} : memref<10x1120xf32, #tpu.memory_space<vmem>>, vector<5x224xf32>,
    %140 = vector.extract_strided_slice %123 {offsets = [22, 0], sizes = [5, 224], strides = [1, 1]} : vector<28x224xf32> to vector<5x224xf32>
    %c5_84 = arith.constant 5 : index
    %c672_85 = arith.constant 672 : index
    %141 = vector.load %arg6[%c5_84, %c672_85] : memref<10x1120xf32, #tpu.memory_space<vmem>>, vector<5x224xf32>
    tpu.vector_store %arg6[%c5_84, %c672_85], %140 {strides = array<i32>} : memref<10x1120xf32, #tpu.memory_space<vmem>>, vector<5x224xf32>,
    %142 = vector.extract_strided_slice %123 {offsets = [16, 0], sizes = [5, 224], strides = [1, 1]} : vector<28x224xf32> to vector<5x224xf32>
    %c5_86 = arith.constant 5 : index
    %c896_87 = arith.constant 896 : index
    %143 = vector.load %arg6[%c5_86, %c896_87] : memref<10x1120xf32, #tpu.memory_space<vmem>>, vector<5x224xf32>
    tpu.vector_store %arg6[%c5_86, %c896_87], %142 {strides = array<i32>} : memref<10x1120xf32, #tpu.memory_space<vmem>>, vector<5x224xf32>,
    %c0_88 = arith.constant 0 : index
    %c0_89 = arith.constant 0 : index
    %144 = vector.load %arg6[%c0_88, %c0_89] : memref<10x1120xf32, #tpu.memory_space<vmem>>, vector<10x1120xf32>
    %c0_90 = arith.constant 0 : index
    %c0_91 = arith.constant 0 : index
    %145 = vector.load %arg2[%c0_90, %c0_91] : memref<1120x160xf32, #tpu.memory_space<vmem>>, vector<1120x160xf32>
    %cst_92 = arith.constant dense<0.000000e+00> : vector<10x160xf32>
    %146 = tpu.matmul %144, %145, %cst_92 {dimension_numbers = #tpu.dot_dimension_numbers<[1], [0], [0], [1], [0, 0, 1, 1], [], []>} : vector<10x1120xf32>, vector<1120x160xf32>, vector<10x160xf32> -> vector<10x160xf32>
    %cst_93 = arith.constant dense<0.000000e+00> : vector<160xf32>
    %147 = vector.multi_reduction <add>, %146, %cst_93 [0] : vector<10x160xf32> to vector<160xf32>
    %148 = vector.shape_cast %147 : vector<160xf32> to vector<1x160xf32>
    %149 = vector.extract_strided_slice %148 {offsets = [0, 0], sizes = [1, 32], strides = [1, 1]} : vector<1x160xf32> to vector<1x32xf32>
    %150 = vector.extract_strided_slice %148 {offsets = [0, 32], sizes = [1, 32], strides = [1, 1]} : vector<1x160xf32> to vector<1x32xf32>
    %151 = arith.addf %149, %150 : vector<1x32xf32>
    %152 = vector.extract_strided_slice %148 {offsets = [0, 64], sizes = [1, 32], strides = [1, 1]} : vector<1x160xf32> to vector<1x32xf32>
    %153 = arith.addf %151, %152 : vector<1x32xf32>
    %154 = vector.extract_strided_slice %148 {offsets = [0, 96], sizes = [1, 32], strides = [1, 1]} : vector<1x160xf32> to vector<1x32xf32>
    %155 = arith.addf %153, %154 : vector<1x32xf32>
    %156 = vector.extract_strided_slice %148 {offsets = [0, 128], sizes = [1, 32], strides = [1, 1]} : vector<1x160xf32> to vector<1x32xf32>
    %157 = arith.addf %155, %156 : vector<1x32xf32>
    %158 = arith.mulf %146, %146 : vector<10x160xf32>
    %cst_94 = arith.constant dense<0.000000e+00> : vector<160xf32>
    %159 = vector.multi_reduction <add>, %158, %cst_94 [0] : vector<10x160xf32> to vector<160xf32>
    %160 = vector.shape_cast %159 : vector<160xf32> to vector<1x160xf32>
    %161 = vector.extract_strided_slice %160 {offsets = [0, 0], sizes = [1, 32], strides = [1, 1]} : vector<1x160xf32> to vector<1x32xf32>
    %162 = vector.extract_strided_slice %160 {offsets = [0, 32], sizes = [1, 32], strides = [1, 1]} : vector<1x160xf32> to vector<1x32xf32>
    %163 = arith.addf %161, %162 : vector<1x32xf32>
    %164 = vector.extract_strided_slice %160 {offsets = [0, 64], sizes = [1, 32], strides = [1, 1]} : vector<1x160xf32> to vector<1x32xf32>
    %165 = arith.addf %163, %164 : vector<1x32xf32>
    %166 = vector.extract_strided_slice %160 {offsets = [0, 96], sizes = [1, 32], strides = [1, 1]} : vector<1x160xf32> to vector<1x32xf32>
    %167 = arith.addf %165, %166 : vector<1x32xf32>
    %168 = vector.extract_strided_slice %160 {offsets = [0, 128], sizes = [1, 32], strides = [1, 1]} : vector<1x160xf32> to vector<1x32xf32>
    %169 = arith.addf %167, %168 : vector<1x32xf32>
    %cst_95 = arith.constant 5.000000e+01 : f32
    %170 = vector.broadcast %cst_95 : f32 to vector<1x32xf32>
    %171 = arith.divf %157, %170 : vector<1x32xf32>
    %cst_96 = arith.constant 5.000000e+01 : f32
    %172 = vector.broadcast %cst_96 : f32 to vector<1x32xf32>
    %173 = arith.divf %169, %172 : vector<1x32xf32>
    %174 = arith.mulf %171, %171 : vector<1x32xf32>
    %175 = arith.subf %173, %174 : vector<1x32xf32>
    %c33_97 = arith.constant 33 : index
    %c0_98 = arith.constant 0 : index
    %176 = vector.load %arg3[%c33_97, %c0_98] : memref<40x128xf32, #tpu.memory_space<vmem>>, vector<1x32xf32>
    %c33_99 = arith.constant 33 : index
    %c32_100 = arith.constant 32 : index
    %177 = vector.load %arg3[%c33_99, %c32_100] : memref<40x128xf32, #tpu.memory_space<vmem>>, vector<1x32xf32>
    %cst_101 = arith.constant 9.99999974E-6 : f32
    %178 = vector.broadcast %cst_101 : f32 to vector<1x32xf32>
    %179 = arith.addf %175, %178 : vector<1x32xf32>
    %180 = math.rsqrt %179 : vector<1x32xf32>
    %181 = arith.mulf %176, %180 : vector<1x32xf32>
    %182 = arith.mulf %171, %181 : vector<1x32xf32>
    %183 = arith.subf %177, %182 : vector<1x32xf32>
    %184 = tpu.concatenate %181, %181, %181, %181, %181 in 1 : vector<1x32xf32>, vector<1x32xf32>, vector<1x32xf32>, vector<1x32xf32>, vector<1x32xf32> -> vector<1x160xf32>
    %185 = vector.broadcast %184 : vector<1x160xf32> to vector<10x160xf32>
    %186 = arith.mulf %146, %185 : vector<10x160xf32>
    %187 = tpu.concatenate %183, %183, %183, %183, %183 in 1 : vector<1x32xf32>, vector<1x32xf32>, vector<1x32xf32>, vector<1x32xf32>, vector<1x32xf32> -> vector<1x160xf32>
    %188 = vector.broadcast %187 : vector<1x160xf32> to vector<10x160xf32>
    %189 = arith.addf %186, %188 : vector<10x160xf32>
    %cst_102 = arith.constant 0.000000e+00 : f32
    %190 = vector.broadcast %cst_102 : f32 to vector<10x160xf32>
    %191 = arith.maximumf %189, %190 : vector<10x160xf32>
    %192 = vector.extract_strided_slice %191 {offsets = [0, 0], sizes = [10, 32], strides = [1, 1]} : vector<10x160xf32> to vector<10x32xf32>
    %193 = vector.extract_strided_slice %191 {offsets = [0, 32], sizes = [10, 32], strides = [1, 1]} : vector<10x160xf32> to vector<10x32xf32>
    %194 = arith.maximumf %192, %193 : vector<10x32xf32>
    %195 = vector.extract_strided_slice %191 {offsets = [0, 64], sizes = [10, 32], strides = [1, 1]} : vector<10x160xf32> to vector<10x32xf32>
    %196 = arith.maximumf %194, %195 : vector<10x32xf32>
    %197 = vector.extract_strided_slice %196 {offsets = [0, 0], sizes = [1, 32], strides = [1, 1]} : vector<10x32xf32> to vector<1x32xf32>
    %198 = vector.extract_strided_slice %196 {offsets = [1, 0], sizes = [1, 32], strides = [1, 1]} : vector<10x32xf32> to vector<1x32xf32>
    %199 = arith.maximumf %197, %198 : vector<1x32xf32>
    %200 = vector.extract_strided_slice %196 {offsets = [2, 0], sizes = [1, 32], strides = [1, 1]} : vector<10x32xf32> to vector<1x32xf32>
    %201 = arith.maximumf %199, %200 : vector<1x32xf32>
    %202 = vector.extract_strided_slice %196 {offsets = [5, 0], sizes = [1, 32], strides = [1, 1]} : vector<10x32xf32> to vector<1x32xf32>
    %203 = vector.extract_strided_slice %196 {offsets = [6, 0], sizes = [1, 32], strides = [1, 1]} : vector<10x32xf32> to vector<1x32xf32>
    %204 = arith.maximumf %202, %203 : vector<1x32xf32>
    %205 = vector.extract_strided_slice %196 {offsets = [7, 0], sizes = [1, 32], strides = [1, 1]} : vector<10x32xf32> to vector<1x32xf32>
    %206 = arith.maximumf %204, %205 : vector<1x32xf32>
    %207 = tpu.concatenate %201, %206 in 0 : vector<1x32xf32>, vector<1x32xf32> -> vector<2x32xf32>
    %c0_103 = arith.constant 0 : index
    %c0_104 = arith.constant 0 : index
    %208 = vector.load %arg3[%c0_103, %c0_104] : memref<40x128xf32, #tpu.memory_space<vmem>>, vector<32x4xf32>
    %c34 = arith.constant 34 : index
    %c0_105 = arith.constant 0 : index
    %209 = vector.load %arg3[%c34, %c0_105] : memref<40x128xf32, #tpu.memory_space<vmem>>, vector<1x4xf32>
    %cst_106 = arith.constant dense<0.000000e+00> : vector<2x4xf32>
    %210 = tpu.matmul %207, %208, %cst_106 {dimension_numbers = #tpu.dot_dimension_numbers<[1], [0], [0], [1], [0, 0, 1, 1], [], []>} : vector<2x32xf32>, vector<32x4xf32>, vector<2x4xf32> -> vector<2x4xf32>
    %211 = vector.broadcast %209 : vector<1x4xf32> to vector<2x4xf32>
    %212 = arith.addf %210, %211 : vector<2x4xf32>
    %c0_107 = arith.constant 0 : index
    %c0_108 = arith.constant 0 : index
    %213 = vector.load %arg4[%c0_107, %c0_108] : memref<2x4xf32, #tpu.memory_space<vmem>>, vector<2x4xf32>
    tpu.vector_store %arg4[%c0_107, %c0_108], %212 {strides = array<i32>} : memref<2x4xf32, #tpu.memory_space<vmem>>, vector<2x4xf32>,
    return
  }
}

</mosaic_0001>

<bundles_post_ra>
// kernel: dqn_deep_forward.1
= control target key start
LH: loop header
LB: loop body
LE: loop exit
PB: predicated region body
PF: predicated region fallthrough
CT: control target
= control target key end

     0   :  { %s1951_s19 = smov 64   ;;  %s1952_s20 = smov 96   ;;  %vm19_vm0 = vcmask 784384   ;;  %vm25_vm1 = vcmask 785415   ;;  %vm27_vm2 = vcmask 783360   ;;  %vm104_vm3 = vcmask 785414   ;;  %s3611_s0 = inlined_call_operand.vmem [shape: f32[64,96], index: 0, kind: input, shape index: {}]   ;;  %s3612_s1 = inlined_call_operand.vmem [shape: f32[480,224], index: 1, kind: input, shape index: {}]   ;;  %s3613_s2 = inlined_call_operand.vmem [shape: f32[1120,160], index: 2, kind: input, shape index: {}]   ;;  %s3614_s3 = inlined_call_operand.vmem [shape: f32[40,128], index: 3, kind: input, shape index: {}]   ;;  %s3615_s4 = inlined_call_operand.hbm [shape: f32[2,4], index: 4, kind: output, shape index: {}]  }
   0x1   :  { %v52_v0 = vld [vmem:[%s3611_s0 + $0x10] sm:$0x7f]  ;;  %v29_v1 = vld [vmem:[%s3611_s0 + $0x8] sm:$0x7f]  ;;  %v61_v2 = vld [vmem:[%s3611_s0 + $0x1] sm:$0x7f] }
   0x2   :  { %54 = vrot.lane.b32.xlu1 %v52_v0, %s1951_s19  ;;  %31 = vrot.lane.b32.xlu0 %v29_v1, %s1952_s20  ;;  %v38_v3 = vld [vmem:[%s3611_s0 + $0x18] sm:$0x7f]  ;;  %v63_v4 = vrot.slane %v61_v2, 1  ;;  %v82_v6 = vld [vmem:[%s3611_s0 + $0x9] sm:$0x7f]  ;;  %s1953_s17 = smov 32  }
   0x3   :  { %v40_v5 = vrot.slane %v38_v3, 1  ;;  %v251_v7 = vld [vmem:[%s3612_s1 + $0xf8] sm:$0xff]  ;;  %v84_v8 = vrot.slane %v82_v6, 1  ;;  %v144_v10 = vld [vmem:[%s3611_s0 + $0x30] sm:$0x7f]  ;;  %v249_v13 = vld [vmem:[%s3612_s1 + $0xe8] sm:$0xff] }
   0x4   :  { %353 = vmatprep.subr.mxu0 %v251_v7  ;;  %v75_v9 = vld [vmem:[%s3611_s0 + $0x18] sm:$0x7f]  ;;  %v116_v11 = vld [vmem:[%s3611_s0 + $0x28] sm:$0x7f]  ;;  %v250_v12 = vld [vmem:[%s3612_s1 + $0xf0] sm:$0xff]  ;;  %v146_v16 = vrot.slane %v144_v10, 2 }
   0x5   :  { %354 = vmatpush1.msra.mxu0 %v250_v12  ;;  %v248_v14 = vld [vmem:[%s3612_s1 + $0xe0] sm:$0xff]  ;;  %v247_v15 = vld [vmem:[%s3612_s1 + $0xd8] sm:$0xff]  ;;  %v118_v17 = vrot.slane %v116_v11, 2  ;;  %v246_v18 = vld [vmem:[%s3612_s1 + $0xd0] sm:$0xff]  ;;  %vm3617_vm4 = vcmask 782336   ;;  %vm3616_vm5 = vcmask 785413  }
   0x6   :  { %64 = vrot.lane.b32.xlu1 %v63_v4, %s1951_s19  ;;  %41 = vrot.lane.b32.xlu0 %v40_v5, %s1952_s20  ;;  %v315_v19 = vld [vmem:[%s3612_s1 + $0x2f8] sm:$0xff]  ;;  %v314_v22 = vld [vmem:[%s3612_s1 + $0x2f0] sm:$0xff]  ;;  %vm3618_vm6 = vcmask 781312  }
   0x7   :  { %355 = vmatprep.subr.mxu0 %v249_v13  ;;  %v130_v20 = vld [vmem:[%s3611_s0 + $0x38] sm:$0x7f]  ;;  %442 = vmatprep.subr.mxu1 %v315_v19  ;;  %v245_v23 = vld [vmem:[%s3612_s1 + $0xc8] sm:$0xff]  ;;  %v312_v25 = vld [vmem:[%s3612_s1 + $0x2e0] sm:$0xff] }
   0x8   :  { %v172_v21 = vld [vmem:[%s3611_s0 + $0x38] sm:$0x7f]  ;;  %356 = vmatpush1.msra.mxu0 %v248_v14  ;;  %443 = vmatpush1.msra.mxu1 %v314_v22  ;;  %v313_v24 = vld [vmem:[%s3612_s1 + $0x2e8] sm:$0xff]  ;;  %v244_v26 = vld [vmem:[%s3612_s1 + $0xc0] sm:$0xff]  ;;  %v132_v28 = vrot.slane %v130_v20, 3 }
   0x9   :  { %357 = vmatprep.subr.mxu0 %v247_v15  ;;  %444 = vmatprep.subr.mxu1 %v313_v24  ;;  %v311_v27 = vld [vmem:[%s3612_s1 + $0x2d8] sm:$0xff]  ;;  %v174_v29 = vrot.slane %v172_v21, 2  ;;  %v310_v31 = vld [vmem:[%s3612_s1 + $0x2d0] sm:$0xff]  ;;  %v158_v32 = vld [vmem:[%s3611_s0 + $0x21] sm:$0x7f] }
   0xa   :  { %85 = vrot.lane.b32.xlu1 %v84_v8, %s1953_s17  ;;  %77 = vrot.lane.b32.xlu0 %v75_v9, %s1953_s17  ;;  %v243_v30 = vld [vmem:[%s3612_s1 + $0xb8] sm:$0xff]  ;;  %v182_v33 = vld [vmem:[%s3611_s0 + $0x29] sm:$0x7f]  ;;  %v160_v38 = vrot.slane %v158_v32, 3 }
   0xb   :  { %358 = vmatpush1.msra.mxu0 %v246_v18  ;;  %445 = vmatpush1.msra.mxu1 %v312_v25  ;;  %v242_v34 = vld [vmem:[%s3612_s1 + $0xb0] sm:$0xff]  ;;  %v309_v35 = vld [vmem:[%s3612_s1 + $0x2c8] sm:$0xff]  ;;  %v308_v37 = vld [vmem:[%s3612_s1 + $0x2c0] sm:$0xff]  ;;  %v184_v39 = vrot.slane %v182_v33, 3 }
   0xc   :  { %359 = vmatprep.subr.mxu0 %v245_v23  ;;  %446 = vmatprep.subr.mxu1 %v311_v27  ;;  %v241_v36 = vld [vmem:[%s3612_s1 + $0xa8] sm:$0xff]  ;;  %v240_v40 = vld [vmem:[%s3612_s1 + $0xa0] sm:$0xff]  ;;  %v307_v41 = vld [vmem:[%s3612_s1 + $0x2b8] sm:$0xff] }
   0xd   :  { %360 = vmatpush1.msra.mxu0 %v244_v26  ;;  %447 = vmatpush1.msra.mxu1 %v310_v31  ;;  %v239_v42 = vld [vmem:[%s3612_s1 + $0x98] sm:$0xff]  ;;  %v306_v43 = vld [vmem:[%s3612_s1 + $0x2b0] sm:$0xff]  ;;  %v305_v45 = vld [vmem:[%s3612_s1 + $0x2a8] sm:$0xff] }
   0xe   :  { %147 = vrot.lane.b32.xlu1 %v146_v16, %s1951_s19  ;;  %119 = vrot.lane.b32.xlu0 %v118_v17, %s1952_s20  ;;  %v238_v44 = vld [vmem:[%s3612_s1 + $0x90] sm:$0xff]  ;;  %v237_v46 = vld [vmem:[%s3612_s1 + $0x88] sm:$0xff] }
   0xf   :  { %361 = vmatprep.subr.mxu0 %v243_v30  ;;  %448 = vmatprep.subr.mxu1 %v309_v35  ;;  %v304_v47 = vld [vmem:[%s3612_s1 + $0x2a0] sm:$0xff]  ;;  %v303_v49 = vld [vmem:[%s3612_s1 + $0x298] sm:$0xff]  ;;  %v302_v51 = vld [vmem:[%s3612_s1 + $0x290] sm:$0xff] }
  0x10   :  { %362 = vmatpush1.msra.mxu0 %v242_v34  ;;  %449 = vmatpush1.msra.mxu1 %v308_v37  ;;  %v236_v48 = vld [vmem:[%s3612_s1 + $0x80] sm:$0xff]  ;;  %v235_v50 = vld [vmem:[%s3612_s1 + $0x78] sm:$0xff]  ;;  %v234_v52 = vld [vmem:[%s3612_s1 + $0x70] sm:$0xff] }
  0x11   :  { %363 = vmatprep.subr.mxu0 %v241_v36  ;;  %450 = vmatprep.subr.mxu1 %v307_v41  ;;  %v301_v53 = vld [vmem:[%s3612_s1 + $0x288] sm:$0xff]  ;;  %v300_v55 = vld [vmem:[%s3612_s1 + $0x280] sm:$0xff]  ;;  %v299_v57 = vld [vmem:[%s3612_s1 + $0x278] sm:$0xff] }
  0x12   :  { %133 = vrot.lane.b32.xlu1 %v132_v28, %s1952_s20  ;;  %175 = vrot.lane.b32.xlu0 %v174_v29, %s1953_s17  ;;  %v233_v54 = vld [vmem:[%s3612_s1 + $0x68] sm:$0xff]  ;;  %v232_v56 = vld [vmem:[%s3612_s1 + $0x60] sm:$0xff] }
  0x13   :  { %364 = vmatpush1.msra.mxu0 %v240_v40  ;;  %451 = vmatpush1.msra.mxu1 %v306_v43  ;;  %v231_v58 = vld [vmem:[%s3612_s1 + $0x58] sm:$0xff]  ;;  %v298_v59 = vld [vmem:[%s3612_s1 + $0x270] sm:$0xff]  ;;  %v297_v61 = vld [vmem:[%s3612_s1 + $0x268] sm:$0xff] }
  0x14   :  { %365 = vmatprep.subr.mxu0 %v239_v42  ;;  %452 = vmatprep.subr.mxu1 %v305_v45  ;;  %v230_v60 = vld [vmem:[%s3612_s1 + $0x50] sm:$0xff]  ;;  %v229_v62 = vld [vmem:[%s3612_s1 + $0x48] sm:$0xff]  ;;  %v296_v63 = vld [vmem:[%s3612_s1 + $0x260] sm:$0xff] }
  0x15   :  { %366 = vmatpush1.msra.mxu0 %v238_v44  ;;  %453 = vmatpush1.msra.mxu1 %v304_v47  ;;  %v228_v0 = vld [vmem:[%s3612_s1 + $0x40] sm:$0xff]  ;;  %v295_v1 = vld [vmem:[%s3612_s1 + $0x258] sm:$0xff]  ;;  %v294_v3 = vld [vmem:[%s3612_s1 + $0x250] sm:$0xff] }
  0x16   :  { %161 = vrot.lane.b32.xlu0 %v160_v38, %s1951_s19  ;;  %185 = vrot.lane.b32.xlu1 %v184_v39, %s1953_s17  ;;  %v227_v2 = vld [vmem:[%s3612_s1 + $0x38] sm:$0xff]  ;;  %v226_v4 = vld [vmem:[%s3612_s1 + $0x30] sm:$0xff] }
  0x17   :  { %367 = vmatprep.subr.mxu0 %v237_v46  ;;  %454 = vmatprep.subr.mxu1 %v303_v49  ;;  %v293_v5 = vld [vmem:[%s3612_s1 + $0x248] sm:$0xff]  ;;  %v292_v7 = vld [vmem:[%s3612_s1 + $0x240] sm:$0xff]  ;;  %v291_v9 = vld [vmem:[%s3612_s1 + $0x238] sm:$0xff] }
  0x18   :  { %368 = vmatpush1.msra.mxu0 %v236_v48  ;;  %455 = vmatpush1.msra.mxu1 %v302_v51  ;;  %v225_v6 = vld [vmem:[%s3612_s1 + $0x28] sm:$0xff]  ;;  %v224_v8 = vld [vmem:[%s3612_s1 + $0x20] sm:$0xff]  ;;  %v223_v10 = vld [vmem:[%s3612_s1 + $0x18] sm:$0xff] }
  0x19   :  { %369 = vmatprep.subr.mxu0 %v235_v50  ;;  %456 = vmatprep.subr.mxu1 %v301_v53  ;;  %v290_v11 = vld [vmem:[%s3612_s1 + $0x230] sm:$0xff]  ;;  %v221_v13 = vld [vmem:[%s3612_s1 + $0x8] sm:$0xff]  ;;  %v288_v15 = vld [vmem:[%s3612_s1 + $0x220] sm:$0xff] }
  0x1a   :  { %370 = vmatpush1.msra.mxu0 %v234_v52  ;;  %457 = vmatpush1.msra.mxu1 %v300_v55  ;;  %v222_v12 = vld [vmem:[%s3612_s1 + $0x10] sm:$0xff]  ;;  %v289_v14 = vld [vmem:[%s3612_s1 + $0x228] sm:$0xff]  ;;  %v92_v16 = vld [vmem:[%s3611_s0 + $0x1] sm:$0x7f] }
  0x1b   :  { %371 = vmatprep.subr.mxu0 %v233_v54  ;;  %458 = vmatprep.subr.mxu1 %v299_v57  ;;  %v18_v17 = vld [vmem:[%s3611_s0] sm:$0x7f]  ;;  %v287_v19 = vld [vmem:[%s3612_s1 + $0x218] sm:$0xff]  ;;  %93 = vst.msk [vmem:[#allocation2 + $0x18] sm:$0x7f] %vm19_vm0, %v92_v16  ;;  %v282_v21 = vld [vmem:[%s3612_s1 + $0x1f0] sm:$0xff] }
  0x1c   :  { %372 = vmatpush1.msra.mxu0 %v232_v56  ;;  %459 = vmatpush1.msra.mxu1 %v298_v59  ;;  %v220_v18 = vld [vmem:[%s3612_s1] sm:$0xff]  ;;  %20 = vst.msk [vmem:[#allocation2] sm:$0x7f] %vm19_vm0, %v18_v17  ;;  %v283_v20 = vld [vmem:[%s3612_s1 + $0x1f8] sm:$0xff]  ;;  %v286_v22 = vld [vmem:[%s3612_s1 + $0x210] sm:$0xff] }
  0x1d   :  { %373 = vmatprep.subr.mxu0 %v231_v58  ;;  %460 = vmatprep.subr.mxu1 %v297_v61  ;;  %v285_v23 = vld [vmem:[%s3612_s1 + $0x208] sm:$0xff]  ;;  %v94_v24 = vld [vmem:[%s3611_s0 + $0x11] sm:$0x7f]  ;;  %v284_v27 = vld [vmem:[%s3612_s1 + $0x200] sm:$0xff] }
  0x1e   :  { %374 = vmatpush1.msra.mxu0 %v230_v60  ;;  %461 = vmatpush1.msra.mxu1 %v296_v63  ;;  %v21_v25 = vld [vmem:[%s3611_s0 + $0x10] sm:$0x7f]  ;;  %v281_v26 = vld [vmem:[%s3612_s1 + $0x1e8] sm:$0xff]  ;;  %v96_v28 = vrot.slane %v94_v24, 1  ;;  %v280_v30 = vld [vmem:[%s3612_s1 + $0x1e0] sm:$0xff] }
  0x1f   :  { %375 = vmatprep.subr.mxu0 %v229_v62  ;;  %462 = vmatprep.subr.mxu1 %v295_v1  ;;  %v23_v29 = vrot.slane %v21_v25, 1  ;;  %v339_v31 = vld [vmem:[%s3612_s1 + $0x3b8] sm:$0xff]  ;;  %v338_v33 = vld [vmem:[%s3612_s1 + $0x3b0] sm:$0xff]  ;;  %v337_v35 = vld [vmem:[%s3612_s1 + $0x3a8] sm:$0xff] }
  0x20   :  { %376 = vmatpush1.msra.mxu0 %v228_v0  ;;  %463 = vmatpush1.msra.mxu1 %v294_v3  ;;  %v279_v32 = vld [vmem:[%s3612_s1 + $0x1d8] sm:$0xff]  ;;  %98 = vst.msk [vmem:[#allocation2 + $0x18] sm:$0x80] %vm25_vm1, %v96_v28  ;;  %v278_v34 = vld [vmem:[%s3612_s1 + $0x1d0] sm:$0xff]  ;;  %v277_v36 = vld [vmem:[%s3612_s1 + $0x1c8] sm:$0xff] }
  0x21   :  { %377 = vmatprep.subr.mxu0 %v227_v2  ;;  %464 = vmatprep.subr.mxu1 %v293_v5  ;;  %26 = vst.msk [vmem:[#allocation2] sm:$0x80] %vm25_vm1, %v23_v29  ;;  %v276_v37 = vld [vmem:[%s3612_s1 + $0x1c0] sm:$0xff]  ;;  %v335_v39 = vld [vmem:[%s3612_s1 + $0x398] sm:$0xff]  ;;  %v274_v43 = vld [vmem:[%s3612_s1 + $0x1b0] sm:$0xff] }
  0x22   :  { %378 = vmatpush1.msra.mxu0 %v226_v4  ;;  %465 = vmatpush1.msra.mxu1 %v292_v7  ;;  %28 = vst.msk [vmem:[#allocation2 + $0x20] sm:$0x3f] %vm27_vm2, %v23_v29  ;;  %99 = vst.msk [vmem:[#allocation2 + $0x38] sm:$0x3f] %vm27_vm2, %v96_v28  ;;  %v336_v38 = vld [vmem:[%s3612_s1 + $0x3a0] sm:$0xff]  ;;  %v275_v42 = vld [vmem:[%s3612_s1 + $0x1b8] sm:$0xff] }
  0x23   :  { %379 = vmatprep.subr.mxu0 %v225_v6  ;;  %466 = vmatprep.subr.mxu1 %v291_v9  ;;  %v100_v40 = vld [vmem:[%s3611_s0 + $0x20] sm:$0x7f]  ;;  %v334_v44 = vld [vmem:[%s3612_s1 + $0x390] sm:$0xff]  ;;  %v273_v47 = vld [vmem:[%s3612_s1 + $0x1a8] sm:$0xff] }
  0x24   :  { %380 = vmatpush1.msra.mxu0 %v224_v8  ;;  %467 = vmatpush1.msra.mxu1 %v290_v11  ;;  %v192_v41 = vld [vmem:[%s3611_s0 + $0x21] sm:$0x7f]  ;;  %v102_v45 = vrot.slane %v100_v40, 2  ;;  %v333_v48 = vld [vmem:[%s3612_s1 + $0x388] sm:$0xff]  ;;  %v108_v50 = vld [vmem:[%s3611_s0 + $0x30] sm:$0x7f] }
  0x25   :  { %381 = vmatprep.subr.mxu0 %v223_v10  ;;  %468 = vmatprep.subr.mxu1 %v289_v14  ;;  %v194_v46 = vrot.slane %v192_v41, 2  ;;  %v332_v49 = vld [vmem:[%s3612_s1 + $0x380] sm:$0xff]  ;;  %v198_v51 = vld [vmem:[%s3611_s0 + $0x31] sm:$0x7f] }
  0x26   :  { %382 = vmatpush1.msra.mxu0 %v222_v12  ;;  %469 = vmatpush1.msra.mxu1 %v288_v15  ;;  %105 = vst.msk [vmem:[#allocation2 + $0x20] sm:$0xc0] %vm104_vm3, %v102_v45 }
  0x27   :  { %383 = vmatprep.subr.mxu0 %v221_v13  ;;  %470 = vmatprep.subr.mxu1 %v287_v19  ;;  %107 = vst.msk [vmem:[#allocation2 + $0x40] sm:$0x1f] %vm3617_vm4, %v102_v45  ;;  %197 = vst.msk [vmem:[#allocation2 + $0x58] sm:$0x1f] %vm3617_vm4, %v194_v46 }
  0x28   :  { %384 = vmatpush1.msra.mxu0 %v220_v18  ;;  %471 = vmatpush1.msra.mxu1 %v286_v22  ;;  %196 = vst.msk [vmem:[#allocation2 + $0x38] sm:$0xc0] %vm104_vm3, %v194_v46 }
  0x29   :  { %385 = vmatprep.subr.mxu0 %v283_v20  ;;  %472 = vmatprep.subr.mxu1 %v285_v23 }
  0x2a   :  { %386 = vmatpush2.msra.mxu0 %v282_v21  ;;  %473 = vmatpush1.msra.mxu1 %v284_v27 }
  0x2b   :  { %387 = vmatprep.subr.mxu0 %v281_v26  ;;  %482 = vmatprep.subr.mxu1 %v339_v31 }
  0x2c   :  { %388 = vmatpush2.msra.mxu0 %v280_v30  ;;  %483 = vmatpush2.msra.mxu1 %v338_v33 }
  0x2d   :  { %389 = vmatprep.subr.mxu0 %v279_v32  ;;  %484 = vmatprep.subr.mxu1 %v337_v35 }
  0x2e   :  { %390 = vmatpush2.msra.mxu0 %v278_v34  ;;  %485 = vmatpush2.msra.mxu1 %v336_v38 }
  0x2f   :  { %391 = vmatprep.subr.mxu0 %v277_v36  ;;  %486 = vmatprep.subr.mxu1 %v335_v39 }
  0x30   :  { %392 = vmatpush2.msra.mxu0 %v276_v37 }
  0x31   :  { %9 = vsyncpa [#allocation5], 0  ;;  %393 = vmatprep.subr.mxu0 %v275_v42  ;;  %v272_v52 = vld [vmem:[%s3612_s1 + $0x1a0] sm:$0xff]  ;;  %487 = vmatpush2.msra.mxu1 %v334_v44  ;;  %v331_v53 = vld [vmem:[%s3612_s1 + $0x378] sm:$0xff]  ;;  %v110_v54 = vrot.slane %v108_v50, 3  ;;  %v200_v55 = vrot.slane %v198_v51, 3 }
  0x32   :  { %394 = vmatpush2.msra.mxu0 %v274_v43  ;;  %v271_v56 = vld [vmem:[%s3612_s1 + $0x198] sm:$0xff]  ;;  %488 = vmatprep.subr.mxu1 %v333_v48  ;;  %v330_v57 = vld [vmem:[%s3612_s1 + $0x370] sm:$0xff]  ;;  %v329_v59 = vld [vmem:[%s3612_s1 + $0x368] sm:$0xff]  ;;  %vm340_vm7 = vcmask 785408   ;;  %vm59_vm8 = vcmask 260096   ;;  %vm34_vm9 = vcmask 1047296  }
  0x33   :  { %395 = vmatprep.subr.mxu0 %v273_v47  ;;  %v270_v58 = vld [vmem:[%s3612_s1 + $0x190] sm:$0xff]  ;;  %489 = vmatpush2.msra.mxu1 %v332_v49  ;;  %113 = vst.msk [vmem:[#allocation2 + $0x40] sm:$0xe0] %vm3616_vm5, %v110_v54  ;;  %202 = vst.msk [vmem:[#allocation2 + $0x58] sm:$0xe0] %vm3616_vm5, %v200_v55  ;;  %v269_v60 = vld [vmem:[%s3612_s1 + $0x188] sm:$0xff] }
  0x34   :  { %115 = vst.msk [vmem:[#allocation2 + $0x60] sm:$0xf] %vm3618_vm6, %v110_v54  ;;  %203 = vst.msk [vmem:[#allocation2 + $0x78] sm:$0xf] %vm3618_vm6, %v200_v55  ;;  %396 = vmatpush2.msra.mxu0 %v272_v52  ;;  %490 = vmatprep.subr.mxu1 %v331_v53  ;;  %v328_v61 = vld [vmem:[%s3612_s1 + $0x360] sm:$0xff]  ;;  %v327_v63 = vld [vmem:[%s3612_s1 + $0x358] sm:$0xff] }
  0x35   :  { %397 = vmatprep.subr.mxu0 %v271_v56  ;;  %v268_v62 = vld [vmem:[%s3612_s1 + $0x180] sm:$0xff]  ;;  %491 = vmatpush2.msra.mxu1 %v330_v57  ;;  %v267_v0 = vld [vmem:[%s3612_s1 + $0x178] sm:$0xff]  ;;  %v326_v1 = vld [vmem:[%s3612_s1 + $0x350] sm:$0xff]  ;;  %vm36_vm10 = vcmask 522240   ;;  %vm57_vm11 = vcmask 1047040   ;;  %vm44_vm12 = vcmask 1048327  }
  0x36   :  { %398 = vmatpush2.msra.mxu0 %v270_v58  ;;  %492 = vmatprep.subr.mxu1 %v329_v59  ;;  %v266_v2 = vld [vmem:[%s3612_s1 + $0x170] sm:$0xff]  ;;  %v325_v3 = vld [vmem:[%s3612_s1 + $0x348] sm:$0xff]  ;;  %v324_v5 = vld [vmem:[%s3612_s1 + $0x340] sm:$0xff]  ;;  %vm46_vm13 = vcmask 523271   ;;  %vm48_vm14 = vcmask 1046272   ;;  %vm50_vm15 = vcmask 521216  }
  0x37   :  { %399 = vmatprep.subr.mxu0 %v269_v60  ;;  %493 = vmatpush2.msra.mxu1 %v328_v61  ;;  %v265_v4 = vld [vmem:[%s3612_s1 + $0x168] sm:$0xff]  ;;  %v264_v6 = vld [vmem:[%s3612_s1 + $0x160] sm:$0xff]  ;;  %v323_v7 = vld [vmem:[%s3612_s1 + $0x338] sm:$0xff]  ;;  %vm69_vm0 = vcmask 261127   ;;  %vm73_vm1 = vcmask 259072   ;;  %vm67_vm2 = vcmask 1048071  }
  0x38   :  { %400 = vmatpush2.msra.mxu0 %v268_v62  ;;  %494 = vmatprep.subr.mxu1 %v327_v63  ;;  %v263_v8 = vld [vmem:[%s3612_s1 + $0x158] sm:$0xff]  ;;  %v322_v9 = vld [vmem:[%s3612_s1 + $0x330] sm:$0xff]  ;;  %v321_v11 = vld [vmem:[%s3612_s1 + $0x328] sm:$0xff]  ;;  %vm71_vm3 = vcmask 1046016   ;;  %vm124_vm5 = vcmask 523270   ;;  %vm126_vm4 = vcmask 1045248  }
  0x39   :  { %401 = vmatprep.subr.mxu0 %v267_v0  ;;  %495 = vmatpush2.msra.mxu1 %v326_v1  ;;  %v262_v10 = vld [vmem:[%s3612_s1 + $0x150] sm:$0xff]  ;;  %v261_v12 = vld [vmem:[%s3612_s1 + $0x148] sm:$0xff]  ;;  %v320_v13 = vld [vmem:[%s3612_s1 + $0x320] sm:$0xff]  ;;  %vm128_vm6 = vcmask 520192   ;;  %s1955_s15 = smov 80   ;;  %s1956_s16 = smov 48  }
  0x3a   :  { %402 = vmatpush2.msra.mxu0 %v266_v2  ;;  %496 = vmatprep.subr.mxu1 %v325_v3  ;;  %v260_v14 = vld [vmem:[%s3612_s1 + $0x140] sm:$0xff]  ;;  %v319_v15 = vld [vmem:[%s3612_s1 + $0x318] sm:$0xff]  ;;  %v318_v17 = vld [vmem:[%s3612_s1 + $0x310] sm:$0xff]  ;;  %s1957_s18 = smov 16   ;;  %s1960_s14 = smov [#allocation4]  }
  0x3b   :  { %403 = vmatprep.subr.mxu0 %v265_v4  ;;  %497 = vmatpush2.msra.mxu1 %v324_v5  ;;  %v259_v16 = vld [vmem:[%s3612_s1 + $0x138] sm:$0xff]  ;;  %v258_v18 = vld [vmem:[%s3612_s1 + $0x130] sm:$0xff]  ;;  %v317_v19 = vld [vmem:[%s3612_s1 + $0x308] sm:$0xff] }
  0x3c   :  { %404 = vmatpush2.msra.mxu0 %v264_v6  ;;  %498 = vmatprep.subr.mxu1 %v323_v7  ;;  %v257_v20 = vld [vmem:[%s3612_s1 + $0x128] sm:$0xff]  ;;  %v316_v21 = vld [vmem:[%s3612_s1 + $0x300] sm:$0xff]  ;;  %v207_v23 = vld [vmem:[#allocation2 + $0x18] sm:$0xff] }
  0x3d   :  { %405 = vmatprep.subr.mxu0 %v263_v8  ;;  %499 = vmatpush2.msra.mxu1 %v322_v9  ;;  %v256_v22 = vld [vmem:[%s3612_s1 + $0x120] sm:$0xff]  ;;  %v255_v24 = vld [vmem:[%s3612_s1 + $0x118] sm:$0xff]  ;;  %v254_v25 = vld [vmem:[%s3612_s1 + $0x110] sm:$0xff] }
  0x3e   :  { %406 = vmatpush2.msra.mxu0 %v262_v10  ;;  %500 = vmatprep.subr.mxu1 %v321_v11  ;;  %v253_v26 = vld [vmem:[%s3612_s1 + $0x108] sm:$0xff]  ;;  %v252_v27 = vld [vmem:[%s3612_s1 + $0x100] sm:$0xff]  ;;  %v211_v38 = vld [vmem:[#allocation2 + $0x38] sm:$0xff]  ;;  %s1954_s1 = smov 112  }
  0x3f   :  { %407 = vmatprep.subr.mxu0 %v261_v12  ;;  %501 = vmatpush2.msra.mxu1 %v320_v13  ;;  %v215_v46 = vld [vmem:[#allocation2 + $0x58] sm:$0xff] }
  0x40   :  { %408 = vmatpush2.msra.mxu0 %v260_v14  ;;  %502 = vmatprep.subr.mxu1 %v319_v15  ;;  %v219_v49 = vld [vmem:[#allocation2 + $0x78] sm:$0xf] }
  0x41   :  { %409 = vmatprep.subr.mxu0 %v259_v16  ;;  %503 = vmatpush2.msra.mxu1 %v318_v17 }
  0x42   :  { %410 = vmatpush2.msra.mxu0 %v258_v18  ;;  %504 = vmatprep.subr.mxu1 %v317_v19 }
  0x43   :  { %411 = vmatprep.subr.mxu0 %v257_v20  ;;  %505 = vmatpush2.msra.mxu1 %v316_v21 }
  0x44   :  { %412 = vmatpush2.msra.mxu0 %v256_v22  ;;  %1891 = vmatprep.mubr.msk.f32.mxu1 %vm340_vm7, %v207_v23 }
  0x45   :  { %413 = vmatprep.subr.mxu0 %v255_v24 }
  0x46   :  { %414 = vmatpush2.msra.mxu0 %v254_v25 }
  0x47   :  { %415 = vmatprep.subr.mxu0 %v253_v26 }
  0x48   :  { %416 = vmatpush2.msra.mxu0 %v252_v27 }
  0x74   :  { %v55_v28 = vpop.permute.xlu1 %54  ;;  %v32_v29 = vpop.permute.xlu0 %31 }
  0x75   :  { %60 = vst.msk [vmem:[#allocation2 + $0x10] sm:$0x7f] %vm59_vm8, %v55_v28  ;;  %vm88_vm8 = vcmask 1047815  }
  0x76   :  { %35 = vst.msk [vmem:[#allocation2] sm:$0x7f] %vm34_vm9, %v32_v29  ;;  %vm90_vm9 = vcmask 1045760  }
  0x77   :  { %37 = vst.msk [vmem:[#allocation2 + $0x8] sm:$0x7f] %vm36_vm10, %v32_v29  ;;  %vm80_vm10 = vcmask 1046784  }
  0x78   :  { %58 = vst.msk [vmem:[#allocation2 + $0x8] sm:$0x7f] %vm57_vm11, %v55_v28  ;;  %v65_v30 = vpop.permute.xlu1 %64  ;;  %v42_v31 = vpop.permute.xlu0 %41  ;;  %vm122_vm11 = vcmask 1048326  }
  0x79   :  { %45 = vst.msk [vmem:[#allocation2] sm:$0x80] %vm44_vm12, %v42_v31  ;;  %vm152_vm12 = vcmask 261126  }
  0x7a   :  { %47 = vst.msk [vmem:[#allocation2 + $0x8] sm:$0x80] %vm46_vm13, %v42_v31  ;;  %vm3619_vm13 = vcmask 258048  }
  0x7b   :  { %49 = vst.msk [vmem:[#allocation2 + $0x20] sm:$0x3f] %vm48_vm14, %v42_v31  ;;  %vm150_vm14 = vcmask 1048070  }
  0x7c   :  { %51 = vst.msk [vmem:[#allocation2 + $0x28] sm:$0x3f] %vm50_vm15, %v42_v31  ;;  %v86_v32 = vpop.permute.xlu1 %85  ;;  %v78_v33 = vpop.permute.xlu0 %77  ;;  %vm154_vm15 = vcmask 1044992  }
  0x7d   :  { %70 = vst.msk [vmem:[#allocation2 + $0x10] sm:$0x80] %vm69_vm0, %v65_v30  ;;  %vm136_vm0 = vcmask 1048325  }
  0x7e   :  { %74 = vst.msk [vmem:[#allocation2 + $0x30] sm:$0x3f] %vm73_vm1, %v65_v30  ;;  %vm138_vm1 = vcmask 523269  }
  0x7f   :  { %68 = vst.msk [vmem:[#allocation2 + $0x8] sm:$0x80] %vm67_vm2, %v65_v30  ;;  %vm140_vm2 = vcmask 1044224  }
  0x80   :  { %72 = vst.msk [vmem:[#allocation2 + $0x28] sm:$0x3f] %vm71_vm3, %v65_v30  ;;  %v148_v34 = vpop.permute.xlu1 %147  ;;  %v120_v35 = vpop.permute.xlu0 %119  ;;  %v204_v37 = vld [vmem:[#allocation2] sm:$0xff]  ;;  %vm142_vm3 = vcmask 519168  }
  0x81   :  { %89 = vst.msk [vmem:[#allocation2 + $0x10] sm:$0x80] %vm88_vm8, %v86_v32  ;;  %vm178_vm8 = vcmask 1047814  }
  0x82   :  { %91 = vst.msk [vmem:[#allocation2 + $0x30] sm:$0x3f] %vm90_vm9, %v86_v32  ;;  %vm180_vm9 = vcmask 1044736  }
  0x83   :  { %81 = vst.msk [vmem:[#allocation2 + $0x10] sm:$0x7f] %vm80_vm10, %v78_v33  ;;  %vm168_vm10 = vcmask 1043968  }
  0x84   :  { %123 = vst.msk [vmem:[#allocation2 + $0x20] sm:$0xc0] %vm122_vm11, %v120_v35  ;;  %v134_v39 = vpop.permute.xlu1 %133  ;;  %v176_v40 = vpop.permute.xlu0 %175  ;;  %vm166_vm11 = vcmask 261125  }
  0x85   :  { %125 = vst.msk [vmem:[#allocation2 + $0x28] sm:$0xc0] %vm124_vm5, %v120_v35  ;;  %vm164_vm5 = vcmask 1048069  }
  0x86   :  { %127 = vst.msk [vmem:[#allocation2 + $0x40] sm:$0x1f] %vm126_vm4, %v120_v35  ;;  %v205_v36 = vld [vmem:[#allocation2 + $0x8] sm:$0xff] }
  0x87   :  { %129 = vst.msk [vmem:[#allocation2 + $0x48] sm:$0x1f] %vm128_vm6, %v120_v35  ;;  %417 = vmatprep.mubr.f32.mxu0 %v205_v36 }
  0x88   :  { %153 = vst.msk [vmem:[#allocation2 + $0x30] sm:$0xc0] %vm152_vm12, %v148_v34  ;;  %418 = vmatmul.mubr.f32.vlgmr.msra.gmra.mxu0 %v204_v37  ;;  %vm170_vm12 = vcmask 257024   ;;  %v162_v42 = vpop.permute.xlu0 %161  ;;  %v186_v43 = vpop.permute.xlu1 %185 }
  0x89   :  { %157 = vst.msk [vmem:[#allocation2 + $0x50] sm:$0x1f] %vm3619_vm13, %v148_v34  ;;  %vm190_vm13 = vcmask 1043712  }
  0x8a   :  { %151 = vst.msk [vmem:[#allocation2 + $0x28] sm:$0xc0] %vm150_vm14, %v148_v34  ;;  %v206_v41 = vld [vmem:[#allocation2 + $0x10] sm:$0xff]  ;;  %vm3621_vm14 = vcmask 1047813  }
  0x8b   :  { %155 = vst.msk [vmem:[#allocation2 + $0x48] sm:$0x1f] %vm154_vm15, %v148_v34  ;;  %507 = vmatmul.mubr.f32.vlgmr.msra.gmra.mxu1 %v206_v41  ;;  %v208_v45 = vld [vmem:[#allocation2 + $0x20] sm:$0xff] }
  0x8c   :  { %137 = vst.msk [vmem:[#allocation2 + $0x40] sm:$0xe0] %vm136_vm0, %v134_v39  ;;  %1892 = vmatprep.mubr.msk.f32.mxu1 %vm340_vm7, %v211_v38 }
  0x8d   :  { %139 = vst.msk [vmem:[#allocation2 + $0x48] sm:$0xe0] %vm138_vm1, %v134_v39 }
  0x8e   :  { %141 = vst.msk [vmem:[#allocation2 + $0x60] sm:$0xf] %vm140_vm2, %v134_v39  ;;  %vm3622_vm2 = vcmask 781312  }
  0x8f   :  { %143 = vst.msk [vmem:[#allocation2 + $0x68] sm:$0xf] %vm142_vm3, %v134_v39  ;;  %vm3623_vm3 = vmmov %vm3622_vm2 }
  0x90   :  { %179 = vst.msk [vmem:[#allocation2 + $0x30] sm:$0xc0] %vm178_vm8, %v176_v40  ;;  %vm725_vm8 = vcmask 130048  }
  0x91   :  { %181 = vst.msk [vmem:[#allocation2 + $0x50] sm:$0x1f] %vm180_vm9, %v176_v40  ;;  %v209_v44 = vld [vmem:[#allocation2 + $0x28] sm:$0xff] }
  0x92   :  { %165 = vst.msk [vmem:[#allocation2 + $0x48] sm:$0xe0] %vm164_vm5, %v162_v42  ;;  %423 = vmatprep.mubr.f32.mxu0 %v209_v44 }
  0x93   :  { %169 = vst.msk [vmem:[#allocation2 + $0x68] sm:$0xf] %vm168_vm10, %v162_v42  ;;  %424 = vmatmul.mubr.f32.gmra.mxu0 %v208_v45  ;;  %v212_v50 = vld [vmem:[#allocation2 + $0x40] sm:$0xff]  ;;  %vm3620_vm10 = vcmask 261120  }
  0x94   :  { %167 = vst.msk [vmem:[#allocation2 + $0x50] sm:$0xe0] %vm166_vm11, %v162_v42 }
  0x95   :  { %171 = vst.msk [vmem:[#allocation2 + $0x70] sm:$0xf] %vm170_vm12, %v162_v42  ;;  %v216_v53 = vld [vmem:[#allocation2 + $0x60] sm:$0xf]  ;;  %vm729_vm12 = vcmask 392192  }
  0x96   :  { %189 = vst.msk [vmem:[#allocation2 + $0x50] sm:$0xe0] %vm3621_vm14, %v186_v43 }
  0x97   :  { %191 = vst.msk [vmem:[#allocation2 + $0x70] sm:$0xf] %vm190_vm13, %v186_v43  ;;  %v210_v47 = vld [vmem:[#allocation2 + $0x30] sm:$0xff]  ;;  %vm533_vm13 = vcmask 1043456  }
  0x98   :  { %513 = vmatmul.mubr.f32.gmra.mxu1 %v210_v47 }
  0x99   :  { %1893 = vmatprep.mubr.msk.f32.mxu1 %vm340_vm7, %v215_v46  ;;  %v213_v48 = vld [vmem:[#allocation2 + $0x48] sm:$0xff] }
  0x9a   :  { %429 = vmatprep.mubr.f32.mxu0 %v213_v48  ;;  %v217_v52 = vld [vmem:[#allocation2 + $0x68] sm:$0xf] }
  0x9b   :  { %430 = vmatmul.mubr.f32.gmra.mxu0 %v212_v50 }
  0x9c   :  { %435 = vmatprep.mubr.f32.mxu0 %v217_v52 }
  0x9d   :  { %v214_v51 = vld [vmem:[#allocation2 + $0x50] sm:$0xff] }
  0x9e   :  { %519 = vmatmul.mubr.f32.gmra.mxu1 %v214_v51  ;;  %v218_v54 = vld [vmem:[#allocation2 + $0x70] sm:$0xf] }
  0x9f   :  { %1894 = vmatprep.mubr.msk.f32.mxu1 %vm340_vm7, %v219_v49  ;;  %436 = vmatmul.mubr.f32.gmra.mxu0 %v216_v53 }
  0xa2   :  { %525 = vmatmul.mubr.f32.gmra.mxu1 %v218_v54 }
 0x148   :  { %v419_v55 = vpop.f32.mrf.mxu0 }
 0x14a   :  { %v421_v57 = vpop.f32.mrf.mxu0 }
 0x14b   :  { %v508_v56 = vpop.f32.mrf.mxu1 }
 0x14c   :  { %v2448_v0 = vadd.f32 %v508_v56, %v419_v55 }
 0x14d   :  { %v510_v58 = vpop.f32.mrf.mxu1 }
 0x14e   :  { %v606_v7 = vmul.f32 %v2448_v0, %v2448_v0  ;;  %v2468_v29 = vadd.f32 %v510_v58, %v421_v57 }
 0x150   :  { %v542_v38 = vsel %vm340_vm7, %v2468_v29, 0.0  ;;  %v607_v39 = vmul.f32 %v2468_v29, %v2468_v29 }
 0x152   :  { %v624_v49 = vsel %vm340_vm7, %v607_v39, 0.0 }
 0x153   :  { %v425_v59 = vpop.f32.mrf.mxu0 }
 0x155   :  { %v427_v62 = vpop.f32.mrf.mxu0 }
 0x158   :  { %v514_v60 = vpop.f32.mrf.mxu1 }
 0x159   :  { %v2446_v63 = vadd.f32 %v514_v60, %v425_v59 }
 0x15a   :  { %v516_v61 = vpop.f32.mrf.mxu1 }
 0x15b   :  { %v431_v1 = vpop.f32.mrf.mxu0  ;;  %v608_v4 = vmul.f32 %v2446_v63, %v2446_v63  ;;  %v531_v8 = vadd.f32 %v2446_v63, %v2448_v0  ;;  %v2466_v24 = vadd.f32 %v516_v61, %v427_v62 }
 0x15d   :  { %v433_v5 = vpop.f32.mrf.mxu0  ;;  %v614_v13 = vadd.f32 %v608_v4, %v606_v7  ;;  %v543_v33 = vsel %vm340_vm7, %v2466_v24, 0.0  ;;  %v609_v34 = vmul.f32 %v2466_v24, %v2466_v24 }
 0x15e   :  { %v520_v2 = vpop.f32.mrf.mxu1  ;;  %v544_v42 = vadd.f32 %v543_v33, %v542_v38 }
 0x15f   :  { %v2450_v3 = vadd.f32 %v520_v2, %v431_v1  ;;  %v437_v10 = vpop.f32.mrf.mxu0  ;;  %v625_v45 = vsel %vm340_vm7, %v609_v34, 0.0 }
 0x160   :  { %v522_v6 = vpop.f32.mrf.mxu1  ;;  %v626_v51 = vadd.f32 %v625_v45, %v624_v49 }
 0x161   :  { %v610_v9 = vmul.f32 %v2450_v3, %v2450_v3  ;;  %v532_v14 = vadd.f32 %v531_v8, %v2450_v3  ;;  %v439_v27 = vpop.f32.mrf.mxu0  ;;  %v2470_v30 = vadd.f32 %v522_v6, %v433_v5 }
 0x162   :  { %v526_v11 = vpop.f32.mrf.mxu1 }
 0x163   :  { %v2460_v12 = vadd.f32 %v526_v11, %v437_v10  ;;  %v615_v17 = vadd.f32 %v614_v13, %v610_v9  ;;  %v545_v40 = vsel %vm340_vm7, %v2470_v30, 0.0  ;;  %v611_v41 = vmul.f32 %v2470_v30, %v2470_v30 }
 0x164   :  { %v528_v28 = vpop.f32.mrf.mxu1  ;;  %v546_v48 = vadd.f32 %v545_v40, %v544_v42 }
 0x165   :  { %v534_v15 = vsel %vm533_vm13, %v2460_v12, 0.0  ;;  %v612_v16 = vmul.f32 %v2460_v12, %v2460_v12  ;;  %v2476_v35 = vadd.f32 %v528_v28, %v439_v27  ;;  %v627_v50 = vsel %vm340_vm7, %v611_v41, 0.0 }
 0x166   :  { %v535_v18 = vadd.f32 %v534_v15, %v532_v14  ;;  %v628_v55 = vadd.f32 %v627_v50, %v626_v51 }
 0x167   :  { %v616_v19 = vsel %vm533_vm13, %v612_v16, 0.0  ;;  %v547_v46 = vsel %vm3622_vm2, %v2476_v35, 0.0  ;;  %v613_v47 = vmul.f32 %v2476_v35, %v2476_v35  ;;  %vm731_vm13 = vcmask 523264  }
 0x168   :  { %v536_v20 = vrot.slane %v535_v18, 4  ;;  %v617_v21 = vadd.f32 %v616_v19, %v615_v17  ;;  %v548_v53 = vadd.f32 %v547_v46, %v546_v48  ;;  %vm733_vm2 = vcmask 654336  }
 0x169   :  { %v629_v54 = vsel %vm3623_vm3, %v613_v47, 0.0  ;;  %vm736_vm3 = vcmask 916480  }
 0x16a   :  { %v537_v22 = vadd.f32 %v536_v20, %v535_v18  ;;  %v618_v23 = vrot.slane %v617_v21, 4  ;;  %v549_v56 = vrot.slane %v548_v53, 4  ;;  %v630_v57 = vadd.f32 %v629_v54, %v628_v55 }
 0x16c   :  { %v538_v25 = vrot.slane %v537_v22, 2  ;;  %v619_v26 = vadd.f32 %v618_v23, %v617_v21  ;;  %v550_v58 = vadd.f32 %v549_v56, %v548_v53  ;;  %v631_v59 = vrot.slane %v630_v57, 4 }
 0x16e   :  { %v539_v31 = vadd.f32 %v538_v25, %v537_v22  ;;  %v620_v32 = vrot.slane %v619_v26, 2  ;;  %v551_v60 = vrot.slane %v550_v58, 2  ;;  %v632_v61 = vadd.f32 %v631_v59, %v630_v57 }
 0x170   :  { %v540_v36 = vrot.slane %v539_v31, 1  ;;  %v621_v37 = vadd.f32 %v620_v32, %v619_v26  ;;  %v552_v62 = vadd.f32 %v551_v60, %v550_v58  ;;  %v633_v1 = vrot.slane %v632_v61, 2 }
 0x172   :  { %v541_v43 = vadd.f32 %v540_v36, %v539_v31  ;;  %v622_v44 = vrot.slane %v621_v37, 1  ;;  %v553_v2 = vrot.slane %v552_v62, 1  ;;  %v634_v4 = vadd.f32 %v633_v1, %v632_v61 }
 0x174   :  { %560 = vrot.lane.b32.xlu1 %v541_v43, %s1952_s20  ;;  %556 = vrot.lane.b32.xlu0 %v541_v43, %s1954_s1  ;;  %v623_v52 = vadd.f32 %v622_v44, %v621_v37  ;;  %v554_v5 = vadd.f32 %v553_v2, %v552_v62  ;;  %v635_v6 = vrot.slane %v634_v4, 1 }
 0x176   :  { %v636_v7 = vadd.f32 %v635_v6, %v634_v4 }
 0x178   :  { %564 = vrot.lane.b32.xlu1 %v541_v43, %s1955_s15  ;;  %638 = vrot.lane.b32.xlu0 %v623_v52, %s1954_s1 }
 0x17c   :  { %568 = vrot.lane.b32.xlu1 %v541_v43, %s1951_s19  ;;  %642 = vrot.lane.b32.xlu0 %v623_v52, %s1952_s20 }
 0x180   :  { %572 = vrot.lane.b32.xlu1 %v541_v43, %s1956_s16  ;;  %646 = vrot.lane.b32.xlu0 %v623_v52, %s1955_s15 }
 0x184   :  { %576 = vrot.lane.b32.xlu1 %v541_v43, %s1953_s17  ;;  %650 = vrot.lane.b32.xlu0 %v623_v52, %s1951_s19 }
 0x188   :  { %580 = vrot.lane.b32.xlu1 %v541_v43, %s1957_s18  ;;  %654 = vrot.lane.b32.xlu0 %v623_v52, %s1956_s16 }
 0x18c   :  { %662 = vrot.lane.b32.xlu1 %v623_v52, %s1957_s18  ;;  %658 = vrot.lane.b32.xlu0 %v623_v52, %s1953_s17 }
 0x190   :  { %590 = vrot.lane.b32.xlu1 %v554_v5, %s1952_s20  ;;  %586 = vrot.lane.b32.xlu0 %v554_v5, %s1954_s1 }
 0x194   :  { %594 = vrot.lane.b32.xlu1 %v554_v5, %s1955_s15  ;;  %668 = vrot.lane.b32.xlu0 %v636_v7, %s1954_s1 }
 0x198   :  { %598 = vrot.lane.b32.xlu1 %v554_v5, %s1951_s19  ;;  %672 = vrot.lane.b32.xlu0 %v636_v7, %s1952_s20 }
 0x19c   :  { %602 = vrot.lane.b32.xlu1 %v554_v5, %s1956_s16  ;;  %676 = vrot.lane.b32.xlu0 %v636_v7, %s1955_s15 }
 0x1a0   :  { %684 = vrot.lane.b32.xlu1 %v636_v7, %s1956_s16  ;;  %680 = vrot.lane.b32.xlu0 %v636_v7, %s1951_s19 }
 0x1e6   :  { %v561_v8 = vpop.permute.xlu1 %560  ;;  %v557_v9 = vpop.permute.xlu0 %556 }
 0x1e7   :  { %v559_v13 = vadd.f32 %v557_v9, %v541_v43 }
 0x1e9   :  { %v563_v16 = vadd.f32 %v561_v8, %v559_v13 }
 0x1ea   :  { %v565_v10 = vpop.permute.xlu1 %564  ;;  %v639_v11 = vpop.permute.xlu0 %638 }
 0x1eb   :  { %v567_v19 = vadd.f32 %v565_v10, %v563_v16  ;;  %v641_v23 = vadd.f32 %v639_v11, %v623_v52  ;;  %v1012_v16 = vld [vmem:[%s3613_s2 + $0xe8] sm:$0xff] }
 0x1ee   :  { %v569_v14 = vpop.permute.xlu1 %568  ;;  %v643_v15 = vpop.permute.xlu0 %642 }
 0x1ef   :  { %v571_v22 = vadd.f32 %v569_v14, %v567_v19  ;;  %v645_v28 = vadd.f32 %v643_v15, %v641_v23  ;;  %v1014_v14 = vld [vmem:[%s3613_s2 + $0xf8] sm:$0xff]  ;;  %v1013_v15 = vld [vmem:[%s3613_s2 + $0xf0] sm:$0xff]  ;;  %v1076_v23 = vld [vmem:[%s3613_s2 + $0x2e8] sm:$0xff] }
 0x1f0   :  { %1269 = vmatprep.subr.mxu1 %v1014_v14  ;;  %v1009_v19 = vld [vmem:[%s3613_s2 + $0xd0] sm:$0xff] }
 0x1f1   :  { %1270 = vmatpush1.msra.mxu1 %v1013_v15  ;;  %v1053_v14 = vld [vmem:[%s3613_s2 + $0x230] sm:$0xff] }
 0x1f2   :  { %v573_v17 = vpop.permute.xlu1 %572  ;;  %v647_v18 = vpop.permute.xlu0 %646  ;;  %1271 = vmatprep.subr.mxu1 %v1012_v16  ;;  %v985_v15 = vld [vmem:[%s3613_s2 + $0x10] sm:$0xff]  ;;  %v1052_v16 = vld [vmem:[%s3613_s2 + $0x228] sm:$0xff] }
 0x1f3   :  { %v575_v25 = vadd.f32 %v573_v17, %v571_v22  ;;  %v649_v32 = vadd.f32 %v647_v18, %v645_v28  ;;  %v1011_v17 = vld [vmem:[%s3613_s2 + $0xe0] sm:$0xff]  ;;  %v1010_v18 = vld [vmem:[%s3613_s2 + $0xd8] sm:$0xff]  ;;  %v1008_v22 = vld [vmem:[%s3613_s2 + $0xc8] sm:$0xff] }
 0x1f4   :  { %1272 = vmatpush1.msra.mxu1 %v1011_v17  ;;  %v1006_v28 = vld [vmem:[%s3613_s2 + $0xb8] sm:$0xff]  ;;  %v984_v17 = vld [vmem:[%s3613_s2 + $0x8] sm:$0xff] }
 0x1f5   :  { %1273 = vmatprep.subr.mxu1 %v1010_v18  ;;  %v1051_v18 = vld [vmem:[%s3613_s2 + $0x220] sm:$0xff] }
 0x1f6   :  { %v577_v20 = vpop.permute.xlu1 %576  ;;  %v651_v21 = vpop.permute.xlu0 %650  ;;  %1274 = vmatpush1.msra.mxu1 %v1009_v19  ;;  %v983_v19 = vld [vmem:[%s3613_s2] sm:$0xff] }
 0x1f7   :  { %v579_v31 = vadd.f32 %v577_v20, %v575_v25  ;;  %v653_v37 = vadd.f32 %v651_v21, %v649_v32  ;;  %v1078_v20 = vld [vmem:[%s3613_s2 + $0x2f8] sm:$0xff]  ;;  %v1077_v21 = vld [vmem:[%s3613_s2 + $0x2f0] sm:$0xff]  ;;  %v1007_v25 = vld [vmem:[%s3613_s2 + $0xc0] sm:$0xff]  ;;  %1275 = vmatprep.subr.mxu1 %v1008_v22 }
 0x1f8   :  { %1346 = vmatprep.subr.mxu0 %v1078_v20  ;;  %v1005_v32 = vld [vmem:[%s3613_s2 + $0xb0] sm:$0xff]  ;;  %1276 = vmatpush1.msra.mxu1 %v1007_v25  ;;  %v1050_v20 = vld [vmem:[%s3613_s2 + $0x218] sm:$0xff]  ;;  %v1048_v25 = vld [vmem:[%s3613_s2 + $0x208] sm:$0xff] }
 0x1f9   :  { %1347 = vmatpush1.msra.mxu0 %v1077_v21  ;;  %1277 = vmatprep.subr.mxu1 %v1006_v28  ;;  %v1046_v21 = vld [vmem:[%s3613_s2 + $0x1f8] sm:$0xff]  ;;  %v1049_v22 = vld [vmem:[%s3613_s2 + $0x210] sm:$0xff]  ;;  %v1043_v28 = vld [vmem:[%s3613_s2 + $0x1e0] sm:$0xff] }
 0x1fa   :  { %v581_v26 = vpop.permute.xlu1 %580  ;;  %v655_v27 = vpop.permute.xlu0 %654  ;;  %1348 = vmatprep.subr.mxu0 %v1076_v23  ;;  %1278 = vmatpush1.msra.mxu1 %v1005_v32  ;;  %v1045_v23 = vld [vmem:[%s3613_s2 + $0x1f0] sm:$0xff]  ;;  %v1042_v32 = vld [vmem:[%s3613_s2 + $0x1d8] sm:$0xff] }
 0x1fb   :  { %v583_v33 = vadd.f32 %v581_v26, %v579_v31  ;;  %v657_v38 = vadd.f32 %v655_v27, %v653_v37  ;;  %v1075_v26 = vld [vmem:[%s3613_s2 + $0x2e0] sm:$0xff]  ;;  %v1074_v27 = vld [vmem:[%s3613_s2 + $0x2d8] sm:$0xff]  ;;  %v1073_v31 = vld [vmem:[%s3613_s2 + $0x2d0] sm:$0xff] }
 0x1fc   :  { %1349 = vmatpush1.msra.mxu0 %v1075_v26  ;;  %v1003_v37 = vld [vmem:[%s3613_s2 + $0xa0] sm:$0xff]  ;;  %v1044_v26 = vld [vmem:[%s3613_s2 + $0x1e8] sm:$0xff] }
 0x1fd   :  { %v584_v39 = vadd.f32 %v583_v33, %v554_v5  ;;  %v1072_v33 = vld [vmem:[%s3613_s2 + $0x2c8] sm:$0xff]  ;;  %1350 = vmatprep.subr.mxu0 %v1074_v27  ;;  %v1047_v27 = vld [vmem:[%s3613_s2 + $0x200] sm:$0xff] }
 0x1fe   :  { %v663_v34 = vpop.permute.xlu1 %662  ;;  %v659_v36 = vpop.permute.xlu0 %658  ;;  %1351 = vmatpush1.msra.mxu0 %v1073_v31  ;;  %v1110_v31 = vld [vmem:[%s3613_s2 + $0x3f8] sm:$0xff] }
 0x1ff   :  { %v661_v42 = vadd.f32 %v659_v36, %v657_v38  ;;  %v1071_v36 = vld [vmem:[%s3613_s2 + $0x2c0] sm:$0xff]  ;;  %v1070_v38 = vld [vmem:[%s3613_s2 + $0x2b8] sm:$0xff]  ;;  %1352 = vmatprep.subr.mxu0 %v1072_v33  ;;  %v1109_v33 = vld [vmem:[%s3613_s2 + $0x3f0] sm:$0xff] }
 0x200   :  { %1353 = vmatpush1.msra.mxu0 %v1071_v36  ;;  %v1108_v36 = vld [vmem:[%s3613_s2 + $0x3e8] sm:$0xff] }
 0x201   :  { %v665_v46 = vadd.f32 %v663_v34, %v661_v42  ;;  %v1004_v34 = vld [vmem:[%s3613_s2 + $0xa8] sm:$0xff]  ;;  %1354 = vmatprep.subr.mxu0 %v1070_v38  ;;  %v1107_v38 = vld [vmem:[%s3613_s2 + $0x3e0] sm:$0xff] }
 0x202   :  { %v591_v40 = vpop.permute.xlu1 %590  ;;  %v587_v41 = vpop.permute.xlu0 %586  ;;  %1279 = vmatprep.subr.mxu1 %v1004_v34  ;;  %v1068_v42 = vld [vmem:[%s3613_s2 + $0x2a8] sm:$0xff]  ;;  %v1041_v34 = vld [vmem:[%s3613_s2 + $0x1d0] sm:$0xff] }
 0x203   :  { %v589_v43 = vadd.f32 %v587_v41, %v584_v39  ;;  %v666_v51 = vadd.f32 %v665_v46, %v636_v7  ;;  %v693_v7 = vld [vmem:[%s3614_s3 + $0x20] sm:$0x1]  ;;  %v1002_v39 = vld [vmem:[%s3613_s2 + $0x98] sm:$0xff]  ;;  %v1001_v41 = vld [vmem:[%s3613_s2 + $0x90] sm:$0xff]  ;;  %1280 = vmatpush1.msra.mxu1 %v1003_v37 }
 0x204   :  { %1281 = vmatprep.subr.mxu1 %v1002_v39  ;;  %v1066_v46 = vld [vmem:[%s3613_s2 + $0x298] sm:$0xff]  ;;  %v1040_v37 = vld [vmem:[%s3613_s2 + $0x1c8] sm:$0xff]  ;;  %v1039_v39 = vld [vmem:[%s3613_s2 + $0x1c0] sm:$0xff] }
 0x205   :  { %v593_v47 = vadd.f32 %v591_v40, %v589_v43  ;;  %v1069_v40 = vld [vmem:[%s3613_s2 + $0x2b0] sm:$0xff]  ;;  %v1000_v43 = vld [vmem:[%s3613_s2 + $0x88] sm:$0xff]  ;;  %1282 = vmatpush1.msra.mxu1 %v1001_v41  ;;  %v1038_v41 = vld [vmem:[%s3613_s2 + $0x1b8] sm:$0xff] }
 0x206   :  { %v595_v44 = vpop.permute.xlu1 %594  ;;  %v669_v45 = vpop.permute.xlu0 %668  ;;  %1355 = vmatpush1.msra.mxu0 %v1069_v40  ;;  %1283 = vmatprep.subr.mxu1 %v1000_v43  ;;  %v1106_v40 = vld [vmem:[%s3613_s2 + $0x3d8] sm:$0xff]  ;;  %v1037_v43 = vld [vmem:[%s3613_s2 + $0x1b0] sm:$0xff] }
 0x207   :  { %v597_v50 = vadd.f32 %v595_v44, %v593_v47  ;;  %v671_v52 = vadd.f32 %v669_v45, %v666_v51  ;;  %v1067_v44 = vld [vmem:[%s3613_s2 + $0x2a0] sm:$0xff]  ;;  %v998_v47 = vld [vmem:[%s3613_s2 + $0x78] sm:$0xff]  ;;  %1356 = vmatprep.subr.mxu0 %v1068_v42  ;;  %v996_v51 = vld [vmem:[%s3613_s2 + $0x68] sm:$0xff] }
 0x208   :  { %v999_v45 = vld [vmem:[%s3613_s2 + $0x80] sm:$0xff]  ;;  %1357 = vmatpush1.msra.mxu0 %v1067_v44  ;;  %v1105_v42 = vld [vmem:[%s3613_s2 + $0x3d0] sm:$0xff]  ;;  %v1104_v44 = vld [vmem:[%s3613_s2 + $0x3c8] sm:$0xff] }
 0x209   :  { %1284 = vmatpush1.msra.mxu1 %v999_v45  ;;  %1358 = vmatprep.subr.mxu0 %v1066_v46  ;;  %v1036_v45 = vld [vmem:[%s3613_s2 + $0x1a8] sm:$0xff]  ;;  %v1103_v46 = vld [vmem:[%s3613_s2 + $0x3c0] sm:$0xff] }
 0x20a   :  { %v599_v48 = vpop.permute.xlu1 %598  ;;  %v673_v49 = vpop.permute.xlu0 %672  ;;  %1285 = vmatprep.subr.mxu1 %v998_v47  ;;  %v1035_v47 = vld [vmem:[%s3613_s2 + $0x1a0] sm:$0xff] }
 0x20b   :  { %v601_v53 = vadd.f32 %v599_v48, %v597_v50  ;;  %v675_v56 = vadd.f32 %v673_v49, %v671_v52  ;;  %v1065_v48 = vld [vmem:[%s3613_s2 + $0x290] sm:$0xff]  ;;  %v1064_v50 = vld [vmem:[%s3613_s2 + $0x288] sm:$0xff]  ;;  %v1063_v52 = vld [vmem:[%s3613_s2 + $0x280] sm:$0xff] }
 0x20c   :  { %v997_v49 = vld [vmem:[%s3613_s2 + $0x70] sm:$0xff]  ;;  %1359 = vmatpush1.msra.mxu0 %v1065_v48  ;;  %v1102_v48 = vld [vmem:[%s3613_s2 + $0x3b8] sm:$0xff] }
 0x20d   :  { %1286 = vmatpush1.msra.mxu1 %v997_v49  ;;  %1360 = vmatprep.subr.mxu0 %v1064_v50  ;;  %v1034_v49 = vld [vmem:[%s3613_s2 + $0x198] sm:$0xff]  ;;  %v1101_v50 = vld [vmem:[%s3613_s2 + $0x3b0] sm:$0xff] }
 0x20e   :  { %v603_v54 = vpop.permute.xlu1 %602  ;;  %v677_v55 = vpop.permute.xlu0 %676  ;;  %1287 = vmatprep.subr.mxu1 %v996_v51  ;;  %1361 = vmatpush1.msra.mxu0 %v1063_v52  ;;  %v1033_v51 = vld [vmem:[%s3613_s2 + $0x190] sm:$0xff]  ;;  %v1100_v52 = vld [vmem:[%s3613_s2 + $0x3a8] sm:$0xff] }
 0x20f   :  { %v605_v57 = vadd.f32 %v603_v54, %v601_v53  ;;  %v679_v58 = vadd.f32 %v677_v55, %v675_v56  ;;  %v995_v53 = vld [vmem:[%s3613_s2 + $0x60] sm:$0xff]  ;;  %v1062_v54 = vld [vmem:[%s3613_s2 + $0x278] sm:$0xff]  ;;  %v1061_v56 = vld [vmem:[%s3613_s2 + $0x270] sm:$0xff] }
 0x210   :  { %v994_v55 = vld [vmem:[%s3613_s2 + $0x58] sm:$0xff]  ;;  %1288 = vmatpush1.msra.mxu1 %v995_v53  ;;  %1362 = vmatprep.subr.mxu0 %v1062_v54  ;;  %v1032_v53 = vld [vmem:[%s3613_s2 + $0x188] sm:$0xff]  ;;  %v1099_v54 = vld [vmem:[%s3613_s2 + $0x3a0] sm:$0xff] }
 0x211   :  { %v689_v60 = vmul.f32 0.0025510204, %v605_v57  ;;  %v993_v57 = vld [vmem:[%s3613_s2 + $0x50] sm:$0xff]  ;;  %1289 = vmatprep.subr.mxu1 %v994_v55  ;;  %1363 = vmatpush1.msra.mxu0 %v1061_v56  ;;  %v1031_v55 = vld [vmem:[%s3613_s2 + $0x180] sm:$0xff]  ;;  %v1098_v56 = vld [vmem:[%s3613_s2 + $0x398] sm:$0xff] }
 0x212   :  { %v681_v59 = vpop.permute.xlu0 %680  ;;  %v685_v62 = vpop.permute.xlu1 %684  ;;  %1290 = vmatpush1.msra.mxu1 %v993_v57 }
 0x213   :  { %v683_v61 = vadd.f32 %v681_v59, %v679_v58  ;;  %v691_v2 = vmul.f32 %v689_v60, %v689_v60  ;;  %v1060_v58 = vld [vmem:[%s3613_s2 + $0x268] sm:$0xff] }
 0x214   :  { %v992_v59 = vld [vmem:[%s3613_s2 + $0x48] sm:$0xff]  ;;  %1364 = vmatprep.subr.mxu0 %v1060_v58  ;;  %v1030_v58 = vld [vmem:[%s3613_s2 + $0x178] sm:$0xff] }
 0x215   :  { %v687_v1 = vadd.f32 %v685_v62, %v683_v61  ;;  %v991_v61 = vld [vmem:[%s3613_s2 + $0x40] sm:$0xff]  ;;  %v1058_v62 = vld [vmem:[%s3613_s2 + $0x258] sm:$0xff]  ;;  %1291 = vmatprep.subr.mxu1 %v992_v59  ;;  %v1029_v59 = vld [vmem:[%s3613_s2 + $0x170] sm:$0xff] }
 0x216   :  { %1292 = vmatpush1.msra.mxu1 %v991_v61  ;;  %v1027_v61 = vld [vmem:[%s3613_s2 + $0x160] sm:$0xff] }
 0x217   :  { %v690_v4 = vmul.f32 0.0025510204, %v687_v1  ;;  %v990_v1 = vld [vmem:[%s3613_s2 + $0x38] sm:$0xff] }
 0x218   :  { %1293 = vmatprep.subr.mxu1 %v990_v1 }
 0x219   :  { %v692_v5 = vsub.f32 %v690_v4, %v691_v2  ;;  %v1057_v2 = vld [vmem:[%s3613_s2 + $0x250] sm:$0xff] }
 0x21a   :  { %v989_v4 = vld [vmem:[%s3613_s2 + $0x30] sm:$0xff] }
 0x21b   :  { %v694_v6 = vadd.f32 1e-05, %v692_v5  ;;  %v1056_v5 = vld [vmem:[%s3613_s2 + $0x248] sm:$0xff]  ;;  %1294 = vmatpush1.msra.mxu1 %v989_v4 }
 0x21d   :  { %1925 = vrsqrt.f32 %v694_v6  ;;  %v988_v6 = vld [vmem:[%s3613_s2 + $0x28] sm:$0xff] }
 0x21e   :  { %1295 = vmatprep.subr.mxu1 %v988_v6 }
 0x22a   :  { %v1926_v8 = vpop.eup %1925 }
 0x22b   :  { %v2521_v9 = vmul.f32 %v1926_v8, %v693_v7  ;;  %v987_v8 = vld [vmem:[%s3613_s2 + $0x20] sm:$0xff] }
 0x22c   :  { %1296 = vmatpush1.msra.mxu1 %v987_v8 }
 0x22d   :  { %704 = vrot.lane.b32.xlu1 %v2521_v9, %s1957_s18  ;;  %v697_v10 = vmul.f32 %v2521_v9, %v689_v60  ;;  %v1059_v60 = vld [vmem:[%s3613_s2 + $0x260] sm:$0xff] }
 0x22e   :  { %1365 = vmatpush1.msra.mxu0 %v1059_v60  ;;  %v1028_v60 = vld [vmem:[%s3613_s2 + $0x168] sm:$0xff] }
 0x22f   :  { %699 = vrot.lane.b32.xlu0 %v697_v10, %s1957_s18  ;;  %1366 = vmatprep.subr.mxu0 %v1058_v62  ;;  %v1054_v10 = vld [vmem:[%s3613_s2 + $0x238] sm:$0xff] }
 0x230   :  { %1367 = vmatpush1.msra.mxu0 %v1057_v2  ;;  %v1026_v62 = vld [vmem:[%s3613_s2 + $0x158] sm:$0xff] }
 0x231   :  { %710 = vrot.lane.b32.xlu1 %v2521_v9, %s1956_s16  ;;  %1368 = vmatprep.subr.mxu0 %v1056_v5 }
 0x233   :  { %707 = vrot.lane.b32.xlu0 %v2521_v9, %s1953_s17 }
 0x235   :  { %713 = vrot.lane.b32.xlu1 %v2521_v9, %s1951_s19 }
 0x239   :  { %716 = vrot.lane.b32.xlu1 %v2521_v9, %s1955_s15 }
 0x23d   :  { %719 = vrot.lane.b32.xlu1 %v2521_v9, %s1952_s20 }
 0x241   :  { %722 = vrot.lane.b32.xlu1 %v2521_v9, %s1954_s1 }
 0x29f   :  { %v705_v57 = vpop.permute.xlu1 %704 }
 0x2a0   :  { %v726_v8 = vsel %vm725_vm8, %v2521_v9, %v705_v57 }
 0x2a1   :  { %v700_v11 = vpop.permute.xlu0 %699 }
 0x2a2   :  { %v2539_v13 = vsub.f32 %v693_v7, %v700_v11  ;;  %v1055_v7 = vld [vmem:[%s3613_s2 + $0x240] sm:$0xff]  ;;  %v986_v11 = vld [vmem:[%s3613_s2 + $0x18] sm:$0xff] }
 0x2a3   :  { %1369 = vmatpush1.msra.mxu0 %v1055_v7  ;;  %1297 = vmatprep.subr.mxu1 %v986_v11  ;;  %v711_v1 = vpop.permute.xlu1 %710  ;;  %v738_v7 = vlaneseq }
 0x2a4   :  { %770 = vrot.lane.b32.xlu1 %v2539_v13, %s1955_s15  ;;  %755 = vrot.lane.b32.xlu0 %v2539_v13, %s1954_s1  ;;  %s1883_s1 = sshll.u32 %s1960_s14, 4  ;;  %s1884_s1 = int_to_ptr.vmem [resolvable:$true] %s1883_s1 }
 0x2a5   :  { %1370 = vmatprep.subr.mxu0 %v1054_v10  ;;  %1298 = vmatpush1.msra.mxu1 %v985_v15  ;;  %v708_v4 = vpop.permute.xlu0 %707  ;;  %v739_v15 = vshrl.u32 %v738_v7, 7  ;;  %v1088_v7 = vld [vmem:[%s3613_s2 + $0x348] sm:$0xff]  ;;  %s1929_s15 = scalar_lea.vmem %s1884_s1, 32  ;;  %p1934_p1 = scmp.lt.s32.totalorder %s1884_s1, %s1884_s1 }
 0x2a6   :  { %1371 = vmatpush1.msra.mxu0 %v1053_v14  ;;  %1299 = vmatprep.subr.mxu1 %v984_v17  ;;  %v728_v10 = vsel %vm3620_vm10, %v726_v8, %v708_v4  ;;  %v1015_v8 = vld [vmem:[%s3613_s2 + $0x100] sm:$0xff]  ;;  %p1930_p0 = scmp.ne.s32.totalorder %s1884_s1, %s1929_s15  ;;  %p1935_p2 = scmp.lt.s32.totalorder %s1929_s15, %s1929_s15 }
 0x2a7   :  { %1372 = vmatprep.subr.mxu0 %v1052_v16  ;;  %1300 = vmatpush1.msra.mxu1 %v983_v19  ;;  %v714_v2 = vpop.permute.xlu1 %713  ;;  %v730_v16 = vsel %vm729_vm12, %v728_v10, %v711_v1  ;;  %v2854_v19 = vsub.s32 0, %v739_v15  ;;  %v1087_v10 = vld [vmem:[%s3613_s2 + $0x340] sm:$0xff] }
 0x2a8   :  { %758 = vrot.lane.b32.xlu0 %v2539_v13, %s1957_s18  ;;  %1373 = vmatpush1.msra.mxu0 %v1051_v18  ;;  %v732_v18 = vsel %vm731_vm13, %v730_v16, %v714_v2  ;;  %p1936_p3 = por %p1935_p2, %p1934_p1 }
 0x2a9   :  { %1374 = vmatprep.subr.mxu0 %v1050_v20  ;;  %1301 = vmatprep.subr.mxu1 %v1046_v21 }
 0x2aa   :  { %1375 = vmatpush1.msra.mxu0 %v1049_v22  ;;  %1302 = vmatpush2.msra.mxu1 %v1045_v23  ;;  %p1937_p4 = pnand %p1936_p3, %p1930_p0 }
 0x2ab   :  { %1376 = vmatprep.subr.mxu0 %v1048_v25  ;;  %1303 = vmatprep.subr.mxu1 %v1044_v26  ;;  %v717_v5 = vpop.permute.xlu1 %716 }
 0x2ac   :  { %761 = vrot.lane.b32.xlu0 %v2539_v13, %s1953_s17  ;;  %1377 = vmatpush1.msra.mxu0 %v1047_v27  ;;  %v734_v20 = vsel %vm733_vm2, %v732_v18, %v717_v5  ;;  %v1089_v5 = vld [vmem:[%s3613_s2 + $0x350] sm:$0xff]  ;;  %v1142_v18 = vld [vmem:[%s3613_s2 + $0x4f8] sm:$0xff] }
 0x2ad   :  { %1304 = vmatpush2.msra.mxu1 %v1043_v28  ;;  %1378 = vmatprep.subr.mxu0 %v1110_v31  ;;  %v2861_v25 = vrot.slane %v734_v20, %v2854_v19  ;;  %v1025_v31 = vld [vmem:[%s3613_s2 + $0x150] sm:$0xff] }
 0x2ae   :  { %1305 = vmatprep.subr.mxu1 %v1042_v32  ;;  %1379 = vmatpush2.msra.mxu0 %v1109_v33  ;;  %v1097_v32 = vld [vmem:[%s3613_s2 + $0x390] sm:$0xff] }
 0x2af   :  { %1306 = vmatpush2.msra.mxu1 %v1041_v34  ;;  %1380 = vmatprep.subr.mxu0 %v1108_v36  ;;  %v720_v14 = vpop.permute.xlu1 %719  ;;  %v1096_v36 = vld [vmem:[%s3613_s2 + $0x388] sm:$0xff] }
 0x2b0   :  { %764 = vrot.lane.b32.xlu0 %v2539_v13, %s1956_s16  ;;  %1307 = vmatprep.subr.mxu1 %v1040_v37  ;;  %v735_v22 = vsel %vm340_vm7, %v734_v20, %v720_v14  ;;  %v1023_v37 = vld [vmem:[%s3613_s2 + $0x140] sm:$0xff] }
 0x2b1   :  { %1381 = vmatpush2.msra.mxu0 %v1107_v38  ;;  %1308 = vmatpush2.msra.mxu1 %v1039_v39  ;;  %v1095_v38 = vld [vmem:[%s3613_s2 + $0x380] sm:$0xff] }
 0x2b2   :  { %1382 = vmatprep.subr.mxu0 %v1106_v40  ;;  %1309 = vmatprep.subr.mxu1 %v1038_v41  ;;  %v747_v41 = vmul.f32 %v2861_v25, %v2468_v29 }
 0x2b3   :  { %1383 = vmatpush2.msra.mxu0 %v1105_v42  ;;  %1310 = vmatpush2.msra.mxu1 %v1037_v43  ;;  %v723_v21 = vpop.permute.xlu1 %722  ;;  %v1022_v43 = vld [vmem:[%s3613_s2 + $0x138] sm:$0xff] }
 0x2b4   :  { %767 = vrot.lane.b32.xlu0 %v2539_v13, %s1951_s19  ;;  %1384 = vmatprep.subr.mxu0 %v1104_v44  ;;  %v737_v26 = vsel %vm736_vm3, %v735_v22, %v723_v21  ;;  %v1094_v44 = vld [vmem:[%s3613_s2 + $0x378] sm:$0xff] }
 0x2b5   :  { %1311 = vmatprep.subr.mxu1 %v1036_v45  ;;  %1385 = vmatpush2.msra.mxu0 %v1103_v46  ;;  %v2886_v39 = vrot.slane %v737_v26, %v2854_v19  ;;  %v749_v46 = vmul.f32 %v2861_v25, %v2466_v24  ;;  %v1020_v24 = vld [vmem:[%s3613_s2 + $0x128] sm:$0xff]  ;;  %v1085_v26 = vld [vmem:[%s3613_s2 + $0x330] sm:$0xff] }
 0x2b6   :  { %1312 = vmatpush2.msra.mxu1 %v1035_v47  ;;  %1386 = vmatprep.subr.mxu0 %v1102_v48 }
 0x2b7   :  { %1313 = vmatprep.subr.mxu1 %v1034_v49  ;;  %1387 = vmatpush2.msra.mxu0 %v1101_v50  ;;  %v751_v49 = vmul.f32 %v2861_v25, %v2470_v30  ;;  %v1021_v50 = vld [vmem:[%s3613_s2 + $0x130] sm:$0xff] }
 0x2b8   :  { %773 = vrot.lane.b32.xlu0 %v2539_v13, %s1952_s20  ;;  %1314 = vmatpush2.msra.mxu1 %v1033_v51  ;;  %v1093_v51 = vld [vmem:[%s3613_s2 + $0x370] sm:$0xff] }
 0x2b9   :  { %1388 = vmatprep.subr.mxu0 %v1100_v52  ;;  %1315 = vmatprep.subr.mxu1 %v1032_v53  ;;  %v746_v52 = vmul.f32 %v2886_v39, %v2448_v0  ;;  %v748_v53 = vmul.f32 %v2886_v39, %v2446_v63 }
 0x2ba   :  { %1389 = vmatpush2.msra.mxu0 %v1099_v54  ;;  %1316 = vmatpush2.msra.mxu1 %v1031_v55  ;;  %v1092_v54 = vld [vmem:[%s3613_s2 + $0x368] sm:$0xff]  ;;  %v1019_v55 = vld [vmem:[%s3613_s2 + $0x120] sm:$0xff] }
 0x2bb   :  { %1390 = vmatprep.subr.mxu0 %v1098_v56  ;;  %1317 = vmatprep.subr.mxu1 %v1030_v58  ;;  %v1091_v56 = vld [vmem:[%s3613_s2 + $0x360] sm:$0xff]  ;;  %v750_v58 = vmul.f32 %v2886_v39, %v2450_v3 }
 0x2bc   :  { %1318 = vmatpush2.msra.mxu1 %v1029_v59  ;;  %1391 = vmatpush2.msra.mxu0 %v1097_v32 }
 0x2bd   :  { %1319 = vmatprep.subr.mxu1 %v1028_v60  ;;  %1392 = vmatprep.subr.mxu0 %v1096_v36  ;;  %v1018_v60 = vld [vmem:[%s3613_s2 + $0x118] sm:$0xff] }
 0x2be   :  { %1320 = vmatpush2.msra.mxu1 %v1027_v61  ;;  %1393 = vmatpush2.msra.mxu0 %v1095_v38  ;;  %v1090_v61 = vld [vmem:[%s3613_s2 + $0x358] sm:$0xff] }
 0x2bf   :  { %1321 = vmatprep.subr.mxu1 %v1026_v62  ;;  %1394 = vmatprep.subr.mxu0 %v1094_v44  ;;  %v1017_v62 = vld [vmem:[%s3613_s2 + $0x110] sm:$0xff]  ;;  %v1082_v36 = vld [vmem:[%s3613_s2 + $0x318] sm:$0xff] }
 0x2c0   :  { %1322 = vmatpush2.msra.mxu1 %v1025_v31  ;;  %1395 = vmatpush2.msra.mxu0 %v1093_v51  ;;  %v1206_v51 = vld [vmem:[%s3613_s2 + $0x6f8] sm:$0xff] }
 0x2c1   :  { %1396 = vmatprep.subr.mxu0 %v1092_v54 }
 0x2c2   :  { %1397 = vmatpush2.msra.mxu0 %v1091_v56 }
 0x2c3   :  { %1398 = vmatprep.subr.mxu0 %v1090_v61 }
 0x2c4   :  { %1399 = vmatpush2.msra.mxu0 %v1089_v5 }
 0x2c5   :  { %1400 = vmatprep.subr.mxu0 %v1088_v7  ;;  %v1140_v7 = vld [vmem:[%s3613_s2 + $0x4e8] sm:$0xff] }
 0x2c6   :  { %1401 = vmatpush2.msra.mxu0 %v1087_v10  ;;  %v1139_v10 = vld [vmem:[%s3613_s2 + $0x4e0] sm:$0xff] }
 0x316   :  { %v756_v6 = vpop.permute.xlu0 %755  ;;  %v771_v45 = vpop.permute.xlu1 %770 }
 0x317   :  { %v776_v23 = vsel %vm725_vm8, %v756_v6, %v2539_v13  ;;  %v1024_v13 = vld [vmem:[%s3613_s2 + $0x148] sm:$0xff]  ;;  %vm3624_vm8 = vcmask 782336  }
 0x318   :  { %1323 = vmatprep.subr.mxu1 %v1024_v13  ;;  %v1016_v6 = vld [vmem:[%s3613_s2 + $0x108] sm:$0xff] }
 0x319   :  { %1324 = vmatpush2.msra.mxu1 %v1023_v37 }
 0x31a   :  { %v759_v11 = vpop.permute.xlu0 %758  ;;  %1325 = vmatprep.subr.mxu1 %v1022_v43  ;;  %v1081_v43 = vld [vmem:[%s3613_s2 + $0x310] sm:$0xff] }
 0x31b   :  { %v777_v27 = vsel %vm3620_vm10, %v776_v23, %v759_v11  ;;  %1326 = vmatpush2.msra.mxu1 %v1021_v50  ;;  %vm3626_vm10 = vcmask 785413   ;;  %v752_v50 = vmul.f32 %v2886_v39, %v2460_v12  ;;  %v753_v12 = vmul.f32 %v2861_v25, %v2476_v35 }
 0x31c   :  { %1327 = vmatprep.subr.mxu1 %v1020_v24  ;;  %vm3627_vm14 = vmmov %vm3626_vm10 }
 0x31d   :  { %1328 = vmatpush2.msra.mxu1 %v1019_v55 }
 0x31e   :  { %v762_v17 = vpop.permute.xlu0 %761  ;;  %1329 = vmatprep.subr.mxu1 %v1018_v60 }
 0x31f   :  { %v778_v28 = vsel %vm729_vm12, %v777_v27, %v762_v17  ;;  %1330 = vmatpush2.msra.mxu1 %v1017_v62  ;;  %vm3625_vm12 = vmmov %vm3624_vm8  ;;  %v1086_v17 = vld [vmem:[%s3613_s2 + $0x338] sm:$0xff] }
 0x320   :  { %1331 = vmatprep.subr.mxu1 %v1016_v6  ;;  %1402 = vmatprep.subr.mxu0 %v1086_v17  ;;  %v1136_v17 = vld [vmem:[%s3613_s2 + $0x4c8] sm:$0xff] }
 0x321   :  { %1332 = vmatpush2.msra.mxu1 %v1015_v8  ;;  %1403 = vmatpush2.msra.mxu0 %v1085_v26 }
 0x322   :  { %v765_v9 = vpop.permute.xlu0 %764  ;;  %1423 = vmatprep.subr.mxu1 %v1142_v18  ;;  %v1135_v18 = vld [vmem:[%s3613_s2 + $0x4c0] sm:$0xff] }
 0x323   :  { %v779_v33 = vsel %vm731_vm13, %v778_v28, %v765_v9  ;;  %v1084_v28 = vld [vmem:[%s3613_s2 + $0x328] sm:$0xff] }
 0x324   :  { %1404 = vmatprep.subr.mxu0 %v1084_v28 }
 0x326   :  { %v768_v34 = vpop.permute.xlu0 %767 }
 0x327   :  { %v780_v40 = vsel %vm733_vm2, %v779_v33, %v768_v34  ;;  %vm813_vm2 = vcmask 1040384   ;;  %v1083_v34 = vld [vmem:[%s3613_s2 + $0x320] sm:$0xff] }
 0x328   :  { %v2892_v42 = vrot.slane %v780_v40, %v2854_v19  ;;  %v781_v47 = vsel %vm340_vm7, %v780_v40, %v771_v45  ;;  %1405 = vmatpush2.msra.mxu0 %v1083_v34  ;;  %v1131_v34 = vld [vmem:[%s3613_s2 + $0x4a0] sm:$0xff] }
 0x329   :  { %1406 = vmatprep.subr.mxu0 %v1082_v36  ;;  %v1130_v36 = vld [vmem:[%s3613_s2 + $0x498] sm:$0xff] }
 0x32a   :  { %v792_v29 = vadd.f32 %v2892_v42, %v747_v41  ;;  %v774_v48 = vpop.permute.xlu0 %773  ;;  %v794_v0 = vadd.f32 %v2892_v42, %v749_v46  ;;  %v796_v59 = vadd.f32 %v2892_v42, %v751_v49  ;;  %v1080_v46 = vld [vmem:[%s3613_s2 + $0x308] sm:$0xff]  ;;  %1407 = vmatpush2.msra.mxu0 %v1081_v43  ;;  %v798_v55 = vadd.f32 %v2892_v42, %v753_v12  ;;  %v1129_v43 = vld [vmem:[%s3613_s2 + $0x490] sm:$0xff] }
 0x32b   :  { %v782_v30 = vsel %vm736_vm3, %v781_v47, %v774_v48  ;;  %vm861_vm3 = vcmask 1046528   ;;  %v1079_v47 = vld [vmem:[%s3613_s2 + $0x300] sm:$0xff]  ;;  %1408 = vmatprep.subr.mxu0 %v1080_v46  ;;  %v1128_v46 = vld [vmem:[%s3613_s2 + $0x488] sm:$0xff]  ;;  %v1197_v12 = vld [vmem:[%s3613_s2 + $0x6b0] sm:$0xff] }
 0x32c   :  { %v2930_v57 = vmax.f32 %v792_v29, 0.0  ;;  %v2933_v63 = vrot.slane %v782_v30, %v2854_v19  ;;  %v2968_v11 = vmax.f32 %v794_v0, 0.0  ;;  %v2983_v20 = vmax.f32 %v796_v59, 0.0  ;;  %1409 = vmatpush2.msra.mxu0 %v1079_v47  ;;  %v1199_v47 = vld [vmem:[%s3613_s2 + $0x6c0] sm:$0xff] }
 0x32d   :  { %1500 = vmatprep.subr.mxu0 %v1206_v51  ;;  %v1198_v51 = vld [vmem:[%s3613_s2 + $0x6b8] sm:$0xff] }
 0x32e   :  { %v854_v3 = vrot.slane %v2930_v57, 2  ;;  %808 = vst.msk [vmem:[#allocation3 + $0x8] sm:$0x1f] %vm3624_vm8, %v2930_v57  ;;  %v791_v1 = vadd.f32 %v2933_v63, %v746_v52  ;;  %v793_v2 = vadd.f32 %v2933_v63, %v748_v53  ;;  %v795_v4 = vadd.f32 %v2933_v63, %v750_v58 }
 0x32f   :  { %v817_v27 = vrot.slane %v2930_v57, 7  ;;  %vm875_vm8 = vcmask 779264   ;;  %v818_v32 = vrot.slane %v2968_v11, 7  ;;  %v866_v40 = vrot.slane %v2983_v20, 1 }
 0x330   :  { %858 = vst.msk [vmem:[#allocation3 + $0x40] sm:$0x1f] %vm3625_vm12, %v854_v3  ;;  %v2971_v14 = vmax.f32 %v791_v1, 0.0  ;;  %v2973_v15 = vmax.f32 %v793_v2, 0.0  ;;  %v2975_v16 = vmax.f32 %v795_v4, 0.0  ;;  %v865_v41 = vrot.slane %v2968_v11, 1 }
 0x331   :  { %v958_v45 = vrot.slane %v2983_v20, 3  ;;  %876 = vst.msk [vmem:[#allocation3 + $0x50] sm:$0x3] %vm875_vm8, %v866_v40  ;;  %v819_v48 = vsel %vm813_vm2, %v817_v27, %v818_v32  ;;  %vm903_vm12 = vcmask 1045504   ;;  %v797_v52 = vadd.f32 %v2933_v63, %v752_v50  ;;  %v1141_v4 = vld [vmem:[%s3613_s2 + $0x4f0] sm:$0xff]  ;;  %v1204_v32 = vld [vmem:[%s3613_s2 + $0x6e8] sm:$0xff] }
 0x332   :  { %807 = vst [vmem:[#allocation3] sm:$0x1f] %v2971_v14  ;;  %v853_v21 = vrot.slane %v2971_v14, 2  ;;  %879 = vrot.lane.b32.xlu0 %v2975_v16, %s1952_s20  ;;  %v957_v9 = vrot.slane %v2975_v16, 3  ;;  %v814_v22 = vrot.slane %v2971_v14, 7  ;;  %v815_v23 = vrot.slane %v2973_v15, 7 }
 0x333   :  { %v862_v13 = vrot.slane %v2973_v15, 1  ;;  %v863_v33 = vrot.slane %v2975_v16, 1  ;;  %v904_v37 = vrot.slane %v2973_v15, 2  ;;  %v905_v38 = vrot.slane %v2975_v16, 2  ;;  %962 = vst.msk [vmem:[#allocation3 + $0x40] sm:$0xe0] %vm3627_vm14, %v958_v45 }
 0x334   :  { %857 = vst [vmem:[#allocation3 + $0x38] sm:$0x1f] %v853_v21  ;;  %961 = vst [vmem:[#allocation3 + $0x80] ss:$-68 sps:$4 sm:$0xe3] %v957_v9   ;;  %v816_v31 = vsel %vm813_vm2, %v814_v22, %v815_v23  ;;  %v867_v29 = vsel %vm861_vm3, %v865_v41, %v866_v40  ;;  %v831_v24 = vrot.slane %v2971_v14, 1 }
 0x335   :  { %820 = vrot.lane.b32.xlu1 %v816_v31, %s1952_s20  ;;  %v864_v44 = vsel %vm861_vm3, %v862_v13, %v863_v33  ;;  %874 = vst [vmem:[#allocation3 + $0x48] sm:$0x3] %v863_v33  ;;  %873 = vst.msk [vmem:[#allocation3 + $0x8] sm:$0xe0] %vm3626_vm10, %v867_v29  ;;  %v906_v49 = vsel %vm903_vm12, %v904_v37, %v905_v38  ;;  %v832_v53 = vrot.slane %v2930_v57, 1  ;;  %v805_v39 = vmax.f32 %v797_v52, 0.0 }
 0x336   :  { %881 = vrot.lane.b32.xlu0 %v2983_v20, %s1952_s20  ;;  %872 = vst [vmem:[#allocation3] sm:$0xe0] %v864_v44  ;;  %964 = vst.msk [vmem:[#allocation3 + $0x88] sm:$0x3] %vm875_vm8, %v958_v45  ;;  %v907_v30 = vrot.slane %v2968_v11, 2  ;;  %v908_v54 = vrot.slane %v2983_v20, 2 }
 0x337   :  { %v934_v56 = vrot.slane %v805_v39, 1  ;;  %v806_v57 = vmax.f32 %v798_v55, 0.0  ;;  %v1134_v20 = vld [vmem:[%s3613_s2 + $0x4b8] sm:$0xff]  ;;  %v1133_v22 = vld [vmem:[%s3613_s2 + $0x4b0] sm:$0xff]  ;;  %v1132_v31 = vld [vmem:[%s3613_s2 + $0x4a8] sm:$0xff] }
 0x338   :  { %v909_v0 = vsel %vm903_vm12, %v907_v30, %v908_v54  ;;  %v1205_v23 = vld [vmem:[%s3613_s2 + $0x6f0] sm:$0xff]  ;;  %v1200_v29 = vld [vmem:[%s3613_s2 + $0x6c8] sm:$0xff]  ;;  %v1126_v50 = vld [vmem:[%s3613_s2 + $0x478] sm:$0xff] }
 0x339   :  { %822 = vrot.lane.b32.xlu1 %v819_v48, %s1952_s20  ;;  %v935_v35 = vsel %vm861_vm3, %v863_v33, %v934_v56  ;;  %v936_v25 = vrot.slane %v806_v57, 1  ;;  %v1203_v33 = vld [vmem:[%s3613_s2 + $0x6e0] sm:$0xff]  ;;  %v1201_v44 = vld [vmem:[%s3613_s2 + $0x6d0] sm:$0xff]  ;;  %v1124_v30 = vld [vmem:[%s3613_s2 + $0x468] sm:$0xff] }
 0x33a   :  { %910 = vrot.lane.b32.xlu0 %v906_v49, %s1951_s19  ;;  %v1127_v48 = vld [vmem:[%s3613_s2 + $0x480] sm:$0xff] }
 0x33b   :  { %v937_v42 = vsel %vm861_vm3, %v866_v40, %v936_v25  ;;  %v1202_v40 = vld [vmem:[%s3613_s2 + $0x6d8] sm:$0xff]  ;;  %v1195_v55 = vld [vmem:[%s3613_s2 + $0x6a0] sm:$0xff]  ;;  %vm1654_vm3 = vcmask 1041408  }
 0x33c   :  { %v974_v45 = vld [vmem:[#allocation3 + $0x48] sm:$0x3] }
 0x33d   :  { %833 = vrot.lane.b32.xlu1 %v831_v24, %s1951_s19  ;;  %v965_v6 = vld [vmem:[#allocation3] sm:$0xff] }
 0x33e   :  { %835 = vrot.lane.b32.xlu0 %v832_v53, %s1951_s19  ;;  %v1125_v53 = vld [vmem:[%s3613_s2 + $0x470] sm:$0xff] }
 0x341   :  { %883 = vrot.lane.b32.xlu1 %v805_v39, %s1952_s20 }
 0x342   :  { %844 = vrot.lane.b32.xlu0 %v2973_v15, %s1953_s17  ;;  %v1137_v15 = vld [vmem:[%s3613_s2 + $0x4d0] sm:$0xff] }
 0x345   :  { %912 = vrot.lane.b32.xlu1 %v909_v0, %s1951_s19 }
 0x346   :  { %885 = vrot.lane.b32.xlu0 %v806_v57, %s1952_s20  ;;  %v1122_v57 = vld [vmem:[%s3613_s2 + $0x458] sm:$0xff] }
 0x349   :  { %938 = vrot.lane.b32.xlu1 %v935_v35, %s1953_s17 }
 0x34a   :  { %916 = vrot.lane.b32.xlu0 %v908_v54, %s1951_s19  ;;  %v1196_v54 = vld [vmem:[%s3613_s2 + $0x6a8] sm:$0xff] }
 0x34d   :  { %914 = vrot.lane.b32.xlu1 %v905_v38, %s1951_s19 }
 0x34e   :  { %846 = vrot.lane.b32.xlu0 %v2968_v11, %s1953_s17  ;;  %v1138_v11 = vld [vmem:[%s3613_s2 + $0x4d8] sm:$0xff] }
 0x351   :  { %942 = vrot.lane.b32.xlu1 %v934_v56, %s1953_s17  ;;  %v1123_v56 = vld [vmem:[%s3613_s2 + $0x460] sm:$0xff] }
 0x352   :  { %944 = vrot.lane.b32.xlu0 %v936_v25, %s1953_s17 }
 0x355   :  { %940 = vrot.lane.b32.xlu1 %v937_v42, %s1953_s17  ;;  %v1194_v42 = vld [vmem:[%s3613_s2 + $0x698] sm:$0xff] }
 0x3a4   :  { %v880_v63 = vpop.permute.xlu0 %879 }
 0x3a5   :  { %895 = vst.msk [vmem:[#allocation3 + $0x8] sm:$0xe0] %vm136_vm0, %v880_v63  ;;  %vm932_vm0 = vcmask 254976  }
 0x3a7   :  { %v821_v58 = vpop.permute.xlu1 %820 }
 0x3a8   :  { %828 = vst.msk [vmem:[#allocation3 + $0x8] sm:$0x1f] %vm126_vm4, %v821_v58  ;;  %v882_v59 = vpop.permute.xlu0 %881  ;;  %vm3628_vm4 = vcmask 258048  }
 0x3a9   :  { %v887_v60 = vsel %vm340_vm7, %v880_v63, %v882_v59  ;;  %897 = vst.msk [vmem:[#allocation3 + $0x18] sm:$0xe0] %vm138_vm1, %v882_v59  ;;  %vm3629_vm1 = vcmask 1047813   ;;  %v1121_v63 = vld [vmem:[%s3613_s2 + $0x450] sm:$0xff] }
 0x3aa   :  { %896 = vst [vmem:[#allocation3 + $0x10] sm:$0xe0] %v887_v60  ;;  %v1193_v59 = vld [vmem:[%s3613_s2 + $0x690] sm:$0xff]  ;;  %v1120_v60 = vld [vmem:[%s3613_s2 + $0x448] sm:$0xff] }
 0x3ab   :  { %v823_v61 = vpop.permute.xlu1 %822 }
 0x3ac   :  { %v824_v62 = vsel %vm340_vm7, %v821_v58, %v823_v61  ;;  %830 = vst.msk [vmem:[#allocation3 + $0x18] sm:$0x1f] %vm128_vm6, %v823_v61  ;;  %v911_v3 = vpop.permute.xlu0 %910  ;;  %vm898_vm6 = vcmask 1042176   ;;  %v1192_v61 = vld [vmem:[%s3613_s2 + $0x688] sm:$0xff] }
 0x3ad   :  { %829 = vst [vmem:[#allocation3 + $0x10] sm:$0x1f] %v824_v62  ;;  %926 = vst.msk [vmem:[#allocation3 + $0x18] sm:$0xe0] %vm164_vm5, %v911_v3  ;;  %vm3630_vm5 = vcmask 261120   ;;  %v1119_v62 = vld [vmem:[%s3613_s2 + $0x440] sm:$0xff] }
 0x3ae   :  { %vm3631_vm14 = vmmov %vm3630_vm5 }
 0x3af   :  { %v834_v1 = vpop.permute.xlu1 %833  ;;  %v966_v2 = vld [vmem:[#allocation3 + $0x8] sm:$0xff]  ;;  %vm3632_vm10 = vmmov %vm3630_vm5 }
 0x3b0   :  { %841 = vst.msk [vmem:[#allocation3 + $0x18] sm:$0x1f] %vm154_vm15, %v834_v1  ;;  %v836_v5 = vpop.permute.xlu0 %835  ;;  %1333 = vmatprep.mubr.f32.mxu1 %v966_v2  ;;  %vm901_vm15 = vcmask 517120   ;;  %vm3633_vm8 = vmmov %vm3630_vm5 }
 0x3b1   :  { %v837_v8 = vsel %vm731_vm13, %v834_v1, %v836_v5  ;;  %843 = vst.msk [vmem:[#allocation3 + $0x28] sm:$0x1f] %vm3628_vm4, %v836_v5  ;;  %1334 = vmatmul.mubr.f32.vlgmr.msra.gmra.mxu1 %v965_v6  ;;  %v1118_v5 = vld [vmem:[%s3613_s2 + $0x438] sm:$0xff]  ;;  %vm3634_vm12 = vmmov %vm3630_vm5 }
 0x3b2   :  { %842 = vst [vmem:[#allocation3 + $0x20] sm:$0x1f] %v837_v8  ;;  %1424 = vmatpush1.msra.mxu1 %v1141_v4  ;;  %v1190_v6 = vld [vmem:[%s3613_s2 + $0x678] sm:$0xff]  ;;  %v1189_v8 = vld [vmem:[%s3613_s2 + $0x670] sm:$0xff]  ;;  %vm3635_vm4 = vmmov %vm3630_vm5 }
 0x3b3   :  { %1425 = vmatprep.subr.mxu1 %v1140_v7  ;;  %v884_v14 = vpop.permute.xlu1 %883  ;;  %v1117_v7 = vld [vmem:[%s3613_s2 + $0x430] sm:$0xff] }
 0x3b4   :  { %899 = vst.msk [vmem:[#allocation3 + $0x50] sm:$0x3] %vm898_vm6, %v884_v14  ;;  %1426 = vmatpush1.msra.mxu1 %v1139_v10  ;;  %v3092_v16 = vpop.permute.xlu0 %844  ;;  %v967_v28 = vld [vmem:[#allocation3 + $0x10] sm:$0xff]  ;;  %v1116_v10 = vld [vmem:[%s3613_s2 + $0x428] sm:$0xff]  ;;  %vm3636_vm6 = vmmov %vm3635_vm4 }
 0x3b5   :  { %851 = vst.msk [vmem:[#allocation3 + $0x28] sm:$0x1f] %vm180_vm9, %v3092_v16  ;;  %1427 = vmatprep.subr.mxu1 %v1138_v11  ;;  %vm929_vm9 = vcmask 1041920  }
 0x3b6   :  { %1428 = vmatpush1.msra.mxu1 %v1137_v15  ;;  %v1115_v15 = vld [vmem:[%s3613_s2 + $0x420] sm:$0xff] }
 0x3b7   :  { %1429 = vmatprep.subr.mxu1 %v1136_v17  ;;  %v913_v21 = vpop.permute.xlu1 %912  ;;  %v968_v9 = vld [vmem:[#allocation3 + $0x18] sm:$0xff] }
 0x3b8   :  { %v918_v26 = vsel %vm731_vm13, %v911_v3, %v913_v21  ;;  %928 = vst.msk [vmem:[#allocation3 + $0x28] sm:$0xe0] %vm166_vm11, %v913_v21  ;;  %1430 = vmatpush1.msra.mxu1 %v1135_v18  ;;  %v886_v27 = vpop.permute.xlu0 %885  ;;  %1410 = vmatprep.mubr.f32.mxu0 %v968_v9  ;;  %vm954_vm11 = vcmask 1041664   ;;  %v1191_v3 = vld [vmem:[%s3613_s2 + $0x680] sm:$0xff]  ;;  %v972_v17 = vld [vmem:[#allocation3 + $0x38] sm:$0xff]  ;;  %v1113_v21 = vld [vmem:[%s3613_s2 + $0x410] sm:$0xff] }
 0x3b9   :  { %927 = vst [vmem:[#allocation3 + $0x20] sm:$0xe0] %v918_v26  ;;  %v888_v13 = vsel %vm340_vm7, %v884_v14, %v886_v27  ;;  %902 = vst.msk [vmem:[#allocation3 + $0x60] sm:$0x3] %vm901_vm15, %v886_v27  ;;  %1431 = vmatprep.subr.mxu1 %v1134_v20  ;;  %1411 = vmatmul.mubr.f32.vlgmr.msra.gmra.mxu0 %v967_v28  ;;  %v1188_v14 = vld [vmem:[%s3613_s2 + $0x668] sm:$0xff]  ;;  %v1114_v18 = vld [vmem:[%s3613_s2 + $0x418] sm:$0xff] }
 0x3ba   :  { %900 = vst [vmem:[#allocation3 + $0x58] sm:$0x3] %v888_v13  ;;  %1432 = vmatpush1.msra.mxu1 %v1133_v22  ;;  %1501 = vmatpush1.msra.mxu0 %v1205_v23  ;;  %v1186_v20 = vld [vmem:[%s3613_s2 + $0x658] sm:$0xff]  ;;  %v1185_v9 = vld [vmem:[%s3613_s2 + $0x650] sm:$0xff]  ;;  %v1112_v22 = vld [vmem:[%s3613_s2 + $0x408] sm:$0xff]  ;;  %vm1875_vm15 = vcmask 25600  }
 0x3bb   :  { %1433 = vmatprep.subr.mxu1 %v1132_v31  ;;  %1502 = vmatprep.subr.mxu0 %v1204_v32  ;;  %v3130_v37 = vpop.permute.xlu1 %938  ;;  %v975_v38 = vld [vmem:[#allocation3 + $0x50] sm:$0x3]  ;;  %v1184_v23 = vld [vmem:[%s3613_s2 + $0x648] sm:$0xff]  ;;  %v1111_v26 = vld [vmem:[%s3613_s2 + $0x400] sm:$0xff] }
 0x3bc   :  { %1503 = vmatpush1.msra.mxu0 %v1203_v33  ;;  %952 = vst.msk [vmem:[#allocation3 + $0x28] sm:$0xe0] %vm3629_vm1, %v3130_v37  ;;  %1434 = vmatpush1.msra.mxu1 %v1131_v34  ;;  %v917_v41 = vpop.permute.xlu0 %916  ;;  %v1183_v27 = vld [vmem:[%s3613_s2 + $0x640] sm:$0xff]  ;;  %v1174_v28 = vld [vmem:[%s3613_s2 + $0x5f8] sm:$0xff]  ;;  %v1173_v32 = vld [vmem:[%s3613_s2 + $0x5f0] sm:$0xff] }
 0x3bd   :  { %933 = vst.msk [vmem:[#allocation3 + $0x70] sm:$0x3] %vm932_vm0, %v917_v41  ;;  %1339 = vmatprep.mubr.f32.mxu1 %v975_v38  ;;  %1435 = vmatprep.subr.mxu1 %v1130_v36  ;;  %v1182_v31 = vld [vmem:[%s3613_s2 + $0x638] sm:$0xff]  ;;  %v1181_v13 = vld [vmem:[%s3613_s2 + $0x630] sm:$0xff]  ;;  %v1172_v33 = vld [vmem:[%s3613_s2 + $0x5e8] sm:$0xff] }
 0x3be   :  { %1504 = vmatprep.subr.mxu0 %v1202_v40  ;;  %1340 = vmatmul.mubr.f32.gmra.mxu1 %v974_v45  ;;  %v1180_v34 = vld [vmem:[%s3613_s2 + $0x628] sm:$0xff]  ;;  %v1171_v36 = vld [vmem:[%s3613_s2 + $0x5e0] sm:$0xff]  ;;  %v1170_v38 = vld [vmem:[%s3613_s2 + $0x5d8] sm:$0xff] }
 0x3bf   :  { %1436 = vmatpush1.msra.mxu1 %v1129_v43  ;;  %1505 = vmatpush1.msra.mxu0 %v1201_v44  ;;  %v915_v49 = vpop.permute.xlu1 %914  ;;  %v1178_v40 = vld [vmem:[%s3613_s2 + $0x618] sm:$0xff]  ;;  %v1177_v43 = vld [vmem:[%s3613_s2 + $0x610] sm:$0xff]  ;;  %v1168_v44 = vld [vmem:[%s3613_s2 + $0x5c8] sm:$0xff] }
 0x3c0   :  { %1437 = vmatprep.subr.mxu1 %v1128_v46  ;;  %1506 = vmatprep.subr.mxu0 %v1200_v29  ;;  %v919_v24 = vsel %vm731_vm13, %v915_v49, %v917_v41  ;;  %930 = vst.msk [vmem:[#allocation3 + $0x60] sm:$0x3] %vm929_vm9, %v915_v49  ;;  %v847_v52 = vpop.permute.xlu0 %846  ;;  %v1169_v41 = vld [vmem:[%s3613_s2 + $0x5d0] sm:$0xff]  ;;  %v1176_v45 = vld [vmem:[%s3613_s2 + $0x608] sm:$0xff]  ;;  %v1167_v46 = vld [vmem:[%s3613_s2 + $0x5c0] sm:$0xff] }
 0x3c1   :  { %1507 = vmatpush1.msra.mxu0 %v1199_v47  ;;  %931 = vst [vmem:[#allocation3 + $0x68] sm:$0x3] %v919_v24  ;;  %1438 = vmatpush1.msra.mxu1 %v1127_v48  ;;  %v848_v39 = vsel %vm3630_vm5, %v3092_v16, %v847_v52  ;;  %v976_v11 = vld [vmem:[#allocation3 + $0x58] sm:$0x3]  ;;  %v1187_v16 = vld [vmem:[%s3613_s2 + $0x660] sm:$0xff]  ;;  %v1165_v49 = vld [vmem:[%s3613_s2 + $0x5b0] sm:$0xff] }
 0x3c2   :  { %852 = vst [vmem:[#allocation3 + $0x30] sm:$0x1f] %v848_v39  ;;  %1439 = vmatprep.subr.mxu1 %v1126_v50  ;;  %1508 = vmatprep.subr.mxu0 %v1198_v51  ;;  %v1175_v29 = vld [vmem:[%s3613_s2 + $0x600] sm:$0xff]  ;;  %v1166_v47 = vld [vmem:[%s3613_s2 + $0x5b8] sm:$0xff]  ;;  %v1237_v50 = vld [vmem:[%s3613_s2 + $0x7f0] sm:$0xff] }
 0x3c3   :  { %1440 = vmatpush1.msra.mxu1 %v1125_v53  ;;  %1509 = vmatpush1.msra.mxu0 %v1197_v12  ;;  %v943_v0 = vpop.permute.xlu1 %942  ;;  %v970_v35 = vld [vmem:[#allocation3 + $0x28] sm:$0xff]  ;;  %v1238_v48 = vld [vmem:[%s3613_s2 + $0x7f8] sm:$0xff]  ;;  %v1163_v52 = vld [vmem:[%s3613_s2 + $0x5a0] sm:$0xff] }
 0x3c4   :  { %1441 = vmatprep.subr.mxu1 %v1124_v30  ;;  %1510 = vmatprep.subr.mxu0 %v1196_v54  ;;  %955 = vst.msk [vmem:[#allocation3 + $0x70] sm:$0x3] %vm954_vm11, %v943_v0  ;;  %v945_v25 = vpop.permute.xlu0 %944  ;;  %v1164_v51 = vld [vmem:[%s3613_s2 + $0x5a8] sm:$0xff]  ;;  %v1235_v53 = vld [vmem:[%s3613_s2 + $0x7e0] sm:$0xff]  ;;  %v1162_v12 = vld [vmem:[%s3613_s2 + $0x598] sm:$0xff] }
 0x3c5   :  { %1511 = vmatpush1.msra.mxu0 %v1195_v55  ;;  %1442 = vmatpush1.msra.mxu1 %v1123_v56  ;;  %v947_v58 = vsel %vm3631_vm14, %v943_v0, %v945_v25  ;;  %v1236_v24 = vld [vmem:[%s3613_s2 + $0x7e8] sm:$0xff]  ;;  %v1234_v39 = vld [vmem:[%s3613_s2 + $0x7d8] sm:$0xff]  ;;  %v1161_v30 = vld [vmem:[%s3613_s2 + $0x590] sm:$0xff] }
 0x3c6   :  { %956 = vst [vmem:[#allocation3 + $0x78] sm:$0x3] %v947_v58  ;;  %1443 = vmatprep.subr.mxu1 %v1122_v57  ;;  %1487 = vmatprep.mubr.f32.mxu1 %v970_v35  ;;  %v1233_v54 = vld [vmem:[%s3613_s2 + $0x7d0] sm:$0xff]  ;;  %v1160_v55 = vld [vmem:[%s3613_s2 + $0x588] sm:$0xff]  ;;  %v1159_v0 = vld [vmem:[%s3613_s2 + $0x580] sm:$0xff] }
 0x3c7   :  { %1512 = vmatprep.subr.mxu0 %v1194_v42  ;;  %1444 = vmatpush1.msra.mxu1 %v1121_v63  ;;  %v941_v1 = vpop.permute.xlu1 %940  ;;  %v977_v2 = vld [vmem:[#allocation3 + $0x60] sm:$0x3]  ;;  %v1232_v56 = vld [vmem:[%s3613_s2 + $0x7c8] sm:$0xff]  ;;  %v1158_v35 = vld [vmem:[%s3613_s2 + $0x578] sm:$0xff] }
 0x3c8   :  { %1513 = vmatpush1.msra.mxu0 %v1193_v59  ;;  %1445 = vmatprep.subr.mxu1 %v1120_v60  ;;  %v946_v4 = vsel %vm3632_vm10, %v3130_v37, %v941_v1  ;;  %v1179_v37 = vld [vmem:[%s3613_s2 + $0x620] sm:$0xff]  ;;  %v1230_v25 = vld [vmem:[%s3613_s2 + $0x7b8] sm:$0xff]  ;;  %v1157_v42 = vld [vmem:[%s3613_s2 + $0x570] sm:$0xff] }
 0x3c9   :  { %1514 = vmatprep.subr.mxu0 %v1192_v61  ;;  %953 = vst [vmem:[#allocation3 + $0x30] sm:$0xe0] %v946_v4  ;;  %1446 = vmatpush1.msra.mxu1 %v1119_v62  ;;  %v1231_v57 = vld [vmem:[%s3613_s2 + $0x7c0] sm:$0xff]  ;;  %v1229_v63 = vld [vmem:[%s3613_s2 + $0x7b0] sm:$0xff]  ;;  %v1156_v58 = vld [vmem:[%s3613_s2 + $0x568] sm:$0xff] }
 0x3ca   :  { %1515 = vmatpush1.msra.mxu0 %v1191_v3  ;;  %1416 = vmatprep.mubr.f32.mxu0 %v977_v2  ;;  %v1228_v59 = vld [vmem:[%s3613_s2 + $0x7a8] sm:$0xff]  ;;  %v1155_v60 = vld [vmem:[%s3613_s2 + $0x560] sm:$0xff]  ;;  %v1154_v62 = vld [vmem:[%s3613_s2 + $0x558] sm:$0xff] }
 0x3cb   :  { %1447 = vmatprep.subr.mxu1 %v1118_v5  ;;  %1516 = vmatprep.subr.mxu0 %v1190_v6  ;;  %v1227_v61 = vld [vmem:[%s3613_s2 + $0x7a0] sm:$0xff]  ;;  %v1226_v3 = vld [vmem:[%s3613_s2 + $0x798] sm:$0xff]  ;;  %v1153_v1 = vld [vmem:[%s3613_s2 + $0x550] sm:$0xff] }
 0x3cc   :  { %1417 = vmatmul.mubr.f32.gmra.mxu0 %v976_v11  ;;  %1448 = vmatpush1.msra.mxu1 %v1117_v7  ;;  %v1225_v2 = vld [vmem:[%s3613_s2 + $0x790] sm:$0xff]  ;;  %v1152_v4 = vld [vmem:[%s3613_s2 + $0x548] sm:$0xff]  ;;  %v1151_v6 = vld [vmem:[%s3613_s2 + $0x540] sm:$0xff] }
 0x3cd   :  { %1517 = vmatpush1.msra.mxu0 %v1189_v8  ;;  %1449 = vmatprep.subr.mxu1 %v1116_v10  ;;  %v1224_v5 = vld [vmem:[%s3613_s2 + $0x788] sm:$0xff]  ;;  %v1223_v7 = vld [vmem:[%s3613_s2 + $0x780] sm:$0xff]  ;;  %v1150_v8 = vld [vmem:[%s3613_s2 + $0x538] sm:$0xff] }
 0x3ce   :  { %1518 = vmatprep.subr.mxu0 %v1188_v14  ;;  %1564 = vmatprep.mubr.f32.mxu0 %v972_v17  ;;  %v1222_v10 = vld [vmem:[%s3613_s2 + $0x778] sm:$0xff]  ;;  %v1149_v11 = vld [vmem:[%s3613_s2 + $0x530] sm:$0xff]  ;;  %v1147_v17 = vld [vmem:[%s3613_s2 + $0x520] sm:$0xff] }
 0x3cf   :  { %1450 = vmatpush1.msra.mxu1 %v1115_v15  ;;  %1519 = vmatpush1.msra.mxu0 %v1187_v16  ;;  %v1221_v14 = vld [vmem:[%s3613_s2 + $0x770] sm:$0xff]  ;;  %v1148_v15 = vld [vmem:[%s3613_s2 + $0x528] sm:$0xff] }
 0x3d0   :  { %1451 = vmatprep.subr.mxu1 %v1114_v18  ;;  %1520 = vmatprep.subr.mxu0 %v1186_v20  ;;  %v1220_v16 = vld [vmem:[%s3613_s2 + $0x768] sm:$0xff]  ;;  %v1219_v18 = vld [vmem:[%s3613_s2 + $0x760] sm:$0xff]  ;;  %v1146_v20 = vld [vmem:[%s3613_s2 + $0x518] sm:$0xff] }
 0x3d1   :  { %1452 = vmatpush1.msra.mxu1 %v1113_v21  ;;  %1521 = vmatpush1.msra.mxu0 %v1185_v9  ;;  %v1218_v21 = vld [vmem:[%s3613_s2 + $0x758] sm:$0xff]  ;;  %v1145_v9 = vld [vmem:[%s3613_s2 + $0x510] sm:$0xff] }
 0x3d2   :  { %1453 = vmatprep.subr.mxu1 %v1112_v22  ;;  %1522 = vmatprep.subr.mxu0 %v1184_v23  ;;  %v1217_v22 = vld [vmem:[%s3613_s2 + $0x750] sm:$0xff]  ;;  %v1144_v23 = vld [vmem:[%s3613_s2 + $0x508] sm:$0xff] }
 0x3d3   :  { %1454 = vmatpush1.msra.mxu1 %v1111_v26  ;;  %1523 = vmatpush1.msra.mxu0 %v1183_v27  ;;  %v1216_v26 = vld [vmem:[%s3613_s2 + $0x748] sm:$0xff]  ;;  %v1143_v27 = vld [vmem:[%s3613_s2 + $0x500] sm:$0xff] }
 0x3d4   :  { %1455 = vmatprep.subr.mxu1 %v1174_v28  ;;  %1524 = vmatprep.subr.mxu0 %v1182_v31  ;;  %v1215_v28 = vld [vmem:[%s3613_s2 + $0x740] sm:$0xff]  ;;  %v1214_v31 = vld [vmem:[%s3613_s2 + $0x738] sm:$0xff] }
 0x3d5   :  { %1456 = vmatpush2.msra.mxu1 %v1173_v32  ;;  %1525 = vmatpush1.msra.mxu0 %v1181_v13  ;;  %v1262_v32 = vld [vmem:[%s3613_s2 + $0x8b8] sm:$0xff]  ;;  %v969_v13 = vld [vmem:[#allocation3 + $0x20] sm:$0xff] }
 0x3d6   :  { %1457 = vmatprep.subr.mxu1 %v1172_v33  ;;  %1526 = vmatprep.subr.mxu0 %v1180_v34  ;;  %v1213_v33 = vld [vmem:[%s3613_s2 + $0x730] sm:$0xff] }
 0x3d7   :  { %1458 = vmatpush2.msra.mxu1 %v1171_v36  ;;  %1527 = vmatpush1.msra.mxu0 %v1179_v37  ;;  %v1261_v34 = vld [vmem:[%s3613_s2 + $0x8b0] sm:$0xff]  ;;  %v1212_v37 = vld [vmem:[%s3613_s2 + $0x728] sm:$0xff] }
 0x3d8   :  { %1459 = vmatprep.subr.mxu1 %v1170_v38  ;;  %1528 = vmatprep.subr.mxu0 %v1178_v40  ;;  %v979_v36 = vld [vmem:[#allocation3 + $0x70] sm:$0x3]  ;;  %v1260_v38 = vld [vmem:[%s3613_s2 + $0x8a8] sm:$0xff]  ;;  %v1211_v40 = vld [vmem:[%s3613_s2 + $0x720] sm:$0xff] }
 0x3d9   :  { %1460 = vmatpush2.msra.mxu1 %v1169_v41  ;;  %1529 = vmatpush1.msra.mxu0 %v1177_v43  ;;  %v1259_v41 = vld [vmem:[%s3613_s2 + $0x8a0] sm:$0xff]  ;;  %v1210_v43 = vld [vmem:[%s3613_s2 + $0x718] sm:$0xff] }
 0x3da   :  { %1461 = vmatprep.subr.mxu1 %v1168_v44  ;;  %1530 = vmatprep.subr.mxu0 %v1176_v45  ;;  %v1258_v44 = vld [vmem:[%s3613_s2 + $0x898] sm:$0xff]  ;;  %v1209_v45 = vld [vmem:[%s3613_s2 + $0x710] sm:$0xff] }
 0x3db   :  { %1462 = vmatpush2.msra.mxu1 %v1167_v46  ;;  %1531 = vmatpush1.msra.mxu0 %v1175_v29  ;;  %v978_v46 = vld [vmem:[#allocation3 + $0x68] sm:$0x3]  ;;  %v1257_v29 = vld [vmem:[%s3613_s2 + $0x890] sm:$0xff] }
 0x3dc   :  { %1463 = vmatprep.subr.mxu1 %v1166_v47  ;;  %1532 = vmatprep.subr.mxu0 %v1238_v48  ;;  %v1208_v47 = vld [vmem:[%s3613_s2 + $0x708] sm:$0xff] }
 0x3dd   :  { %1464 = vmatpush2.msra.mxu1 %v1165_v49  ;;  %1533 = vmatpush2.msra.mxu0 %v1237_v50  ;;  %v1256_v48 = vld [vmem:[%s3613_s2 + $0x888] sm:$0xff]  ;;  %v1207_v49 = vld [vmem:[%s3613_s2 + $0x700] sm:$0xff] }
 0x3de   :  { %1465 = vmatprep.subr.mxu1 %v1164_v51  ;;  %1534 = vmatprep.subr.mxu0 %v1236_v24  ;;  %v1255_v50 = vld [vmem:[%s3613_s2 + $0x880] sm:$0xff]  ;;  %v1254_v51 = vld [vmem:[%s3613_s2 + $0x878] sm:$0xff]  ;;  %v971_v24 = vld [vmem:[#allocation3 + $0x30] sm:$0xff] }
 0x3df   :  { %1466 = vmatpush2.msra.mxu1 %v1163_v52  ;;  %1535 = vmatpush2.msra.mxu0 %v1235_v53  ;;  %v1253_v52 = vld [vmem:[%s3613_s2 + $0x870] sm:$0xff]  ;;  %v981_v53 = vld [vmem:[#allocation3 + $0x80] sm:$0x3] }
 0x3e0   :  { %1467 = vmatprep.subr.mxu1 %v1162_v12  ;;  %1536 = vmatprep.subr.mxu0 %v1234_v39  ;;  %v1252_v12 = vld [vmem:[%s3613_s2 + $0x868] sm:$0xff]  ;;  %v1251_v39 = vld [vmem:[%s3613_s2 + $0x860] sm:$0xff] }
 0x3e1   :  { %1468 = vmatpush2.msra.mxu1 %v1161_v30  ;;  %1537 = vmatpush2.msra.mxu0 %v1233_v54  ;;  %v1250_v30 = vld [vmem:[%s3613_s2 + $0x858] sm:$0xff]  ;;  %v1958_v54 = vmov 0.0  }
 0x3e2   :  { %1469 = vmatprep.subr.mxu1 %v1160_v55  ;;  %1538 = vmatprep.subr.mxu0 %v1232_v56  ;;  %v980_v55 = vld [vmem:[#allocation3 + $0x78] sm:$0x3]  ;;  %v1249_v56 = vld [vmem:[%s3613_s2 + $0x850] sm:$0xff] }
 0x3e3   :  { %1470 = vmatpush2.msra.mxu1 %v1159_v0  ;;  %1539 = vmatpush2.msra.mxu0 %v1231_v57  ;;  %v1248_v0 = vld [vmem:[%s3613_s2 + $0x848] sm:$0xff]  ;;  %v1247_v57 = vld [vmem:[%s3613_s2 + $0x840] sm:$0xff] }
 0x3e4   :  { %1471 = vmatprep.subr.mxu1 %v1158_v35  ;;  %1540 = vmatprep.subr.mxu0 %v1230_v25  ;;  %v1246_v35 = vld [vmem:[%s3613_s2 + $0x838] sm:$0xff]  ;;  %v1245_v25 = vld [vmem:[%s3613_s2 + $0x830] sm:$0xff] }
 0x3e5   :  { %1472 = vmatpush2.msra.mxu1 %v1157_v42  ;;  %1541 = vmatpush2.msra.mxu0 %v1229_v63  ;;  %v1244_v42 = vld [vmem:[%s3613_s2 + $0x828] sm:$0xff]  ;;  %v1243_v63 = vld [vmem:[%s3613_s2 + $0x820] sm:$0xff] }
 0x3e6   :  { %1473 = vmatprep.subr.mxu1 %v1156_v58  ;;  %1542 = vmatprep.subr.mxu0 %v1228_v59  ;;  %v1242_v58 = vld [vmem:[%s3613_s2 + $0x818] sm:$0xff]  ;;  %v1241_v59 = vld [vmem:[%s3613_s2 + $0x810] sm:$0xff] }
 0x3e7   :  { %1474 = vmatpush2.msra.mxu1 %v1155_v60  ;;  %1543 = vmatpush2.msra.mxu0 %v1227_v61  ;;  %v1240_v60 = vld [vmem:[%s3613_s2 + $0x808] sm:$0xff]  ;;  %v1239_v61 = vld [vmem:[%s3613_s2 + $0x800] sm:$0xff] }
 0x3e8   :  { %1475 = vmatprep.subr.mxu1 %v1154_v62  ;;  %1544 = vmatprep.subr.mxu0 %v1226_v3  ;;  %v973_v62 = vld [vmem:[#allocation3 + $0x40] sm:$0xff]  ;;  %v982_v3 = vld [vmem:[#allocation3 + $0x88] sm:$0x3] }
 0x3e9   :  { %1476 = vmatpush2.msra.mxu1 %v1153_v1  ;;  %1545 = vmatpush2.msra.mxu0 %v1225_v2 }
 0x3ea   :  { %1477 = vmatprep.subr.mxu1 %v1152_v4  ;;  %1546 = vmatprep.subr.mxu0 %v1224_v5 }
 0x3eb   :  { %1478 = vmatpush2.msra.mxu1 %v1151_v6  ;;  %1547 = vmatpush2.msra.mxu0 %v1223_v7 }
 0x3ec   :  { %1479 = vmatprep.subr.mxu1 %v1150_v8  ;;  %1548 = vmatprep.subr.mxu0 %v1222_v10 }
 0x3ed   :  { %1480 = vmatpush2.msra.mxu1 %v1149_v11  ;;  %1549 = vmatpush2.msra.mxu0 %v1221_v14 }
 0x3ee   :  { %1481 = vmatprep.subr.mxu1 %v1148_v15  ;;  %1550 = vmatprep.subr.mxu0 %v1220_v16 }
 0x3ef   :  { %1482 = vmatpush2.msra.mxu1 %v1147_v17  ;;  %1551 = vmatpush2.msra.mxu0 %v1219_v18 }
 0x3f0   :  { %1483 = vmatprep.subr.mxu1 %v1146_v20  ;;  %1552 = vmatprep.subr.mxu0 %v1218_v21 }
 0x3f1   :  { %1484 = vmatpush2.msra.mxu1 %v1145_v9  ;;  %1553 = vmatpush2.msra.mxu0 %v1217_v22 }
 0x3f2   :  { %1485 = vmatprep.subr.mxu1 %v1144_v23  ;;  %1554 = vmatprep.subr.mxu0 %v1216_v26 }
 0x3f3   :  { %1486 = vmatpush2.msra.mxu1 %v1143_v27  ;;  %1555 = vmatpush2.msra.mxu0 %v1215_v28 }
 0x3f4   :  { %1488 = vmatmul.mubr.f32.vlgmr.msra.gmra.mxu1 %v969_v13  ;;  %1556 = vmatprep.subr.mxu0 %v1214_v31 }
 0x3f5   :  { %1585 = vmatprep.subr.mxu1 %v1262_v32  ;;  %1493 = vmatprep.mubr.f32.mxu1 %v979_v36 }
 0x3f6   :  { %1557 = vmatpush2.msra.mxu0 %v1213_v33  ;;  %1586 = vmatpush1.msra.mxu1 %v1261_v34 }
 0x3f7   :  { %1558 = vmatprep.subr.mxu0 %v1212_v37  ;;  %1587 = vmatprep.subr.mxu1 %v1260_v38 }
 0x3f8   :  { %1559 = vmatpush2.msra.mxu0 %v1211_v40  ;;  %1588 = vmatpush1.msra.mxu1 %v1259_v41 }
 0x3f9   :  { %1494 = vmatmul.mubr.f32.gmra.mxu1 %v978_v46  ;;  %1560 = vmatprep.subr.mxu0 %v1210_v43 }
 0x3fa   :  { %1589 = vmatprep.subr.mxu1 %v1258_v44  ;;  %1561 = vmatpush2.msra.mxu0 %v1209_v45 }
 0x3fb   :  { %1590 = vmatpush1.msra.mxu1 %v1257_v29  ;;  %1562 = vmatprep.subr.mxu0 %v1208_v47 }
 0x3fc   :  { %1591 = vmatprep.subr.mxu1 %v1256_v48  ;;  %1563 = vmatpush2.msra.mxu0 %v1207_v49 }
 0x3fd   :  { %1592 = vmatpush1.msra.mxu1 %v1255_v50  ;;  %1565 = vmatmul.mubr.f32.vlgmr.msra.gmra.mxu0 %v971_v24 }
 0x3fe   :  { %1593 = vmatprep.subr.mxu1 %v1254_v51  ;;  %1570 = vmatprep.mubr.f32.mxu0 %v981_v53 }
 0x3ff   :  { %1594 = vmatpush1.msra.mxu1 %v1253_v52  ;;  %1641 = vmatprep.mubr.f32.mxu1 %v1958_v54 }
 0x400   :  { %1595 = vmatprep.subr.mxu1 %v1252_v12  ;;  %1904 = vmatprep.subr.mxu0 %v1958_v54 }
 0x401   :  { %1596 = vmatpush1.msra.mxu1 %v1251_v39  ;;  %1571 = vmatmul.mubr.f32.gmra.mxu0 %v980_v55 }
 0x402   :  { %1597 = vmatprep.subr.mxu1 %v1250_v30 }
 0x403   :  { %1598 = vmatpush1.msra.mxu1 %v1249_v56 }
 0x404   :  { %1599 = vmatprep.subr.mxu1 %v1248_v0 }
 0x405   :  { %1600 = vmatpush1.msra.mxu1 %v1247_v57 }
 0x406   :  { %1601 = vmatprep.subr.mxu1 %v1246_v35 }
 0x407   :  { %1602 = vmatpush1.msra.mxu1 %v1245_v25 }
 0x408   :  { %1603 = vmatprep.subr.mxu1 %v1244_v42 }
 0x409   :  { %1604 = vmatpush1.msra.mxu1 %v1243_v63 }
 0x40a   :  { %1605 = vmatprep.subr.mxu1 %v1242_v58 }
 0x40b   :  { %1606 = vmatpush1.msra.mxu1 %v1241_v59 }
 0x40c   :  { %1607 = vmatprep.subr.mxu1 %v1240_v60 }
 0x40d   :  { %1608 = vmatpush1.msra.mxu1 %v1239_v61 }
 0x40e   :  { %1895 = vmatmul.mubr.msk.f32.vlgmr.msra.gmra.mxu1 %vm340_vm7, %v973_v62 }
 0x40f   :  { %1647 = vmatprep.mubr.f32.mxu1 %v1958_v54 }
 0x412   :  { %1896 = vmatmul.mubr.msk.f32.gmra.mxu1 %vm340_vm7, %v982_v3 }
 0x471   :  { %v1335_v1 = vpop.f32.mrf.mxu1 }
 0x473   :  { %v1337_v4 = vpop.f32.mrf.mxu1 }
 0x479   :  { %v1412_v2 = vpop.f32.mrf.mxu0 }
 0x47a   :  { %v1413_v26 = vadd.f32 %v1412_v2, %v1335_v1 }
 0x47b   :  { %v1414_v5 = vpop.f32.mrf.mxu0 }
 0x47c   :  { %v1415_v6 = vadd.f32 %v1414_v5, %v1337_v4 }
 0x47e   :  { %v1341_v7 = vpop.f32.mrf.mxu1 }
 0x480   :  { %v1343_v10 = vpop.f32.mrf.mxu1 }
 0x48c   :  { %v1418_v8 = vpop.f32.mrf.mxu0 }
 0x48d   :  { %v1419_v28 = vadd.f32 %v1418_v8, %v1341_v7 }
 0x48e   :  { %v1420_v11 = vpop.f32.mrf.mxu0 }
 0x48f   :  { %v1421_v14 = vadd.f32 %v1420_v11, %v1343_v10 }
 0x4b4   :  { %v1489_v15 = vpop.f32.mrf.mxu1 }
 0x4b5   :  { %v1490_v31 = vadd.f32 %v1489_v15, %v1413_v26 }
 0x4b6   :  { %v1491_v16 = vpop.f32.mrf.mxu1 }
 0x4b7   :  { %v1492_v17 = vadd.f32 %v1491_v16, %v1415_v6 }
 0x4b9   :  { %v1495_v18 = vpop.f32.mrf.mxu1 }
 0x4ba   :  { %v1496_v13 = vadd.f32 %v1495_v18, %v1419_v28 }
 0x4bb   :  { %v1497_v20 = vpop.f32.mrf.mxu1 }
 0x4bc   :  { %v1498_v21 = vadd.f32 %v1497_v20, %v1421_v14 }
 0x4bd   :  { %v1566_v9 = vpop.f32.mrf.mxu0 }
 0x4be   :  { %v1567_v33 = vadd.f32 %v1566_v9, %v1490_v31 }
 0x4bf   :  { %v1568_v22 = vpop.f32.mrf.mxu0 }
 0x4c0   :  { %v1569_v23 = vadd.f32 %v1568_v22, %v1492_v17 }
 0x4c1   :  { %v1572_v27 = vpop.f32.mrf.mxu0 }
 0x4c2   :  { %v1573_v37 = vadd.f32 %v1572_v27, %v1496_v13 }
 0x4c3   :  { %v1574_v34 = vpop.f32.mrf.mxu0 }
 0x4c4   :  { %v1575_v43 = vadd.f32 %v1574_v34, %v1498_v21 }
 0x4ce   :  { %v1643_v32 = vpop.f32.mrf.mxu1 }
 0x4cf   :  { %v3551_v40 = vadd.f32 %v1643_v32, %v1567_v33 }
 0x4d0   :  { %v1645_v36 = vpop.f32.mrf.mxu1 }
 0x4d1   :  { %v1646_v38 = vadd.f32 %v1645_v36, %v1569_v23  ;;  %v1686_v49 = vmul.f32 %v3551_v40, %v3551_v40 }
 0x4d2   :  { %v1649_v41 = vpop.f32.mrf.mxu1 }
 0x4d3   :  { %v1650_v44 = vadd.f32 %v1649_v41, %v1573_v37  ;;  %v1687_v46 = vmul.f32 %v1646_v38, %v1646_v38  ;;  %v1663_v51 = vsel %vm3633_vm8, %v1646_v38, 0.0 }
 0x4d4   :  { %v1651_v45 = vpop.f32.mrf.mxu1 }
 0x4d5   :  { %v1655_v29 = vsel %vm1654_vm3, %v1650_v44, 0.0  ;;  %v1688_v47 = vmul.f32 %v1650_v44, %v1650_v44  ;;  %v1652_v48 = vadd.f32 %v1651_v45, %v1575_v43  ;;  %v1698_v55 = vsel %vm3634_vm12, %v1687_v46, 0.0  ;;  %v1726_v43 = vld [vmem:[%s3614_s3 + $0x21] sm:$0x1] }
 0x4d6   :  { %v1656_v50 = vadd.f32 %v1655_v29, %v3551_v40 }
 0x4d7   :  { %v1690_v24 = vsel %vm1654_vm3, %v1688_v47, 0.0  ;;  %v1664_v52 = vsel %vm932_vm0, %v1652_v48, 0.0  ;;  %v1689_v53 = vmul.f32 %v1652_v48, %v1652_v48 }
 0x4d8   :  { %v1657_v12 = vrot.slane %v1656_v50, 4  ;;  %v1691_v39 = vadd.f32 %v1690_v24, %v1686_v49  ;;  %v1665_v30 = vadd.f32 %v1664_v52, %v1663_v51 }
 0x4d9   :  { %v1699_v56 = vsel %vm932_vm0, %v1689_v53, 0.0 }
 0x4da   :  { %v1658_v0 = vadd.f32 %v1657_v12, %v1656_v50  ;;  %v1692_v57 = vrot.slane %v1691_v39, 4  ;;  %v1700_v35 = vadd.f32 %v1699_v56, %v1698_v55  ;;  %v1666_v1 = vrot.slane %v1665_v30, 4 }
 0x4dc   :  { %v1659_v25 = vrot.slane %v1658_v0, 2  ;;  %v1693_v42 = vadd.f32 %v1692_v57, %v1691_v39  ;;  %v1667_v2 = vadd.f32 %v1666_v1, %v1665_v30  ;;  %v1701_v4 = vrot.slane %v1700_v35, 4 }
 0x4de   :  { %v1660_v63 = vadd.f32 %v1659_v25, %v1658_v0  ;;  %v1694_v58 = vrot.slane %v1693_v42, 2  ;;  %v1668_v5 = vrot.slane %v1667_v2, 2  ;;  %v1702_v6 = vadd.f32 %v1701_v4, %v1700_v35  ;;  %v1796_v25 = vld [vmem:[%s3614_s3 + $0x18] sm:$0xff] }
 0x4df   :  { %1905 = vmatpush3.msra.mxu0 %v1796_v25 }
 0x4e0   :  { %v1661_v59 = vrot.slane %v1660_v63, 1  ;;  %v1695_v60 = vadd.f32 %v1694_v58, %v1693_v42  ;;  %v1669_v7 = vadd.f32 %v1668_v5, %v1667_v2  ;;  %v1703_v8 = vrot.slane %v1702_v6, 2  ;;  %1906 = vmatprep.subr.mxu0 %v1958_v54 }
 0x4e2   :  { %v1662_v61 = vadd.f32 %v1661_v59, %v1660_v63  ;;  %v1696_v62 = vrot.slane %v1695_v60, 1  ;;  %v1670_v15 = vrot.slane %v1669_v7, 1  ;;  %v1704_v17 = vadd.f32 %v1703_v8, %v1702_v6  ;;  %v1795_v63 = vld [vmem:[%s3614_s3 + $0x10] sm:$0xff] }
 0x4e3   :  { %1907 = vmatpush3.msra.mxu0 %v1795_v63 }
 0x4e4   :  { %1677 = vrot.lane.b32.xlu0 %v1662_v61, %s1951_s19  ;;  %1673 = vrot.lane.b32.xlu1 %v1662_v61, %s1952_s20  ;;  %v1697_v3 = vadd.f32 %v1696_v62, %v1695_v60  ;;  %v1671_v21 = vadd.f32 %v1670_v15, %v1669_v7  ;;  %v1705_v26 = vrot.slane %v1704_v17, 1  ;;  %v1897_v7 = vld [vmem:[%s3614_s3 + $0x22] ss:$0 sm:$0xff] }
 0x4e5   :  { %1908 = vmatprep.subr.mxu0 %v1958_v54 }
 0x4e6   :  { %v1706_v13 = vadd.f32 %v1705_v26, %v1704_v17 }
 0x4e8   :  { %1681 = vrot.lane.b32.xlu0 %v1662_v61, %s1953_s17  ;;  %1708 = vrot.lane.b32.xlu1 %v1697_v3, %s1952_s20 }
 0x4ec   :  { %1716 = vrot.lane.b32.xlu0 %v1697_v3, %s1953_s17  ;;  %1712 = vrot.lane.b32.xlu1 %v1697_v3, %s1951_s19 }
 0x556   :  { %v1678_v10 = vpop.permute.xlu0 %1677  ;;  %v1674_v11 = vpop.permute.xlu1 %1673 }
 0x557   :  { %v1676_v14 = vadd.f32 %v1674_v11, %v1662_v61 }
 0x559   :  { %v1680_v16 = vadd.f32 %v1678_v10, %v1676_v14 }
 0x55a   :  { %v1682_v18 = vpop.permute.xlu0 %1681  ;;  %v1709_v20 = vpop.permute.xlu1 %1708 }
 0x55b   :  { %v1684_v9 = vadd.f32 %v1682_v18, %v1680_v16  ;;  %v1711_v23 = vadd.f32 %v1709_v20, %v1697_v3 }
 0x55d   :  { %v1685_v22 = vadd.f32 %v1684_v9, %v1671_v21 }
 0x55e   :  { %v1713_v27 = vpop.permute.xlu1 %1712  ;;  %v1717_v31 = vpop.permute.xlu0 %1716 }
 0x55f   :  { %v1715_v28 = vadd.f32 %v1713_v27, %v1711_v23  ;;  %v1722_v32 = vmul.f32 0.02, %v1685_v22 }
 0x561   :  { %v1719_v33 = vadd.f32 %v1717_v31, %v1715_v28  ;;  %v1724_v36 = vmul.f32 %v1722_v32, %v1722_v32 }
 0x563   :  { %v1720_v34 = vadd.f32 %v1719_v33, %v1706_v13 }
 0x565   :  { %v1723_v37 = vmul.f32 0.02, %v1720_v34 }
 0x567   :  { %v1725_v38 = vsub.f32 %v1723_v37, %v1724_v36 }
 0x569   :  { %v1727_v41 = vadd.f32 1e-05, %v1725_v38 }
 0x56b   :  { %1927 = vrsqrt.f32 %v1727_v41 }
 0x578   :  { %v1928_v44 = vpop.eup %1927 }
 0x579   :  { %v1729_v45 = vmul.f32 %v1928_v44, %v1726_v43 }
 0x57b   :  { %1737 = vrot.lane.b32.xlu0 %v1729_v45, %s1953_s17  ;;  %v1730_v46 = vmul.f32 %v1729_v45, %v1722_v32 }
 0x57d   :  { %1732 = vrot.lane.b32.xlu1 %v1730_v46, %s1953_s17 }
 0x57f   :  { %1743 = vrot.lane.b32.xlu0 %v1729_v45, %s1952_s20 }
 0x581   :  { %1740 = vrot.lane.b32.xlu1 %v1729_v45, %s1951_s19 }
 0x5ed   :  { %v1738_v48 = vpop.permute.xlu0 %1737 }
 0x5ee   :  { %v1746_v50 = vsel %vm3635_vm4, %v1729_v45, %v1738_v48 }
 0x5ef   :  { %v1733_v29 = vpop.permute.xlu1 %1732 }
 0x5f0   :  { %v1735_v47 = vsub.f32 %v1726_v43, %v1733_v29 }
 0x5f1   :  { %v1744_v24 = vpop.permute.xlu0 %1743 }
 0x5f2   :  { %1758 = vrot.lane.b32.xlu0 %v1735_v47, %s1953_s17  ;;  %1755 = vrot.lane.b32.xlu1 %v1735_v47, %s1952_s20 }
 0x5f3   :  { %v1741_v49 = vpop.permute.xlu1 %1740 }
 0x5f4   :  { %v1747_v51 = vsel %vm731_vm13, %v1746_v50, %v1741_v49 }
 0x5f5   :  { %v1748_v52 = vsel %vm340_vm7, %v1747_v51, %v1744_v24 }
 0x5f6   :  { %1761 = vrot.lane.b32.xlu1 %v1735_v47, %s1951_s19  ;;  %v1752_v30 = vrot.slane %v1748_v52, %v2854_v19 }
 0x5f8   :  { %v1753_v35 = vmul.f32 %v1752_v30, %v3551_v40  ;;  %v1793_v40 = vld [vmem:[%s3614_s3] sm:$0xff] }
 0x664   :  { %v1756_v53 = vpop.permute.xlu1 %1755  ;;  %v1759_v12 = vpop.permute.xlu0 %1758 }
 0x665   :  { %v1764_v39 = vsel %vm3636_vm6, %v1756_v53, %v1735_v47 }
 0x666   :  { %v1765_v55 = vsel %vm731_vm13, %v1764_v39, %v1759_v12  ;;  %vm3637_vm13 = vmmov %vm3635_vm4 }
 0x668   :  { %v1762_v56 = vpop.permute.xlu1 %1761 }
 0x669   :  { %v1766_v0 = vsel %vm340_vm7, %v1765_v55, %v1762_v56  ;;  %vm1959_vm7 = vmmov 0  }
 0x66a   :  { %v1770_v57 = vrot.slane %v1766_v0, %v2854_v19  ;;  %v1794_v19 = vld [vmem:[%s3614_s3 + $0x8] sm:$0xff]  ;;  %1912 = vmatprep.mubr.msk.f32.mxu0 %vm1959_vm7, %v1958_v54 }
 0x66b   :  { %1909 = vmatpush3.msra.mxu0 %v1794_v19 }
 0x66c   :  { %v1771_v42 = vadd.f32 %v1770_v57, %v1753_v35  ;;  %1910 = vmatprep.subr.mxu0 %v1958_v54 }
 0x66d   :  { %1911 = vmatpush3.msra.mxu0 %v1793_v40 }
 0x66e   :  { %v1772_v58 = vmax.f32 %v1771_v42, 0.0 }
 0x670   :  { %1778 = vrot.lane.b32.xlu1 %v1772_v58, %s1951_s19  ;;  %1774 = vrot.lane.b32.xlu0 %v1772_v58, %s1952_s20 }
 0x6e2   :  { %v1775_v59 = vpop.permute.xlu0 %1774  ;;  %v1779_v61 = vpop.permute.xlu1 %1778 }
 0x6e3   :  { %v1777_v60 = vmax.f32 %v1772_v58, %v1775_v59 }
 0x6e5   :  { %v1781_v62 = vmax.f32 %v1777_v60, %v1779_v61 }
 0x6e7   :  { %v1783_v3 = vrot.slane %v1781_v62, 1  ;;  %v1786_v2 = vrot.slane %v1781_v62, 2 }
 0x6e9   :  { %v1785_v1 = vmax.f32 %v1781_v62, %v1783_v3 }
 0x6eb   :  { %v1788_v4 = vmax.f32 %v1785_v1, %v1786_v2 }
 0x6ed   :  { %v1790_v5 = vrot.slane %v1788_v4, 4 }
 0x6ef   :  { %v1792_v6 = vsel %vm813_vm2, %v1788_v4, %v1790_v5 }
 0x6f0   :  { %1913 = vmatmul.mubr.msk.f32.vlgmr.msra.gmra.mxu0 %vm3637_vm13, %v1792_v6 }
 0x7b0   :  { %v1871_v54 = vpop.f32.mrf.mxu0 }
 0x7b1   :  { %v1872_v8 = vadd.f32 %v1897_v7, %v1871_v54 }
 0x7b2   :  { %v1914_v10 = vpop.f32.mrf.mxu0 }
 0x7b3   :  { %1876 = vst.msk [vmem:[#allocation4] sm:$0x3] %vm1875_vm15, %v1872_v8 }
 0x7b4   :  { %1940 = shalt.err (!%p1937_p4)
}
 0x7b5   :  { %1886 = dma.vmem_to_hbm [thread:$0]  %s1884_s1, 32, %s3615_s4, [#allocation5]  }
 0x7b6   :  { %1949 = dma.done.wait [#allocation5], 32  }
 0x7b7   :  { %1950 = vsyncadd [#allocation5], 4294967264 }
 0x7b8   :  { %1890 = vsyncpa [#allocation5], 1 }

</bundles_post_ra>
